<compile_context>
chip_gen: v7x
topology: tpu7x:2x2x1
jax: 0.10.0
libtpu: 0.0.40
codegen_flags: <defaults>
</compile_context>

<pallas_src>
import math
from functools import partial

import numpy as np
import jax
import jax.numpy as jnp
from jax import lax
from jax.experimental import pallas as pl
from jax.experimental.pallas import tpu as pltpu


# ----------------------------- in-kernel helpers -----------------------------

_INV_SQRT2 = 1.0 / math.sqrt(2.0)
_GELU_TANH_C = math.sqrt(2.0 / math.pi)


def _erf_poly(x):
    """Single-precision erf (Abramowitz & Stegun 7.1.26, |err| <= 1.5e-7).

    Uses only abs/exp/where/div, all of which have Pallas-TPU lowerings
    (lax.erf itself has no Mosaic lowering rule).
    """
    a1, a2, a3, a4, a5 = (0.254829592, -0.284496736, 1.421413741,
                          -1.453152027, 1.061405429)
    p = 0.3275911
    ax = jnp.abs(x)
    t = 1.0 / (1.0 + p * ax)
    poly = ((((a5 * t + a4) * t + a3) * t + a2) * t + a1) * t
    y = 1.0 - poly * jnp.exp(-(ax * ax))
    return jnp.where(x < 0.0, -y, y)


def _gelu(x, use_tanh):
    if use_tanh:
        # tanh approximation: native EUP transcendental (cheaper), ~1e-3 abs dev.
        return 0.5 * x * (1.0 + jnp.tanh(_GELU_TANH_C * (x + 0.044715 * x * x * x)))
    # near-exact erf form: matches nn.GELU() to ~1.5e-7.
    return 0.5 * x * (1.0 + _erf_poly(x * _INV_SQRT2))


# --------------------------------- kernel ------------------------------------

def fused_linear_attention_kernel(x_ref, dw_ref, mask_ref, wqkv_ref, hmask_ref,
                                  wout_ref, bout_ref, o_ref, *, heads, dim_head,
                                  H, W, n_imgs, use_tanh_gelu):
    """One grid step processes n_imgs images folded into the lane axis.

    x_ref:    (C, n_imgs*H*W)   feature map(s), channels in sublanes, tokens in lanes
    dw_ref:   (C, 9)            depthwise 3x3 taps, t = (dy+1)*3 + (dx+1)
    mask_ref: (9, n_imgs*H*W)   precomputed 0/1 boundary masks per tap
    wqkv_ref: (3*inner, 2C)     block-diagonal fused [q ; kv] projection weight
    hmask_ref:(inner, inner)    per-head block-diag mask, pre-multiplied by scale
    wout_ref: (C, inner)        to_out 1x1 conv weight (transposed)
    bout_ref: (C, 1)            to_out bias
    o_ref:    (C, n_imgs*H*W)
    """
    N = H * W
    Nt = n_imgs * N
    dh = dim_head
    inner = heads * dh

    x = x_ref[...].astype(jnp.float32)                       # (C, Nt)

    # ---- depthwise 3x3 conv (padding=1): XLU lane rotations + hoisted masks ---
    dw = dw_ref[...].astype(jnp.float32)                     # (C, 9)
    xd = x * dw[:, 4:5]                                      # center tap
    for dy in (-1, 0, 1):
        for dx in (-1, 0, 1):
            if dy == 0 and dx == 0:
                continue
            t = (dy + 1) * 3 + (dx + 1)
            off = dy * W + dx
            # want y[:, n] = x[:, (n + off) % Nt]  ==  roll(x, -off);
            # out-of-image / cross-image-wrap taps are zeroed by the mask row.
            shifted = pltpu.roll(x, (-off) % Nt, axis=1)
            xd = xd + (shifted * mask_ref[t:t + 1, :]) * dw[:, t:t + 1]

    # ---- fused q/kv projection: one K=2C matmul, block-diagonal weight --------
    # TODO(synk): cast MXU operands to bf16 (f32 accumulation) on v6e/v7x at
    # StyleGAN scale; kept f32 here for exactness at toy shapes.
    xs = jnp.concatenate([x, xd], axis=0)                    # (2C, Nt)
    wqkv = wqkv_ref[...].astype(jnp.float32)                 # (3*inner, 2C)
    qkv = jnp.dot(wqkv, xs, preferred_element_type=jnp.float32)   # (3*inner, Nt)
    q_t = qkv[:inner, :]
    k_t = qkv[inner:2 * inner, :]
    v_t = qkv[2 * inner:, :]

    # ---- q softmax over features, per head (per-head max -> no underflow);
    #      divide replaced by approx reciprocal on the compact (1, Nt) denom ----
    q_parts = []
    for h in range(heads):
        qh = q_t[h * dh:(h + 1) * dh, :]                     # (dh, Nt), aligned slice
        mh = jnp.max(qh, axis=0, keepdims=True)              # (1, Nt)
        eh = jnp.exp(qh - mh)
        sh = jnp.sum(eh, axis=0, keepdims=True)              # (1, Nt), >= 1
        q_parts.append(eh * pl.reciprocal(sh, approx=True))
    q_soft = jnp.concatenate(q_parts, axis=0)                # (inner, Nt); scale folded into hmask

    hmask = hmask_ref[...]                                   # (inner, inner)

    # ---- per-image attention core (lane slices are free: N % 128 == 0) --------
    out_parts = []
    for b in range(n_imgs):
        lo = b * N
        k_b = k_t[:, lo:lo + N]
        v_b = v_t[:, lo:lo + N]
        q_b = q_soft[:, lo:lo + N]
        # k softmax over tokens (lane axis), per (head, feature) row
        mk = jnp.max(k_b, axis=1, keepdims=True)             # (inner, 1)
        ek = jnp.exp(k_b - mk)
        sk = jnp.sum(ek, axis=1, keepdims=True)              # (inner, 1), >= 1
        k_s = ek * pl.reciprocal(sk, approx=True)            # (inner, N)
        # ctx_t[e, d] = sum_n v_b[e, n] * k_s[d, n]  -> already the layout the
        # second matmul wants (no implicit transpose); block-diagonal per head
        # and pre-scaled by dim_head**-0.5 via hmask.
        ctx_t = lax.dot_general(v_b, k_s, (((1,), (1,)), ((), ())),
                                preferred_element_type=jnp.float32)
        ctx_t = ctx_t * hmask                                # (inner, inner)
        out_parts.append(jnp.dot(ctx_t, q_b, preferred_element_type=jnp.float32))
    out_t = out_parts[0] if n_imgs == 1 else jnp.concatenate(out_parts, axis=1)

    out_t = _gelu(out_t, use_tanh_gelu)                      # (inner, Nt)

    # ---- to_out 1x1 conv, feature-major -> lane-dense (C, Nt) store ------------
    wout = wout_ref[...].astype(jnp.float32)                 # (C, inner)
    bout = bout_ref[...].astype(jnp.float32)                 # (C, 1)
    y = jnp.dot(wout, out_t, preferred_element_type=jnp.float32) + bout
    o_ref[...] = y.astype(o_ref.dtype)


# -------------------------------- wrapper -------------------------------------

def _build_tap_masks(H, W, n_imgs):
    """(9, n_imgs*H*W) f32 validity masks for the 3x3 taps (1-pixel zero pad).

    Also zeroes taps that would wrap across image boundaries when several images
    are folded into the lane axis.
    """
    N = H * W
    pos = np.arange(n_imgs * N) % N
    hh, ww = pos // W, pos % W
    masks = np.zeros((9, n_imgs * N), np.float32)
    for dy in (-1, 0, 1):
        for dx in (-1, 0, 1):
            t = (dy + 1) * 3 + (dx + 1)
            valid = np.ones(n_imgs * N, bool)
            if dy == -1:
                valid &= hh >= 1
            if dy == 1:
                valid &= hh <= H - 2
            if dx == -1:
                valid &= ww >= 1
            if dx == 1:
                valid &= ww <= W - 2
            masks[t] = valid
    return masks


def linear_attention_forward(fmap, params, heads, dim_head, *,
                             batches_per_block=None, use_tanh_gelu=False):
    """fmap: (B, C, H, W) NCHW, matching the PyTorch module. Returns (B, C, H, W)."""
    B, C, H, W = fmap.shape
    dh = dim_head
    inner = heads * dh
    N = H * W
    scale = dh ** (-0.5)

    # Images folded per grid step (along the lane axis): amortizes the
    # ~0.35us/step grid overhead and doubles MXU lane occupancy at toy sizes.
    # On v7x pass batches_per_block explicitly (< B) so the grid keeps >= 2
    # "parallel" steps and the second TensorCore stays busy.
    if batches_per_block is None:
        batches_per_block = B
        while batches_per_block > 1 and (B % batches_per_block != 0
                                         or batches_per_block * N > 1024):
            batches_per_block -= 1
    bpb = batches_per_block
    assert B % bpb == 0, (B, bpb)
    Nt = bpb * N

    # Activations: NCHW -> feature-major (C, B*N), images folded into lanes.
    # TODO(synk): at StyleGAN scale (N >> 4k, C up to 512) drop this wrapper
    # transpose, keep grid=(B, token_tile) with the token axis "arbitrary", and
    # accumulate the k-softmax stats + k^T v context in VMEM scratch; size the
    # token tile for v7x's 64 MiB VMEM / v5e's 16 MiB scoped default.
    x_cn = jnp.transpose(fmap.reshape(B, C, N), (1, 0, 2)).reshape(C, B * N)

    # One-time weight re-layouts / constants (pre-baked in a real deployment).
    dw_cn = jnp.transpose(params["dw_w"].reshape(9, C))             # (C, 9)
    wq_t = jnp.transpose(params["wq"])                              # (inner, C)
    wkv_t = jnp.transpose(params["wkv"])                            # (2*inner, C)
    w_qkv = jnp.zeros((3 * inner, 2 * C), jnp.float32)              # block-diag fused proj
    w_qkv = w_qkv.at[:inner, :C].set(wq_t).at[inner:, C:].set(wkv_t)
    wout_t = jnp.transpose(params["wout"])                          # (C, inner)
    bout_c = jnp.transpose(params["bout"])                          # (C, 1)

    masks = jnp.asarray(_build_tap_masks(H, W, bpb))                # (9, Nt)
    hid = np.arange(inner) // dh
    hmask = jnp.asarray((hid[:, None] == hid[None, :]).astype(np.float32) * scale)

    kernel = partial(fused_linear_attention_kernel, heads=heads, dim_head=dh,
                     H=H, W=W, n_imgs=bpb, use_tanh_gelu=use_tanh_gelu)

    y_cn = pl.pallas_call(
        kernel,
        out_shape=jax.ShapeDtypeStruct((C, B * N), fmap.dtype),
        grid=(B // bpb,),
        in_specs=[
            pl.BlockSpec((C, Nt), lambda i: (0, i)),                # activations
            pl.BlockSpec((C, 9), lambda i: (0, 0)),                 # depthwise taps
            pl.BlockSpec((9, Nt), lambda i: (0, 0)),                # tap masks
            pl.BlockSpec((3 * inner, 2 * C), lambda i: (0, 0)),     # fused q/kv weight
            pl.BlockSpec((inner, inner), lambda i: (0, 0)),         # scaled head mask
            pl.BlockSpec((C, inner), lambda i: (0, 0)),             # out weight
            pl.BlockSpec((C, 1), lambda i: (0, 0)),                 # out bias
        ],
        out_specs=pl.BlockSpec((C, Nt), lambda i: (0, i)),
        compiler_params=pltpu.CompilerParams(dimension_semantics=("parallel",)),
    )(x_cn, dw_cn, masks, w_qkv, hmask, wout_t, bout_c)

    return jnp.transpose(y_cn.reshape(C, B, N), (1, 0, 2)).reshape(B, C, H, W)


# ---------------------------- pure-JAX reference -------------------------------

def reference_forward(fmap, params, heads, dim_head):
    B, C, H, W = fmap.shape
    dh = dim_head
    inner = heads * dh
    N = H * W
    scale = dh ** (-0.5)

    x = jnp.transpose(fmap, (0, 2, 3, 1))
    xpad = jnp.pad(x, ((0, 0), (1, 1), (1, 1), (0, 0)))
    dw = params["dw_w"]
    xd = sum(xpad[:, dy:dy + H, dx:dx + W, :] * dw[dy, dx]
             for dy in range(3) for dx in range(3))

    xt, xdt = x.reshape(B, N, C), xd.reshape(B, N, C)
    q = jnp.einsum("bnc,cd->bnd", xt, params["wq"])
    kv = jnp.einsum("bnc,cd->bnd", xdt, params["wkv"])
    k, v = kv[..., :inner], kv[..., inner:]

    def split(t):
        return jnp.transpose(t.reshape(B, N, heads, dh), (0, 2, 1, 3))

    q, k, v = split(q), split(k), split(v)
    q = jax.nn.softmax(q, axis=-1) * scale
    k = jax.nn.softmax(k, axis=2)
    ctx = jnp.einsum("bhnd,bhne->bhde", k, v)
    out = jnp.einsum("bhnd,bhde->bhne", q, ctx)
    out = jax.nn.gelu(out, approximate=False)
    out = jnp.transpose(out, (0, 2, 1, 3)).reshape(B, N, inner)
    y = jnp.einsum("bni,ic->bnc", out, params["wout"]) + params["bout"]
    return jnp.transpose(y.reshape(B, H, W, C), (0, 3, 1, 2))


# ----------------------------------- main --------------------------------------

if __name__ == "__main__":
    # small shapes consistent with the module
    B, dim, H, W = 2, 8, 16, 16
    heads, dim_head = 4, 16
    inner = heads * dim_head

    key = jax.random.PRNGKey(0)
    k0, k1, k2, k3, k4, k5 = jax.random.split(key, 6)

    fmap = jax.random.normal(k0, (B, dim, H, W), jnp.float32)

    # deterministic synthetic parameters (shapes follow the module's __init__)
    params = {
        # to_q: Conv2d(dim, inner, 1, bias=False) weight^T -> (dim, inner)
        "wq": 0.2 * jax.random.normal(k1, (dim, inner), jnp.float32),
        # to_kv depthwise Conv2d(dim, dim, 3, groups=dim, bias=False) -> (3, 3, dim)
        "dw_w": 0.2 * jax.random.normal(k2, (3, 3, dim), jnp.float32),
        # to_kv pointwise Conv2d(dim, 2*inner, 1, bias=False) weight^T -> (dim, 2*inner)
        "wkv": 0.2 * jax.random.normal(k3, (dim, 2 * inner), jnp.float32),
        # to_out: Conv2d(inner, dim, 1) weight^T -> (inner, dim), bias -> (1, dim)
        "wout": 0.2 * jax.random.normal(k4, (inner, dim), jnp.float32),
        "bout": 0.05 * jax.random.normal(k5, (1, dim), jnp.float32),
    }

    y_ref = jax.block_until_ready(reference_forward(fmap, params, heads, dim_head))

    # default config: batch folded into lanes, single grid step
    y = jax.block_until_ready(linear_attention_forward(fmap, params, heads, dim_head))
    assert y.shape == (B, dim, H, W), y.shape
    assert np.all(np.isfinite(np.asarray(y)))
    np.testing.assert_allclose(np.asarray(y), np.asarray(y_ref), rtol=1e-2, atol=1e-2)

    # per-image grid config (the one to use on v7x for 2nd-TensorCore occupancy)
    y2 = jax.block_until_ready(
        linear_attention_forward(fmap, params, heads, dim_head, batches_per_block=1))
    np.testing.assert_allclose(np.asarray(y2), np.asarray(y_ref), rtol=1e-2, atol=1e-2)

    print("KERNEL_OK")
</pallas_src>

<mosaic_0001>
module attributes {stable_mosaic.version = 11 : i64} {
  func.func @fused_linear_attention_kernel(%arg0: i32, %arg1: memref<8x512xf32, #tpu.memory_space<vmem>>, %arg2: memref<8x9xf32, #tpu.memory_space<vmem>>, %arg3: memref<9x512xf32, #tpu.memory_space<vmem>>, %arg4: memref<192x16xf32, #tpu.memory_space<vmem>>, %arg5: memref<64x64xf32, #tpu.memory_space<vmem>>, %arg6: memref<8x64xf32, #tpu.memory_space<vmem>>, %arg7: memref<8x1xf32, #tpu.memory_space<vmem>>, %arg8: memref<8x512xf32, #tpu.memory_space<vmem>>) attributes {dimension_semantics = [#tpu.dimension_semantics<parallel>], iteration_bounds = array<i64: 1>, scalar_prefetch = 0 : i64, scratch_operands = 0 : i64, tpu.core_type = #tpu.core_type<tc>, window_params = [{transform_indices = @transform_0, window_bounds = array<i64: 8, 512>}, {pipeline_mode = #tpu.pipeline_mode<synchronous>, transform_indices = @transform_1, window_bounds = array<i64: 8, 9>}, {pipeline_mode = #tpu.pipeline_mode<synchronous>, transform_indices = @transform_2, window_bounds = array<i64: 9, 512>}, {pipeline_mode = #tpu.pipeline_mode<synchronous>, transform_indices = @transform_3, window_bounds = array<i64: 192, 16>}, {pipeline_mode = #tpu.pipeline_mode<synchronous>, transform_indices = @transform_4, window_bounds = array<i64: 64, 64>}, {pipeline_mode = #tpu.pipeline_mode<synchronous>, transform_indices = @transform_5, window_bounds = array<i64: 8, 64>}, {pipeline_mode = #tpu.pipeline_mode<synchronous>, transform_indices = @transform_6, window_bounds = array<i64: 8, 1>}, {transform_indices = @transform_7, window_bounds = array<i64: 8, 512>}]} {
    %c0 = arith.constant 0 : index
    %c0_0 = arith.constant 0 : index
    %0 = vector.load %arg1[%c0, %c0_0] : memref<8x512xf32, #tpu.memory_space<vmem>>, vector<8x512xf32>
    %c0_1 = arith.constant 0 : index
    %c0_2 = arith.constant 0 : index
    %1 = vector.load %arg2[%c0_1, %c0_2] : memref<8x9xf32, #tpu.memory_space<vmem>>, vector<8x9xf32>
    %2 = vector.extract_strided_slice %1 {offsets = [0, 4], sizes = [8, 1], strides = [1, 1]} : vector<8x9xf32> to vector<8x1xf32>
    %3 = vector.broadcast %2 : vector<8x1xf32> to vector<8x512xf32>
    %4 = arith.mulf %0, %3 : vector<8x512xf32>
    %c17_i32 = arith.constant 17 : i32
    %5 = tpu.dynamic_rotate %0 by %c17_i32 dim 1 : vector<8x512xf32>, i32 -> vector<8x512xf32>
    %c0_3 = arith.constant 0 : index
    %c0_4 = arith.constant 0 : index
    %6 = vector.load %arg3[%c0_3, %c0_4] : memref<9x512xf32, #tpu.memory_space<vmem>>, vector<1x512xf32>
    %7 = vector.broadcast %6 : vector<1x512xf32> to vector<8x512xf32>
    %8 = arith.mulf %5, %7 : vector<8x512xf32>
    %9 = vector.extract_strided_slice %1 {offsets = [0, 0], sizes = [8, 1], strides = [1, 1]} : vector<8x9xf32> to vector<8x1xf32>
    %10 = vector.broadcast %9 : vector<8x1xf32> to vector<8x512xf32>
    %11 = arith.mulf %8, %10 : vector<8x512xf32>
    %12 = arith.addf %4, %11 : vector<8x512xf32>
    %c16_i32 = arith.constant 16 : i32
    %13 = tpu.dynamic_rotate %0 by %c16_i32 dim 1 : vector<8x512xf32>, i32 -> vector<8x512xf32>
    %c1 = arith.constant 1 : index
    %c0_5 = arith.constant 0 : index
    %14 = vector.load %arg3[%c1, %c0_5] : memref<9x512xf32, #tpu.memory_space<vmem>>, vector<1x512xf32>
    %15 = vector.broadcast %14 : vector<1x512xf32> to vector<8x512xf32>
    %16 = arith.mulf %13, %15 : vector<8x512xf32>
    %17 = vector.extract_strided_slice %1 {offsets = [0, 1], sizes = [8, 1], strides = [1, 1]} : vector<8x9xf32> to vector<8x1xf32>
    %18 = vector.broadcast %17 : vector<8x1xf32> to vector<8x512xf32>
    %19 = arith.mulf %16, %18 : vector<8x512xf32>
    %20 = arith.addf %12, %19 : vector<8x512xf32>
    %c15_i32 = arith.constant 15 : i32
    %21 = tpu.dynamic_rotate %0 by %c15_i32 dim 1 : vector<8x512xf32>, i32 -> vector<8x512xf32>
    %c2 = arith.constant 2 : index
    %c0_6 = arith.constant 0 : index
    %22 = vector.load %arg3[%c2, %c0_6] : memref<9x512xf32, #tpu.memory_space<vmem>>, vector<1x512xf32>
    %23 = vector.broadcast %22 : vector<1x512xf32> to vector<8x512xf32>
    %24 = arith.mulf %21, %23 : vector<8x512xf32>
    %25 = vector.extract_strided_slice %1 {offsets = [0, 2], sizes = [8, 1], strides = [1, 1]} : vector<8x9xf32> to vector<8x1xf32>
    %26 = vector.broadcast %25 : vector<8x1xf32> to vector<8x512xf32>
    %27 = arith.mulf %24, %26 : vector<8x512xf32>
    %28 = arith.addf %20, %27 : vector<8x512xf32>
    %c1_i32 = arith.constant 1 : i32
    %29 = tpu.dynamic_rotate %0 by %c1_i32 dim 1 : vector<8x512xf32>, i32 -> vector<8x512xf32>
    %c3 = arith.constant 3 : index
    %c0_7 = arith.constant 0 : index
    %30 = vector.load %arg3[%c3, %c0_7] : memref<9x512xf32, #tpu.memory_space<vmem>>, vector<1x512xf32>
    %31 = vector.broadcast %30 : vector<1x512xf32> to vector<8x512xf32>
    %32 = arith.mulf %29, %31 : vector<8x512xf32>
    %33 = vector.extract_strided_slice %1 {offsets = [0, 3], sizes = [8, 1], strides = [1, 1]} : vector<8x9xf32> to vector<8x1xf32>
    %34 = vector.broadcast %33 : vector<8x1xf32> to vector<8x512xf32>
    %35 = arith.mulf %32, %34 : vector<8x512xf32>
    %36 = arith.addf %28, %35 : vector<8x512xf32>
    %c511_i32 = arith.constant 511 : i32
    %37 = tpu.dynamic_rotate %0 by %c511_i32 dim 1 : vector<8x512xf32>, i32 -> vector<8x512xf32>
    %c5 = arith.constant 5 : index
    %c0_8 = arith.constant 0 : index
    %38 = vector.load %arg3[%c5, %c0_8] : memref<9x512xf32, #tpu.memory_space<vmem>>, vector<1x512xf32>
    %39 = vector.broadcast %38 : vector<1x512xf32> to vector<8x512xf32>
    %40 = arith.mulf %37, %39 : vector<8x512xf32>
    %41 = vector.extract_strided_slice %1 {offsets = [0, 5], sizes = [8, 1], strides = [1, 1]} : vector<8x9xf32> to vector<8x1xf32>
    %42 = vector.broadcast %41 : vector<8x1xf32> to vector<8x512xf32>
    %43 = arith.mulf %40, %42 : vector<8x512xf32>
    %44 = arith.addf %36, %43 : vector<8x512xf32>
    %c497_i32 = arith.constant 497 : i32
    %45 = tpu.dynamic_rotate %0 by %c497_i32 dim 1 : vector<8x512xf32>, i32 -> vector<8x512xf32>
    %c6 = arith.constant 6 : index
    %c0_9 = arith.constant 0 : index
    %46 = vector.load %arg3[%c6, %c0_9] : memref<9x512xf32, #tpu.memory_space<vmem>>, vector<1x512xf32>
    %47 = vector.broadcast %46 : vector<1x512xf32> to vector<8x512xf32>
    %48 = arith.mulf %45, %47 : vector<8x512xf32>
    %49 = vector.extract_strided_slice %1 {offsets = [0, 6], sizes = [8, 1], strides = [1, 1]} : vector<8x9xf32> to vector<8x1xf32>
    %50 = vector.broadcast %49 : vector<8x1xf32> to vector<8x512xf32>
    %51 = arith.mulf %48, %50 : vector<8x512xf32>
    %52 = arith.addf %44, %51 : vector<8x512xf32>
    %c496_i32 = arith.constant 496 : i32
    %53 = tpu.dynamic_rotate %0 by %c496_i32 dim 1 : vector<8x512xf32>, i32 -> vector<8x512xf32>
    %c7 = arith.constant 7 : index
    %c0_10 = arith.constant 0 : index
    %54 = vector.load %arg3[%c7, %c0_10] : memref<9x512xf32, #tpu.memory_space<vmem>>, vector<1x512xf32>
    %55 = vector.broadcast %54 : vector<1x512xf32> to vector<8x512xf32>
    %56 = arith.mulf %53, %55 : vector<8x512xf32>
    %57 = vector.extract_strided_slice %1 {offsets = [0, 7], sizes = [8, 1], strides = [1, 1]} : vector<8x9xf32> to vector<8x1xf32>
    %58 = vector.broadcast %57 : vector<8x1xf32> to vector<8x512xf32>
    %59 = arith.mulf %56, %58 : vector<8x512xf32>
    %60 = arith.addf %52, %59 : vector<8x512xf32>
    %c495_i32 = arith.constant 495 : i32
    %61 = tpu.dynamic_rotate %0 by %c495_i32 dim 1 : vector<8x512xf32>, i32 -> vector<8x512xf32>
    %c8 = arith.constant 8 : index
    %c0_11 = arith.constant 0 : index
    %62 = vector.load %arg3[%c8, %c0_11] : memref<9x512xf32, #tpu.memory_space<vmem>>, vector<1x512xf32>
    %63 = vector.broadcast %62 : vector<1x512xf32> to vector<8x512xf32>
    %64 = arith.mulf %61, %63 : vector<8x512xf32>
    %65 = vector.extract_strided_slice %1 {offsets = [0, 8], sizes = [8, 1], strides = [1, 1]} : vector<8x9xf32> to vector<8x1xf32>
    %66 = vector.broadcast %65 : vector<8x1xf32> to vector<8x512xf32>
    %67 = arith.mulf %64, %66 : vector<8x512xf32>
    %68 = arith.addf %60, %67 : vector<8x512xf32>
    %69 = tpu.concatenate %0, %68 in 0 : vector<8x512xf32>, vector<8x512xf32> -> vector<16x512xf32>
    %c0_12 = arith.constant 0 : index
    %c0_13 = arith.constant 0 : index
    %70 = vector.load %arg4[%c0_12, %c0_13] : memref<192x16xf32, #tpu.memory_space<vmem>>, vector<192x16xf32>
    %cst = arith.constant dense<0.000000e+00> : vector<192x512xf32>
    %71 = tpu.matmul %70, %69, %cst {dimension_numbers = #tpu.dot_dimension_numbers<[1], [0], [0], [1], [0, 0, 1, 1], [], []>} : vector<192x16xf32>, vector<16x512xf32>, vector<192x512xf32> -> vector<192x512xf32>
    %72 = vector.extract_strided_slice %71 {offsets = [0, 0], sizes = [64, 512], strides = [1, 1]} : vector<192x512xf32> to vector<64x512xf32>
    %73 = vector.extract_strided_slice %71 {offsets = [64, 0], sizes = [64, 512], strides = [1, 1]} : vector<192x512xf32> to vector<64x512xf32>
    %74 = vector.extract_strided_slice %71 {offsets = [128, 0], sizes = [64, 512], strides = [1, 1]} : vector<192x512xf32> to vector<64x512xf32>
    %75 = vector.extract_strided_slice %72 {offsets = [0, 0], sizes = [16, 512], strides = [1, 1]} : vector<64x512xf32> to vector<16x512xf32>
    %cst_14 = arith.constant dense<0xFF800000> : vector<512xf32>
    %76 = vector.multi_reduction <maximumf>, %75, %cst_14 [0] : vector<16x512xf32> to vector<512xf32>
    %77 = vector.shape_cast %76 : vector<512xf32> to vector<1x512xf32>
    %78 = vector.broadcast %77 : vector<1x512xf32> to vector<16x512xf32>
    %79 = arith.subf %75, %78 : vector<16x512xf32>
    %80 = math.exp %79 : vector<16x512xf32>
    %cst_15 = arith.constant dense<0.000000e+00> : vector<512xf32>
    %81 = vector.multi_reduction <add>, %80, %cst_15 [0] : vector<16x512xf32> to vector<512xf32>
    %82 = vector.shape_cast %81 : vector<512xf32> to vector<1x512xf32>
    %83 = tpu.reciprocal %82 {approx = true} : vector<1x512xf32> -> vector<1x512xf32>
    %84 = vector.broadcast %83 : vector<1x512xf32> to vector<16x512xf32>
    %85 = arith.mulf %80, %84 : vector<16x512xf32>
    %86 = vector.extract_strided_slice %72 {offsets = [16, 0], sizes = [16, 512], strides = [1, 1]} : vector<64x512xf32> to vector<16x512xf32>
    %cst_16 = arith.constant dense<0xFF800000> : vector<512xf32>
    %87 = vector.multi_reduction <maximumf>, %86, %cst_16 [0] : vector<16x512xf32> to vector<512xf32>
    %88 = vector.shape_cast %87 : vector<512xf32> to vector<1x512xf32>
    %89 = vector.broadcast %88 : vector<1x512xf32> to vector<16x512xf32>
    %90 = arith.subf %86, %89 : vector<16x512xf32>
    %91 = math.exp %90 : vector<16x512xf32>
    %cst_17 = arith.constant dense<0.000000e+00> : vector<512xf32>
    %92 = vector.multi_reduction <add>, %91, %cst_17 [0] : vector<16x512xf32> to vector<512xf32>
    %93 = vector.shape_cast %92 : vector<512xf32> to vector<1x512xf32>
    %94 = tpu.reciprocal %93 {approx = true} : vector<1x512xf32> -> vector<1x512xf32>
    %95 = vector.broadcast %94 : vector<1x512xf32> to vector<16x512xf32>
    %96 = arith.mulf %91, %95 : vector<16x512xf32>
    %97 = vector.extract_strided_slice %72 {offsets = [32, 0], sizes = [16, 512], strides = [1, 1]} : vector<64x512xf32> to vector<16x512xf32>
    %cst_18 = arith.constant dense<0xFF800000> : vector<512xf32>
    %98 = vector.multi_reduction <maximumf>, %97, %cst_18 [0] : vector<16x512xf32> to vector<512xf32>
    %99 = vector.shape_cast %98 : vector<512xf32> to vector<1x512xf32>
    %100 = vector.broadcast %99 : vector<1x512xf32> to vector<16x512xf32>
    %101 = arith.subf %97, %100 : vector<16x512xf32>
    %102 = math.exp %101 : vector<16x512xf32>
    %cst_19 = arith.constant dense<0.000000e+00> : vector<512xf32>
    %103 = vector.multi_reduction <add>, %102, %cst_19 [0] : vector<16x512xf32> to vector<512xf32>
    %104 = vector.shape_cast %103 : vector<512xf32> to vector<1x512xf32>
    %105 = tpu.reciprocal %104 {approx = true} : vector<1x512xf32> -> vector<1x512xf32>
    %106 = vector.broadcast %105 : vector<1x512xf32> to vector<16x512xf32>
    %107 = arith.mulf %102, %106 : vector<16x512xf32>
    %108 = vector.extract_strided_slice %72 {offsets = [48, 0], sizes = [16, 512], strides = [1, 1]} : vector<64x512xf32> to vector<16x512xf32>
    %cst_20 = arith.constant dense<0xFF800000> : vector<512xf32>
    %109 = vector.multi_reduction <maximumf>, %108, %cst_20 [0] : vector<16x512xf32> to vector<512xf32>
    %110 = vector.shape_cast %109 : vector<512xf32> to vector<1x512xf32>
    %111 = vector.broadcast %110 : vector<1x512xf32> to vector<16x512xf32>
    %112 = arith.subf %108, %111 : vector<16x512xf32>
    %113 = math.exp %112 : vector<16x512xf32>
    %cst_21 = arith.constant dense<0.000000e+00> : vector<512xf32>
    %114 = vector.multi_reduction <add>, %113, %cst_21 [0] : vector<16x512xf32> to vector<512xf32>
    %115 = vector.shape_cast %114 : vector<512xf32> to vector<1x512xf32>
    %116 = tpu.reciprocal %115 {approx = true} : vector<1x512xf32> -> vector<1x512xf32>
    %117 = vector.broadcast %116 : vector<1x512xf32> to vector<16x512xf32>
    %118 = arith.mulf %113, %117 : vector<16x512xf32>
    %119 = tpu.concatenate %85, %96, %107, %118 in 0 : vector<16x512xf32>, vector<16x512xf32>, vector<16x512xf32>, vector<16x512xf32> -> vector<64x512xf32>
    %c0_22 = arith.constant 0 : index
    %c0_23 = arith.constant 0 : index
    %120 = vector.load %arg5[%c0_22, %c0_23] : memref<64x64xf32, #tpu.memory_space<vmem>>, vector<64x64xf32>
    %121 = vector.extract_strided_slice %73 {offsets = [0, 0], sizes = [64, 256], strides = [1, 1]} : vector<64x512xf32> to vector<64x256xf32>
    %122 = vector.extract_strided_slice %74 {offsets = [0, 0], sizes = [64, 256], strides = [1, 1]} : vector<64x512xf32> to vector<64x256xf32>
    %123 = vector.extract_strided_slice %119 {offsets = [0, 0], sizes = [64, 256], strides = [1, 1]} : vector<64x512xf32> to vector<64x256xf32>
    %cst_24 = arith.constant dense<0xFF800000> : vector<64xf32>
    %124 = vector.multi_reduction <maximumf>, %121, %cst_24 [1] : vector<64x256xf32> to vector<64xf32>
    %125 = vector.shape_cast %124 : vector<64xf32> to vector<64x1xf32>
    %126 = vector.broadcast %125 : vector<64x1xf32> to vector<64x256xf32>
    %127 = arith.subf %121, %126 : vector<64x256xf32>
    %128 = math.exp %127 : vector<64x256xf32>
    %cst_25 = arith.constant dense<0.000000e+00> : vector<64xf32>
    %129 = vector.multi_reduction <add>, %128, %cst_25 [1] : vector<64x256xf32> to vector<64xf32>
    %130 = vector.shape_cast %129 : vector<64xf32> to vector<64x1xf32>
    %131 = tpu.reciprocal %130 {approx = true} : vector<64x1xf32> -> vector<64x1xf32>
    %132 = vector.broadcast %131 : vector<64x1xf32> to vector<64x256xf32>
    %133 = arith.mulf %128, %132 : vector<64x256xf32>
    %cst_26 = arith.constant dense<0.000000e+00> : vector<64x64xf32>
    %134 = tpu.matmul %122, %133, %cst_26 {dimension_numbers = #tpu.dot_dimension_numbers<[1], [1], [0], [0], [0, 0, 1, 0], [], []>} : vector<64x256xf32>, vector<64x256xf32>, vector<64x64xf32> -> vector<64x64xf32>
    %135 = arith.mulf %134, %120 : vector<64x64xf32>
    %cst_27 = arith.constant dense<0.000000e+00> : vector<64x256xf32>
    %136 = tpu.matmul %135, %123, %cst_27 {dimension_numbers = #tpu.dot_dimension_numbers<[1], [0], [0], [1], [0, 0, 1, 1], [], []>} : vector<64x64xf32>, vector<64x256xf32>, vector<64x256xf32> -> vector<64x256xf32>
    %137 = vector.extract_strided_slice %73 {offsets = [0, 256], sizes = [64, 256], strides = [1, 1]} : vector<64x512xf32> to vector<64x256xf32>
    %138 = vector.extract_strided_slice %74 {offsets = [0, 256], sizes = [64, 256], strides = [1, 1]} : vector<64x512xf32> to vector<64x256xf32>
    %139 = vector.extract_strided_slice %119 {offsets = [0, 256], sizes = [64, 256], strides = [1, 1]} : vector<64x512xf32> to vector<64x256xf32>
    %cst_28 = arith.constant dense<0xFF800000> : vector<64xf32>
    %140 = vector.multi_reduction <maximumf>, %137, %cst_28 [1] : vector<64x256xf32> to vector<64xf32>
    %141 = vector.shape_cast %140 : vector<64xf32> to vector<64x1xf32>
    %142 = vector.broadcast %141 : vector<64x1xf32> to vector<64x256xf32>
    %143 = arith.subf %137, %142 : vector<64x256xf32>
    %144 = math.exp %143 : vector<64x256xf32>
    %cst_29 = arith.constant dense<0.000000e+00> : vector<64xf32>
    %145 = vector.multi_reduction <add>, %144, %cst_29 [1] : vector<64x256xf32> to vector<64xf32>
    %146 = vector.shape_cast %145 : vector<64xf32> to vector<64x1xf32>
    %147 = tpu.reciprocal %146 {approx = true} : vector<64x1xf32> -> vector<64x1xf32>
    %148 = vector.broadcast %147 : vector<64x1xf32> to vector<64x256xf32>
    %149 = arith.mulf %144, %148 : vector<64x256xf32>
    %cst_30 = arith.constant dense<0.000000e+00> : vector<64x64xf32>
    %150 = tpu.matmul %138, %149, %cst_30 {dimension_numbers = #tpu.dot_dimension_numbers<[1], [1], [0], [0], [0, 0, 1, 0], [], []>} : vector<64x256xf32>, vector<64x256xf32>, vector<64x64xf32> -> vector<64x64xf32>
    %151 = arith.mulf %150, %120 : vector<64x64xf32>
    %cst_31 = arith.constant dense<0.000000e+00> : vector<64x256xf32>
    %152 = tpu.matmul %151, %139, %cst_31 {dimension_numbers = #tpu.dot_dimension_numbers<[1], [0], [0], [1], [0, 0, 1, 1], [], []>} : vector<64x64xf32>, vector<64x256xf32>, vector<64x256xf32> -> vector<64x256xf32>
    %153 = tpu.concatenate %136, %152 in 1 : vector<64x256xf32>, vector<64x256xf32> -> vector<64x512xf32>
    %cst_32 = arith.constant 5.000000e-01 : f32
    %154 = vector.broadcast %cst_32 : f32 to vector<64x512xf32>
    %155 = arith.mulf %154, %153 : vector<64x512xf32>
    %cst_33 = arith.constant 0.707106769 : f32
    %156 = vector.broadcast %cst_33 : f32 to vector<64x512xf32>
    %157 = arith.mulf %153, %156 : vector<64x512xf32>
    %158 = math.absf %157 : vector<64x512xf32>
    %cst_34 = arith.constant 0.327591091 : f32
    %159 = vector.broadcast %cst_34 : f32 to vector<64x512xf32>
    %160 = arith.mulf %159, %158 : vector<64x512xf32>
    %cst_35 = arith.constant 1.000000e+00 : f32
    %161 = vector.broadcast %cst_35 : f32 to vector<64x512xf32>
    %162 = arith.addf %161, %160 : vector<64x512xf32>
    %cst_36 = arith.constant 1.000000e+00 : f32
    %163 = vector.broadcast %cst_36 : f32 to vector<64x512xf32>
    %164 = arith.divf %163, %162 : vector<64x512xf32>
    %cst_37 = arith.constant 1.06140542 : f32
    %165 = vector.broadcast %cst_37 : f32 to vector<64x512xf32>
    %166 = arith.mulf %165, %164 : vector<64x512xf32>
    %cst_38 = arith.constant -1.45315206 : f32
    %167 = vector.broadcast %cst_38 : f32 to vector<64x512xf32>
    %168 = arith.addf %166, %167 : vector<64x512xf32>
    %169 = arith.mulf %168, %164 : vector<64x512xf32>
    %cst_39 = arith.constant 1.42141378 : f32
    %170 = vector.broadcast %cst_39 : f32 to vector<64x512xf32>
    %171 = arith.addf %169, %170 : vector<64x512xf32>
    %172 = arith.mulf %171, %164 : vector<64x512xf32>
    %cst_40 = arith.constant -0.284496725 : f32
    %173 = vector.broadcast %cst_40 : f32 to vector<64x512xf32>
    %174 = arith.addf %172, %173 : vector<64x512xf32>
    %175 = arith.mulf %174, %164 : vector<64x512xf32>
    %cst_41 = arith.constant 0.254829586 : f32
    %176 = vector.broadcast %cst_41 : f32 to vector<64x512xf32>
    %177 = arith.addf %175, %176 : vector<64x512xf32>
    %178 = arith.mulf %177, %164 : vector<64x512xf32>
    %179 = arith.mulf %158, %158 : vector<64x512xf32>
    %cst_42 = arith.constant 0.000000e+00 : f32
    %180 = vector.broadcast %cst_42 : f32 to vector<64x512xf32>
    %181 = arith.subf %180, %179 : vector<64x512xf32>
    %182 = math.exp %181 : vector<64x512xf32>
    %183 = arith.mulf %178, %182 : vector<64x512xf32>
    %cst_43 = arith.constant 1.000000e+00 : f32
    %184 = vector.broadcast %cst_43 : f32 to vector<64x512xf32>
    %185 = arith.subf %184, %183 : vector<64x512xf32>
    %cst_44 = arith.constant 0.000000e+00 : f32
    %186 = vector.broadcast %cst_44 : f32 to vector<64x512xf32>
    %187 = arith.cmpf olt, %157, %186 : vector<64x512xf32>
    %cst_45 = arith.constant 0.000000e+00 : f32
    %188 = vector.broadcast %cst_45 : f32 to vector<64x512xf32>
    %189 = arith.subf %188, %185 : vector<64x512xf32>
    %190 = arith.select %187, %189, %185 : vector<64x512xi1>, vector<64x512xf32>
    %cst_46 = arith.constant 1.000000e+00 : f32
    %191 = vector.broadcast %cst_46 : f32 to vector<64x512xf32>
    %192 = arith.addf %191, %190 : vector<64x512xf32>
    %193 = arith.mulf %155, %192 : vector<64x512xf32>
    %c0_47 = arith.constant 0 : index
    %c0_48 = arith.constant 0 : index
    %194 = vector.load %arg6[%c0_47, %c0_48] : memref<8x64xf32, #tpu.memory_space<vmem>>, vector<8x64xf32>
    %c0_49 = arith.constant 0 : index
    %c0_50 = arith.constant 0 : index
    %195 = vector.load %arg7[%c0_49, %c0_50] : memref<8x1xf32, #tpu.memory_space<vmem>>, vector<8x1xf32>
    %cst_51 = arith.constant dense<0.000000e+00> : vector<8x512xf32>
    %196 = tpu.matmul %194, %193, %cst_51 {dimension_numbers = #tpu.dot_dimension_numbers<[1], [0], [0], [1], [0, 0, 1, 1], [], []>} : vector<8x64xf32>, vector<64x512xf32>, vector<8x512xf32> -> vector<8x512xf32>
    %197 = vector.broadcast %195 : vector<8x1xf32> to vector<8x512xf32>
    %198 = arith.addf %196, %197 : vector<8x512xf32>
    %c0_52 = arith.constant 0 : index
    %c0_53 = arith.constant 0 : index
    %199 = vector.load %arg8[%c0_52, %c0_53] : memref<8x512xf32, #tpu.memory_space<vmem>>, vector<8x512xf32>
    tpu.vector_store %arg8[%c0_52, %c0_53], %198 {strides = array<i32>} : memref<8x512xf32, #tpu.memory_space<vmem>>, vector<8x512xf32>,
    return
  }
  func.func @transform_0(%arg0: i32) -> (i32, i32) {
    %c0_i32 = arith.constant 0 : i32
    %c0_i32_0 = arith.constant 0 : i32
    return %c0_i32, %arg0 : i32, i32
  }
  func.func @transform_1(%arg0: i32) -> (i32, i32) {
    %c0_i32 = arith.constant 0 : i32
    %c0_i32_0 = arith.constant 0 : i32
    %c0_i32_1 = arith.constant 0 : i32
    return %c0_i32, %c0_i32_0 : i32, i32
  }
  func.func @transform_2(%arg0: i32) -> (i32, i32) {
    %c0_i32 = arith.constant 0 : i32
    %c0_i32_0 = arith.constant 0 : i32
    %c0_i32_1 = arith.constant 0 : i32
    return %c0_i32, %c0_i32_0 : i32, i32
  }
  func.func @transform_3(%arg0: i32) -> (i32, i32) {
    %c0_i32 = arith.constant 0 : i32
    %c0_i32_0 = arith.constant 0 : i32
    %c0_i32_1 = arith.constant 0 : i32
    return %c0_i32, %c0_i32_0 : i32, i32
  }
  func.func @transform_4(%arg0: i32) -> (i32, i32) {
    %c0_i32 = arith.constant 0 : i32
    %c0_i32_0 = arith.constant 0 : i32
    %c0_i32_1 = arith.constant 0 : i32
    return %c0_i32, %c0_i32_0 : i32, i32
  }
  func.func @transform_5(%arg0: i32) -> (i32, i32) {
    %c0_i32 = arith.constant 0 : i32
    %c0_i32_0 = arith.constant 0 : i32
    %c0_i32_1 = arith.constant 0 : i32
    return %c0_i32, %c0_i32_0 : i32, i32
  }
  func.func @transform_6(%arg0: i32) -> (i32, i32) {
    %c0_i32 = arith.constant 0 : i32
    %c0_i32_0 = arith.constant 0 : i32
    %c0_i32_1 = arith.constant 0 : i32
    return %c0_i32, %c0_i32_0 : i32, i32
  }
  func.func @transform_7(%arg0: i32) -> (i32, i32) {
    %c0_i32 = arith.constant 0 : i32
    %c0_i32_0 = arith.constant 0 : i32
    return %c0_i32, %arg0 : i32, i32
  }
}

</mosaic_0001>

<bundles_post_ra>
// kernel: tpu_custom_call.1
= control target key start
LH: loop header
LB: loop body
LE: loop exit
PB: predicated region body
PF: predicated region fallthrough
CT: control target
= control target key end

     0   :  { %v3673_v1 = vmov 1   ;;  %v3674_v2 = vmov 4   ;;  %s5871_s0 = inlined_call_operand.vmem [shape: f32[8,512], index: 0, kind: input, shape index: {}]   ;;  %s5872_s1 = inlined_call_operand.vmem [shape: f32[8,9], index: 1, kind: input, shape index: {}]   ;;  %s5873_s2 = inlined_call_operand.vmem [shape: f32[9,512], index: 2, kind: input, shape index: {}]   ;;  %s5874_s3 = inlined_call_operand.vmem [shape: f32[192,16], index: 3, kind: input, shape index: {}]   ;;  %s5875_s4 = inlined_call_operand.vmem [shape: f32[64,64], index: 4, kind: input, shape index: {}]   ;;  %s5876_s5 = inlined_call_operand.vmem [shape: f32[8,64], index: 5, kind: input, shape index: {}]   ;;  %s5877_s6 = inlined_call_operand.vmem [shape: f32[8,1], index: 6, kind: input, shape index: {}]   ;;  %s5878_s7 = inlined_call_operand.hbm [shape: f32[8,512], index: 7, kind: output, shape index: {}]  }
   0x1   :  { %v31_v0 = vld [vmem:[%s5872_s1] sm:$0xff]  ;;  %3321 = vset.pattern.permute.xlu1 %v3673_v1  ;;  %3320 = vset.pattern.permute.xlu0 %v3674_v2 }
   0x2   :  { %135 = vperm.xlu1 %3321, %v31_v0   ;;  %34 = vperm.xlu0 %3320, %v31_v0   ;;  %v3738_v3 = vld [vmem:[%s5871_s0] sm:$0xff] }
   0x3   :  { %5941 = vst [vmem:[#allocation5_spill] sm:$0xff] %v3738_v3 }
   0x4   :  { %12 = vsyncpa [#allocation3], 0  ;;  %v3675_v4 = vmov 2   ;;  %s3676_s28 = smov 17   ;;  %v3745_v5 = vld [vmem:[%s5871_s0 + $0x8] sm:$0xff]  ;;  %v3677_v6 = vmov 3   ;;  %v49_v31 = vlaneseq }
   0x5   :  { %v3678_v7 = vmov 0   ;;  %v3752_v8 = vld [vmem:[%s5871_s0 + $0x18] sm:$0xff]  ;;  %s3679_s9 = smov 16   ;;  %s3680_s10 = smov 15   ;;  %v3681_v9 = vmov 5   ;;  %v3683_v10 = vmov 6  }
   0x6   :  { %3322 = vset.pattern.permute.xlu0 %v3675_v4  ;;  %41 = vrot.lane.b32.xlu1 %v3738_v3, %s3676_s28  ;;  %s3682_s11 = smov 1   ;;  %v3777_v11 = vld [vmem:[%s5871_s0 + $0x10] sm:$0xff]  ;;  %s3684_s14 = smov 127   ;;  %v3685_v12 = vmov 7   ;;  %v3687_v13 = vmov 8   ;;  %v5879_v14 = vmov 0.0  }
   0x7   :  { %187 = vperm.xlu0 %3322, %v31_v0   ;;  %3324 = vset.pattern.permute.xlu1 %v3677_v6  ;;  %s3686_s15 = smov 113   ;;  %s3688_s0 = smov 112   ;;  %v3833_v34 = vshrl.u32 %v49_v31, 7  ;;  %v3837_v36 = vand.u32 127, %v49_v31  ;;  %vm482_vm8 = vcmask 130048   ;;  %vm1582_vm9 = vcmask 523264  }
   0x8   :  { %s3689_s16 = smov 111   ;;  %619 = vmatprep.mubr.f32.mxu0 %v5879_v14  ;;  %828 = vmatprep.mubr.f32.mxu1 %v5879_v14  ;;  %v3850_v40 = vld [vmem:[%s5873_s2] ss:$8 sm:$0xf] }
   0x9   :  { %v3840_v37 = vsub.s32 0, %v3833_v34  ;;  %v3845_v39 = vsub.s32 1, %v3833_v34  ;;  %v3857_v42 = vld [vmem:[%s5873_s2 + $0x1] ss:$8 sm:$0xf]  ;;  %vm51_vm0 = vcmp.lt.s32.totalorder %v3837_v36, 17 }
   0xa   :  { %43 = vrot.lane.b32.xlu1 %v3745_v5, %s3676_s28  ;;  %v3862_v43 = vld [vmem:[%s5873_s2 + $0x2] ss:$8 sm:$0xf]  ;;  %v3870_v45 = vld [vmem:[%s5873_s2 + $0x3] ss:$8 sm:$0xf] }
   0xb   :  { %3323 = vset.pattern.permute.xlu0 %v3678_v7  ;;  %v61_v44 = vrot.slane %v3850_v40, %v3840_v37  ;;  %v65_v47 = vrot.slane %v3850_v40, %v3845_v39  ;;  %vm102_vm1 = vcmp.lt.s32.totalorder %v3837_v36, 16  ;;  %v117_v49 = vrot.slane %v3857_v42, %v3845_v39  ;;  %v3890_v52 = vld [vmem:[%s5873_s2 + $0x5] ss:$8 sm:$0xf] }
   0xc   :  { %83 = vperm.xlu0 %3323, %v31_v0   ;;  %v113_v50 = vrot.slane %v3857_v42, %v3840_v37  ;;  %vm154_vm2 = vcmp.lt.s32.totalorder %v3837_v36, 15  ;;  %v169_v51 = vrot.slane %v3862_v43, %v3845_v39  ;;  %v165_v55 = vrot.slane %v3862_v43, %v3840_v37  ;;  %v3905_v57 = vld [vmem:[%s5873_s2 + $0x6] ss:$8 sm:$0xf] }
   0xd   :  { %vm206_vm3 = vcmp.lt.s32.totalorder %v3837_v36, 1  ;;  %v221_v56 = vrot.slane %v3870_v45, %v3845_v39  ;;  %v217_v60 = vrot.slane %v3870_v45, %v3840_v37  ;;  %vm258_vm4 = vcmp.lt.s32.totalorder %v3837_v36, 127  ;;  %v3918_v62 = vld [vmem:[%s5873_s2 + $0x7] ss:$8 sm:$0xf] }
   0xe   :  { %47 = vrot.lane.b32.xlu1 %v3752_v8, %s3676_s28  ;;  %5944 = vst [vmem:[#allocation8_spill] sm:$0xff] %v3918_v62  ;;  %v269_v1 = vrot.slane %v3890_v52, %v3840_v37  ;;  %vm310_vm5 = vcmp.lt.s32.totalorder %v3837_v36, 113  ;;  %v325_v6 = vrot.slane %v3905_v57, %v3845_v39  ;;  %vm362_vm6 = vcmp.lt.s32.totalorder %v3837_v36, 112 }
   0xf   :  { %vm414_vm7 = vcmp.lt.s32.totalorder %v3837_v36, 111 }
  0x10   :  { %96 = vrot.lane.b32.xlu0 %v3745_v5, %s3679_s9 }
  0x12   :  { %94 = vrot.lane.b32.xlu1 %v3738_v3, %s3679_s9 }
  0x14   :  { %100 = vrot.lane.b32.xlu0 %v3752_v8, %s3679_s9 }
  0x16   :  { %239 = vperm.xlu1 %3324, %v31_v0  }
  0x18   :  { %148 = vrot.lane.b32.xlu0 %v3745_v5, %s3680_s10 }
  0x1a   :  { %146 = vrot.lane.b32.xlu1 %v3738_v3, %s3680_s10 }
  0x1b   :  { %3325 = vset.pattern.permute.xlu1 %v3681_v9  ;;  %v321_v9 = vrot.slane %v3905_v57, %v3840_v37 }
  0x1c   :  { %152 = vrot.lane.b32.xlu0 %v3752_v8, %s3680_s10 }
  0x1e   :  { %291 = vperm.xlu1 %3325, %v31_v0  }
  0x20   :  { %200 = vrot.lane.b32.xlu0 %v3745_v5, %s3682_s11 }
  0x22   :  { %198 = vrot.lane.b32.xlu1 %v3738_v3, %s3682_s11 }
  0x23   :  { %3326 = vset.pattern.permute.xlu1 %v3683_v10  ;;  %v3938_v10 = vld [vmem:[%s5873_s2 + $0x20] ss:$8 sm:$0xf] }
  0x24   :  { %204 = vrot.lane.b32.xlu0 %v3752_v8, %s3682_s11 }
  0x26   :  { %343 = vperm.xlu1 %3326, %v31_v0  }
  0x28   :  { %254 = vrot.lane.b32.xlu0 %v3777_v11, %s3684_s14 }
  0x2a   :  { %252 = vrot.lane.b32.xlu1 %v3745_v5, %s3684_s14 }
  0x2b   :  { %3327 = vset.pattern.permute.xlu1 %v3685_v12 }
  0x2c   :  { %250 = vrot.lane.b32.xlu0 %v3738_v3, %s3684_s14 }
  0x2e   :  { %395 = vperm.xlu1 %3327, %v31_v0  }
  0x30   :  { %306 = vrot.lane.b32.xlu0 %v3777_v11, %s3686_s15 }
  0x32   :  { %304 = vrot.lane.b32.xlu1 %v3745_v5, %s3686_s15 }
  0x33   :  { %3328 = vset.pattern.permute.xlu1 %v3687_v13 }
  0x34   :  { %302 = vrot.lane.b32.xlu0 %v3738_v3, %s3686_s15 }
  0x36   :  { %447 = vperm.xlu1 %3328, %v31_v0   ;;  %v273_v0 = vrot.slane %v3890_v52, %v3845_v39 }
  0x38   :  { %358 = vrot.lane.b32.xlu0 %v3777_v11, %s3688_s0 }
  0x3a   :  { %356 = vrot.lane.b32.xlu1 %v3745_v5, %s3688_s0 }
  0x3c   :  { %408 = vrot.lane.b32.xlu0 %v3745_v5, %s3689_s16 }
  0x3e   :  { %354 = vrot.lane.b32.xlu1 %v3738_v3, %s3688_s0 }
  0x40   :  { %406 = vrot.lane.b32.xlu0 %v3738_v3, %s3689_s16 }
  0x42   :  { %410 = vrot.lane.b32.xlu1 %v3777_v11, %s3689_s16 }
  0x44   :  { %98 = vrot.lane.b32.xlu0 %v3777_v11, %s3679_s9 }
  0x46   :  { %45 = vrot.lane.b32.xlu1 %v3777_v11, %s3676_s28 }
  0x48   :  { %202 = vrot.lane.b32.xlu0 %v3777_v11, %s3682_s11 }
  0x4a   :  { %150 = vrot.lane.b32.xlu1 %v3777_v11, %s3680_s10 }
  0x4c   :  { %308 = vrot.lane.b32.xlu0 %v3752_v8, %s3686_s15 }
  0x4e   :  { %256 = vrot.lane.b32.xlu1 %v3752_v8, %s3684_s14 }
  0x50   :  { %412 = vrot.lane.b32.xlu0 %v3752_v8, %s3689_s16 }
  0x52   :  { %360 = vrot.lane.b32.xlu1 %v3752_v8, %s3688_s0 }
  0x81   :  { %v3805_v15 = vpop.permute.xlu1 %135  ;;  %v3807_v16 = vpop.permute.xlu0 %34 }
  0x85   :  { %v42_v17 = vpop.permute.xlu1 %41 }
  0x86   :  { %v3809_v18 = vpop.permute.xlu0 %187 }
  0x89   :  { %v3811_v19 = vpop.permute.xlu1 %43 }
  0x8a   :  { %v54_v58 = vsel %vm51_vm0, %v42_v17, %v3811_v19 }
  0x8b   :  { %v3813_v20 = vpop.permute.xlu0 %83  ;;  %v79_v12 = vmul.f32 %v65_v47, %v54_v58  ;;  %v373_v47 = vrot.slane %v3918_v62, %v3840_v37  ;;  %v425_v58 = vrot.slane %v3938_v10, %v3840_v37 }
  0x8d   :  { %v3815_v21 = vpop.permute.xlu1 %47  ;;  %v87_v14 = vmul.f32 %v3813_v20, %v79_v12 }
  0x8e   :  { %v55_v48 = vsel %vm51_vm0, %v3815_v21, %v42_v17  ;;  %v377_v17 = vrot.slane %v3918_v62, %v3845_v39  ;;  %v3977_v62 = vsub.s32 3, %v3833_v34 }
  0x8f   :  { %v3817_v22 = vpop.permute.xlu0 %96  ;;  %v78_v59 = vmul.f32 %v61_v44, %v55_v48 }
  0x91   :  { %v95_v23 = vpop.permute.xlu1 %94 }
  0x92   :  { %v105_v2 = vsel %vm102_vm1, %v95_v23, %v3817_v22 }
  0x93   :  { %v3819_v24 = vpop.permute.xlu0 %100 }
  0x94   :  { %v106_v54 = vsel %vm102_vm1, %v3819_v24, %v95_v23  ;;  %v86_v23 = vmul.f32 %v3813_v20, %v78_v59  ;;  %v3961_v59 = vsub.s32 2, %v3833_v34  ;;  %v429_v34 = vrot.slane %v3938_v10, %v3845_v39 }
  0x95   :  { %v3821_v25 = vpop.permute.xlu1 %239  ;;  %v130_v4 = vmul.f32 %v113_v50, %v106_v54  ;;  %v131_v50 = vmul.f32 %v117_v49, %v105_v2 }
  0x97   :  { %v3823_v26 = vpop.permute.xlu0 %148  ;;  %v139_v12 = vmul.f32 %v3805_v15, %v131_v50  ;;  %v121_v50 = vrot.slane %v3857_v42, %v3961_v59 }
  0x99   :  { %v147_v27 = vpop.permute.xlu1 %146 }
  0x9a   :  { %v157_v31 = vsel %vm154_vm2, %v147_v27, %v3823_v26 }
  0x9b   :  { %v3825_v28 = vpop.permute.xlu0 %152  ;;  %v183_v37 = vmul.f32 %v169_v51, %v157_v31  ;;  %v38_v51 = vmul.f32 %v3807_v16, %v3745_v5 }
  0x9c   :  { %v158_v63 = vsel %vm154_vm2, %v3825_v28, %v147_v27  ;;  %v37_v27 = vmul.f32 %v3807_v16, %v3738_v3 }
  0x9d   :  { %v3827_v29 = vpop.permute.xlu1 %291  ;;  %v182_v44 = vmul.f32 %v165_v55, %v158_v63  ;;  %v138_v55 = vmul.f32 %v3805_v15, %v130_v4 }
  0x9e   :  { %v90_v4 = vadd.f32 %v86_v23, %v37_v27 }
  0x9f   :  { %v3829_v30 = vpop.permute.xlu0 %200  ;;  %v190_v3 = vmul.f32 %v3809_v18, %v182_v44 }
  0xa0   :  { %v142_v23 = vadd.f32 %v138_v55, %v90_v4  ;;  %v73_v4 = vrot.slane %v3850_v40, %v3977_v62 }
  0xa1   :  { %v199_v32 = vpop.permute.xlu1 %198 }
  0xa2   :  { %v209_v49 = vsel %vm206_vm3, %v199_v32, %v3829_v30 }
  0xa3   :  { %v3831_v33 = vpop.permute.xlu0 %204  ;;  %v235_v31 = vmul.f32 %v221_v56, %v209_v49  ;;  %v194_v56 = vadd.f32 %v190_v3, %v142_v23 }
  0xa4   :  { %v210_v13 = vsel %vm206_vm3, %v3831_v33, %v199_v32 }
  0xa5   :  { %v3835_v35 = vpop.permute.xlu1 %343  ;;  %v234_v63 = vmul.f32 %v217_v60, %v210_v13 }
  0xa7   :  { %v3842_v38 = vpop.permute.xlu0 %254  ;;  %v242_v44 = vmul.f32 %v3821_v25, %v234_v63 }
  0xa8   :  { %5942 = vst [vmem:[#allocation6_spill] sm:$0xff] %v3842_v38 }
  0xa9   :  { %v3852_v41 = vpop.permute.xlu1 %252  ;;  %v246_v63 = vadd.f32 %v242_v44, %v194_v56  ;;  %v229_v44 = vrot.slane %v3870_v45, %v3977_v62 }
  0xaa   :  { %v260_v32 = vsel %vm258_vm4, %v3852_v41, %v3842_v38  ;;  %v191_v38 = vmul.f32 %v3809_v18, %v183_v37 }
  0xab   :  { %v3872_v46 = vpop.permute.xlu0 %250 }
  0xac   :  { %5943 = vst [vmem:[#allocation7_spill] sm:$0xff] %v3872_v46  ;;  %v261_v54 = vsel %vm258_vm4, %v3872_v46, %v3852_v41 }
  0xad   :  { %v3892_v53 = vpop.permute.xlu1 %395  ;;  %v286_v60 = vmul.f32 %v269_v1, %v261_v54  ;;  %v91_v54 = vadd.f32 %v87_v14, %v38_v51  ;;  %v243_v14 = vmul.f32 %v3821_v25, %v235_v31 }
  0xaf   :  { %v3913_v61 = vpop.permute.xlu0 %306  ;;  %v294_v49 = vmul.f32 %v3827_v29, %v286_v60 }
  0xb1   :  { %v305_v7 = vpop.permute.xlu1 %304 }
  0xb2   :  { %v312_v27 = vsel %vm310_vm5, %v305_v7, %v3913_v61 }
  0xb3   :  { %v3950_v48 = vpop.permute.xlu0 %302 }
  0xb4   :  { %5945 = vst [vmem:[#allocation9_spill] sm:$0xff] %v3950_v48  ;;  %v313_v46 = vsel %vm310_vm5, %v3950_v48, %v305_v7  ;;  %v287_v48 = vmul.f32 %v273_v0, %v260_v32  ;;  %v125_v7 = vrot.slane %v3857_v42, %v3977_v62  ;;  %v69_v0 = vrot.slane %v3850_v40, %v3961_v59 }
  0xb5   :  { %v3969_v2 = vpop.permute.xlu1 %447  ;;  %v338_v41 = vmul.f32 %v321_v9, %v313_v46  ;;  %v143_v46 = vadd.f32 %v139_v12, %v91_v54  ;;  %v339_v9 = vmul.f32 %v325_v6, %v312_v27  ;;  %v225_v32 = vrot.slane %v3870_v45, %v3961_v59 }
  0xb6   :  { %v295_v42 = vmul.f32 %v3827_v29, %v287_v48  ;;  %v298_v12 = vadd.f32 %v294_v49, %v246_v63  ;;  %v173_v40 = vrot.slane %v3862_v43, %v3961_v59  ;;  %v177_v48 = vrot.slane %v3862_v43, %v3977_v62 }
  0xb7   :  { %v3984_v13 = vpop.permute.xlu0 %358  ;;  %v346_v3 = vmul.f32 %v3835_v35, %v338_v41  ;;  %v195_v60 = vadd.f32 %v191_v38, %v143_v46  ;;  %v347_v38 = vmul.f32 %v3835_v35, %v339_v9  ;;  %v329_v45 = vrot.slane %v3905_v57, %v3961_v59 }
  0xb8   :  { %v333_v46 = vrot.slane %v3905_v57, %v3977_v62  ;;  %v277_v63 = vrot.slane %v3890_v52, %v3961_v59 }
  0xb9   :  { %v357_v1 = vpop.permute.xlu1 %356  ;;  %v247_v27 = vadd.f32 %v243_v14, %v195_v60  ;;  %v350_v41 = vadd.f32 %v346_v3, %v298_v12 }
  0xba   :  { %v364_v39 = vsel %vm362_vm6, %v357_v1, %v3984_v13 }
  0xbb   :  { %v409_v55 = vpop.permute.xlu0 %408  ;;  %v391_v51 = vmul.f32 %v377_v17, %v364_v39  ;;  %v299_v56 = vadd.f32 %v295_v42, %v247_v27  ;;  %v281_v42 = vrot.slane %v3890_v52, %v3977_v62  ;;  %v39_v52 = vmul.f32 %v3807_v16, %v3777_v11 }
  0xbd   :  { %v4008_v37 = vpop.permute.xlu1 %354  ;;  %v399_v49 = vmul.f32 %v3892_v53, %v391_v51 }
  0xbe   :  { %v365_v6 = vsel %vm362_vm6, %v4008_v37, %v357_v1 }
  0xbf   :  { %v390_v31 = vmul.f32 %v373_v47, %v365_v6  ;;  %v4018_v23 = vpop.permute.xlu0 %406 }
  0xc0   :  { %v417_v17 = vsel %vm414_vm7, %v4018_v23, %v409_v55 }
  0xc1   :  { %v398_v47 = vmul.f32 %v3892_v53, %v390_v31  ;;  %v442_v1 = vmul.f32 %v425_v58, %v417_v17  ;;  %v4031_v54 = vpop.permute.xlu1 %410  ;;  %v433_v31 = vrot.slane %v3938_v10, %v3961_v59 }
  0xc2   :  { %v416_v39 = vsel %vm414_vm7, %v409_v55, %v4031_v54  ;;  %v351_v55 = vadd.f32 %v347_v38, %v299_v56 }
  0xc3   :  { %v450_v43 = vmul.f32 %v3969_v2, %v442_v1  ;;  %v443_v14 = vmul.f32 %v429_v34, %v416_v39  ;;  %v99_v9 = vpop.permute.xlu0 %98  ;;  %v402_v58 = vadd.f32 %v398_v47, %v350_v41  ;;  %v437_v41 = vrot.slane %v3938_v10, %v3977_v62 }
  0xc4   :  { %v103_v3 = vsel %vm102_vm1, %v99_v9, %v3819_v24  ;;  %v104_v60 = vsel %vm102_vm1, %v3817_v22, %v99_v9  ;;  %v403_v27 = vadd.f32 %v399_v49, %v351_v55  ;;  %v40_v47 = vmul.f32 %v3807_v16, %v3752_v8 }
  0xc5   :  { %v132_v51 = vmul.f32 %v121_v50, %v104_v60  ;;  %v133_v6 = vmul.f32 %v125_v7, %v103_v3  ;;  %v46_v34 = vpop.permute.xlu1 %45  ;;  %v451_v12 = vmul.f32 %v3969_v2, %v443_v14  ;;  %v454_v38 = vadd.f32 %v450_v43, %v402_v58  ;;  %v5946_v43 = vld [vmem:[#allocation5_spill] sm:$0xff] }
  0xc6   :  { %v52_v24 = vsel %vm51_vm0, %v46_v34, %v3815_v21  ;;  %v53_v22 = vsel %vm51_vm0, %v3811_v19, %v46_v34 }
  0xc7   :  { %v80_v50 = vmul.f32 %v69_v0, %v53_v22  ;;  %v81_v7 = vmul.f32 %v73_v4, %v52_v24  ;;  %v203_v17 = vpop.permute.xlu0 %202  ;;  %v455_v1 = vadd.f32 %v451_v12, %v403_v27  ;;  %v140_v56 = vmul.f32 %v3805_v15, %v132_v51  ;;  %v5949_v24 = vld [vmem:[#allocation6_spill] sm:$0xff]  ;;  %v5950_v27 = vld [vmem:[#allocation7_spill] sm:$0xff] }
  0xc8   :  { %v207_v21 = vsel %vm206_vm3, %v203_v17, %v3831_v33  ;;  %v208_v19 = vsel %vm206_vm3, %v3829_v30, %v203_v17  ;;  %v141_v0 = vmul.f32 %v3805_v15, %v133_v6  ;;  %v3199_v14 = vpack.c.bf16 %v454_v38, %v5946_v43 }
  0xc9   :  { %v88_v4 = vmul.f32 %v3813_v20, %v80_v50  ;;  %v89_v49 = vmul.f32 %v3813_v20, %v81_v7  ;;  %v151_v39 = vpop.permute.xlu1 %150  ;;  %v3197_v30 = vpack.c.bf16 %v455_v1, %v3745_v5  ;;  %v236_v15 = vmul.f32 %v225_v32, %v208_v19  ;;  %v458_v32 = vld [vmem:[%s5874_s3] sm:$0xff] }
  0xca   :  { %v155_v16 = vsel %vm154_vm2, %v151_v39, %v3825_v28  ;;  %v156_v33 = vsel %vm154_vm2, %v3823_v26, %v151_v39  ;;  %v237_v3 = vmul.f32 %v229_v44, %v207_v21  ;;  %v5947_v28 = vld [vmem:[#allocation9_spill] sm:$0xff]  ;;  %v5948_v44 = vld [vmem:[#allocation8_spill] sm:$0xff] }
  0xcb   :  { %v92_v9 = vadd.f32 %v88_v4, %v39_v52  ;;  %v93_v58 = vadd.f32 %v89_v49, %v40_v47  ;;  %v309_v60 = vpop.permute.xlu0 %308  ;;  %v184_v55 = vmul.f32 %v173_v40, %v156_v33  ;;  %v185_v20 = vmul.f32 %v177_v48, %v155_v16  ;;  %3198 = vmatprep.subr.bf16.mxu0 %v3197_v30 }
  0xcc   :  { %v311_v51 = vsel %vm310_vm5, %v3913_v61, %v309_v60  ;;  %v314_v6 = vsel %vm310_vm5, %v309_v60, %v5947_v28  ;;  %3200 = vmatpush1.bf16.msra.mxu0 %v3199_v14  ;;  %v381_v40 = vrot.slane %v5948_v44, %v3961_v59  ;;  %v385_v48 = vrot.slane %v5948_v44, %v3977_v62  ;;  %v463_v60 = vld [vmem:[%s5874_s3 + $0x28] sm:$0xff]  ;;  %v469_v28 = vld [vmem:[%s5874_s3 + $0x58] sm:$0xff] }
  0xcd   :  { %v144_v26 = vadd.f32 %v140_v56, %v92_v9  ;;  %v145_v5 = vadd.f32 %v141_v0, %v93_v58  ;;  %v257_v34 = vpop.permute.xlu1 %256  ;;  %v192_v61 = vmul.f32 %v3809_v18, %v184_v55  ;;  %v193_v12 = vmul.f32 %v3809_v18, %v185_v20  ;;  %v466_v55 = vld [vmem:[%s5874_s3 + $0x40] sm:$0xff]  ;;  %v467_v20 = vld [vmem:[%s5874_s3 + $0x48] sm:$0xff] }
  0xce   :  { %v259_v22 = vsel %vm258_vm4, %v5949_v24, %v257_v34  ;;  %v262_v38 = vsel %vm258_vm4, %v257_v34, %v5950_v27  ;;  %v340_v52 = vmul.f32 %v329_v45, %v311_v51  ;;  %v341_v50 = vmul.f32 %v333_v46, %v314_v6  ;;  %v468_v51 = vld [vmem:[%s5874_s3 + $0x50] sm:$0xff]  ;;  %v470_v6 = vld [vmem:[%s5874_s3 + $0x60] sm:$0xff]  ;;  %v473_v34 = vld [vmem:[%s5874_s3 + $0x78] sm:$0xff] }
  0xcf   :  { %v288_v7 = vmul.f32 %v277_v63, %v259_v22  ;;  %v289_v17 = vmul.f32 %v281_v42, %v262_v38  ;;  %v413_v47 = vpop.permute.xlu0 %412  ;;  %v244_v21 = vmul.f32 %v3821_v25, %v236_v15  ;;  %v245_v18 = vmul.f32 %v3821_v25, %v237_v3  ;;  %3131 = vmatmul.mubr.msk.f32.vlgmr.msra.gmra.mrb[0].mxu0 %vm482_vm8, %v458_v32  ;;  %v459_v25 = vld [vmem:[%s5874_s3 + $0x8] sm:$0xff] }
  0xd0   :  { %v196_v19 = vadd.f32 %v192_v61, %v144_v26  ;;  %v197_v1 = vadd.f32 %v193_v12, %v145_v5  ;;  %v415_v57 = vsel %vm414_vm7, %v4031_v54, %v413_v47  ;;  %v418_v45 = vsel %vm414_vm7, %v413_v47, %v4018_v23  ;;  %v471_v26 = vld [vmem:[%s5874_s3 + $0x68] sm:$0xff]  ;;  %v472_v5 = vld [vmem:[%s5874_s3 + $0x70] sm:$0xff] }
  0xd1   :  { %v296_v56 = vmul.f32 %v3827_v29, %v288_v7  ;;  %v297_v0 = vmul.f32 %v3827_v29, %v289_v17  ;;  %v361_v46 = vpop.permute.xlu1 %360  ;;  %v5951_v63 = vmov 0.0   ;;  %v348_v49 = vmul.f32 %v3835_v35, %v340_v52 }
  0xd2   :  { %625 = vmatprep.mubr.f32.mxu0 %v5951_v63  ;;  %v248_v42 = vadd.f32 %v244_v21, %v196_v19  ;;  %v249_v4 = vadd.f32 %v245_v18, %v197_v1  ;;  %v363_v29 = vsel %vm362_vm6, %v3984_v13, %v361_v46  ;;  %v366_v54 = vsel %vm362_vm6, %v361_v46, %v4008_v37 }
  0xd3   :  { %v349_v23 = vmul.f32 %v3835_v35, %v341_v50  ;;  %v392_v39 = vmul.f32 %v381_v40, %v363_v29  ;;  %v393_v16 = vmul.f32 %v385_v48, %v366_v54  ;;  %v444_v43 = vmul.f32 %v433_v31, %v415_v57  ;;  %3132 = vmatmul.mubr.msk.f32.gmra.mrb[2].mxu0 %vm482_vm8, %v459_v25  ;;  %v460_v35 = vld [vmem:[%s5874_s3 + $0x10] sm:$0xff] }
  0xd4   :  { %v300_v33 = vadd.f32 %v296_v56, %v248_v42  ;;  %v301_v30 = vadd.f32 %v297_v0, %v249_v4  ;;  %v445_v13 = vmul.f32 %v437_v41, %v418_v45  ;;  %631 = vmatprep.mubr.f32.mxu0 %v5951_v63 }
  0xd5   :  { %v400_v36 = vmul.f32 %v3892_v53, %v392_v39  ;;  %v401_v37 = vmul.f32 %v3892_v53, %v393_v16  ;;  %v452_v59 = vmul.f32 %v3969_v2, %v444_v43  ;;  %v461_v53 = vld [vmem:[%s5874_s3 + $0x18] sm:$0xff] }
  0xd6   :  { %v353_v14 = vadd.f32 %v349_v23, %v301_v30  ;;  %v352_v9 = vadd.f32 %v348_v49, %v300_v33  ;;  %v453_v10 = vmul.f32 %v3969_v2, %v445_v13  ;;  %v462_v2 = vld [vmem:[%s5874_s3 + $0x20] sm:$0xff] }
  0xd7   :  { %3133 = vmatmul.mubr.msk.f32.gmra.mrb[4].mxu0 %vm482_vm8, %v460_v35 }
  0xd8   :  { %v405_v62 = vadd.f32 %v401_v37, %v353_v14  ;;  %v404_v31 = vadd.f32 %v400_v36, %v352_v9  ;;  %637 = vmatprep.mubr.f32.mxu0 %v5951_v63 }
  0xda   :  { %v457_v41 = vadd.f32 %v453_v10, %v405_v62  ;;  %v456_v58 = vadd.f32 %v452_v59, %v404_v31 }
  0xdb   :  { %3134 = vmatmul.mubr.msk.f32.gmra.mrb[6].mxu0 %vm482_vm8, %v461_v53 }
  0xdc   :  { %v3201_v15 = vpack.c.bf16 %v457_v41, %v3752_v8  ;;  %v3203_v3 = vpack.c.bf16 %v456_v58, %v3777_v11  ;;  %643 = vmatprep.mubr.f32.mxu0 %v5951_v63  ;;  %v464_v8 = vld [vmem:[%s5874_s3 + $0x30] sm:$0xff]  ;;  %v465_v11 = vld [vmem:[%s5874_s3 + $0x38] sm:$0xff] }
  0xde   :  { %3202 = vmatprep.subr.bf16.mxu1 %v3201_v15 }
  0xdf   :  { %3204 = vmatpush1.bf16.msra.mxu1 %v3203_v3  ;;  %3135 = vmatmul.mubr.msk.f32.gmra.mrb[8].mxu0 %vm482_vm8, %v462_v2 }
  0xe0   :  { %649 = vmatprep.mubr.f32.mxu0 %v5951_v63 }
  0xe2   :  { %3155 = vmatmul.mubr.msk.f32.vlgmr.msra.gmra.mrb[0].mxu1 %vm482_vm8, %v458_v32  ;;  %v474_v32 = vld [vmem:[%s5874_s3 + $0x80] sm:$0xff] }
  0xe3   :  { %834 = vmatprep.mubr.f32.mxu1 %v5951_v63  ;;  %3136 = vmatmul.mubr.msk.f32.gmra.mrb[10].mxu0 %vm482_vm8, %v463_v60 }
  0xe4   :  { %655 = vmatprep.mubr.f32.mxu0 %v5951_v63 }
  0xe6   :  { %3156 = vmatmul.mubr.msk.f32.gmra.mrb[2].mxu1 %vm482_vm8, %v459_v25 }
  0xe7   :  { %840 = vmatprep.mubr.f32.mxu1 %v5951_v63  ;;  %3137 = vmatmul.mubr.msk.f32.gmra.mrb[12].mxu0 %vm482_vm8, %v464_v8 }
  0xe8   :  { %661 = vmatprep.mubr.f32.mxu0 %v5951_v63 }
  0xea   :  { %3157 = vmatmul.mubr.msk.f32.gmra.mrb[4].mxu1 %vm482_vm8, %v460_v35 }
  0xeb   :  { %846 = vmatprep.mubr.f32.mxu1 %v5951_v63  ;;  %3138 = vmatmul.mubr.msk.f32.gmra.mrb[14].mxu0 %vm482_vm8, %v465_v11 }
  0xec   :  { %667 = vmatprep.mubr.f32.mxu0 %v5951_v63 }
  0xee   :  { %3158 = vmatmul.mubr.msk.f32.gmra.mrb[6].mxu1 %vm482_vm8, %v461_v53 }
  0xef   :  { %852 = vmatprep.mubr.f32.mxu1 %v5951_v63  ;;  %3139 = vmatmul.mubr.msk.f32.gmra.mrb[16].mxu0 %vm482_vm8, %v466_v55 }
  0xf0   :  { %673 = vmatprep.mubr.f32.mxu0 %v5951_v63 }
  0xf2   :  { %3159 = vmatmul.mubr.msk.f32.gmra.mrb[8].mxu1 %vm482_vm8, %v462_v2 }
  0xf3   :  { %858 = vmatprep.mubr.f32.mxu1 %v5951_v63  ;;  %3140 = vmatmul.mubr.msk.f32.gmra.mrb[18].mxu0 %vm482_vm8, %v467_v20 }
  0xf4   :  { %679 = vmatprep.mubr.f32.mxu0 %v5951_v63 }
  0xf6   :  { %3160 = vmatmul.mubr.msk.f32.gmra.mrb[10].mxu1 %vm482_vm8, %v463_v60 }
  0xf7   :  { %864 = vmatprep.mubr.f32.mxu1 %v5951_v63  ;;  %3141 = vmatmul.mubr.msk.f32.gmra.mrb[20].mxu0 %vm482_vm8, %v468_v51 }
  0xf8   :  { %685 = vmatprep.mubr.f32.mxu0 %v5951_v63 }
  0xfa   :  { %3161 = vmatmul.mubr.msk.f32.gmra.mrb[12].mxu1 %vm482_vm8, %v464_v8 }
  0xfb   :  { %870 = vmatprep.mubr.f32.mxu1 %v5951_v63  ;;  %3142 = vmatmul.mubr.msk.f32.gmra.mrb[22].mxu0 %vm482_vm8, %v469_v28 }
  0xfc   :  { %691 = vmatprep.mubr.f32.mxu0 %v5951_v63 }
  0xfe   :  { %3162 = vmatmul.mubr.msk.f32.gmra.mrb[14].mxu1 %vm482_vm8, %v465_v11 }
  0xff   :  { %876 = vmatprep.mubr.f32.mxu1 %v5951_v63  ;;  %3143 = vmatmul.mubr.msk.f32.gmra.mrb[24].mxu0 %vm482_vm8, %v470_v6 }
 0x100   :  { %697 = vmatprep.mubr.f32.mxu0 %v5951_v63 }
 0x102   :  { %3163 = vmatmul.mubr.msk.f32.gmra.mrb[16].mxu1 %vm482_vm8, %v466_v55 }
 0x103   :  { %882 = vmatprep.mubr.f32.mxu1 %v5951_v63  ;;  %3144 = vmatmul.mubr.msk.f32.gmra.mrb[26].mxu0 %vm482_vm8, %v471_v26 }
 0x104   :  { %703 = vmatprep.mubr.f32.mxu0 %v5951_v63 }
 0x106   :  { %3164 = vmatmul.mubr.msk.f32.gmra.mrb[18].mxu1 %vm482_vm8, %v467_v20 }
 0x107   :  { %888 = vmatprep.mubr.f32.mxu1 %v5951_v63  ;;  %3145 = vmatmul.mubr.msk.f32.gmra.mrb[28].mxu0 %vm482_vm8, %v472_v5 }
 0x108   :  { %709 = vmatprep.mubr.f32.mxu0 %v5951_v63 }
 0x10a   :  { %3165 = vmatmul.mubr.msk.f32.gmra.mrb[20].mxu1 %vm482_vm8, %v468_v51 }
 0x10b   :  { %894 = vmatprep.mubr.f32.mxu1 %v5951_v63  ;;  %3146 = vmatmul.mubr.msk.f32.gmra.mrb[30].mxu0 %vm482_vm8, %v473_v34 }
 0x10c   :  { %715 = vmatprep.mubr.f32.mxu0 %v5951_v63 }
 0x10e   :  { %3166 = vmatmul.mubr.msk.f32.gmra.mrb[22].mxu1 %vm482_vm8, %v469_v28 }
 0x10f   :  { %900 = vmatprep.mubr.f32.mxu1 %v5951_v63  ;;  %3147 = vmatmul.mubr.msk.f32.gmra.mrb[32].mxu0 %vm482_vm8, %v474_v32 }
 0x110   :  { %721 = vmatprep.mubr.f32.mxu0 %v5951_v63 }
 0x112   :  { %3167 = vmatmul.mubr.msk.f32.gmra.mrb[24].mxu1 %vm482_vm8, %v470_v6 }
 0x113   :  { %906 = vmatprep.mubr.f32.mxu1 %v5951_v63 }
 0x116   :  { %3168 = vmatmul.mubr.msk.f32.gmra.mrb[26].mxu1 %vm482_vm8, %v471_v26 }
 0x117   :  { %912 = vmatprep.mubr.f32.mxu1 %v5951_v63 }
 0x11a   :  { %3169 = vmatmul.mubr.msk.f32.gmra.mrb[28].mxu1 %vm482_vm8, %v472_v5 }
 0x11b   :  { %918 = vmatprep.mubr.f32.mxu1 %v5951_v63 }
 0x11e   :  { %3170 = vmatmul.mubr.msk.f32.gmra.mrb[30].mxu1 %vm482_vm8, %v473_v34 }
 0x11f   :  { %924 = vmatprep.mubr.f32.mxu1 %v5951_v63 }
 0x122   :  { %3171 = vmatmul.mubr.msk.f32.gmra.mrb[32].mxu1 %vm482_vm8, %v474_v32 }
 0x123   :  { %930 = vmatprep.mubr.f32.mxu1 %v5951_v63 }
 0x1a2   :  { %v621_v44 = vpop.f32.mrb[0].mxu0 }
 0x1a3   :  { %v623_v40 = vpop.f32.mrb[1].mxu0 }
 0x1a6   :  { %v627_v48 = vpop.f32.mrb[2].mxu0 }
 0x1a7   :  { %v973_v61 = vmax.f32 %v621_v44, %v627_v48  ;;  %v629_v12 = vpop.f32.mrb[3].mxu0 }
 0x1a8   :  { %v980_v24 = vmax.f32 %v623_v40, %v629_v12 }
 0x1a9   :  { %v974_v22 = vrot.slane %v973_v61, 4 }
 0x1aa   :  { %v981_v27 = vrot.slane %v980_v24, 4  ;;  %v4255_v38 = vpop.f32.mrb[4].mxu0 }
 0x1ab   :  { %v975_v52 = vmax.f32 %v973_v61, %v974_v22  ;;  %v4257_v50 = vpop.f32.mrb[5].mxu0 }
 0x1ac   :  { %v982_v7 = vmax.f32 %v980_v24, %v981_v27 }
 0x1ad   :  { %v976_v17 = vrot.slane %v975_v52, 2 }
 0x1ae   :  { %v983_v47 = vrot.slane %v982_v7, 2  ;;  %v4259_v21 = vpop.f32.mrb[6].mxu0 }
 0x1af   :  { %v977_v18 = vmax.f32 %v975_v52, %v976_v17  ;;  %v1065_v19 = vmax.f32 %v4255_v38, %v4259_v21  ;;  %v4263_v1 = vpop.f32.mrb[7].mxu0 }
 0x1b0   :  { %v984_v56 = vmax.f32 %v982_v7, %v983_v47  ;;  %v1072_v0 = vmax.f32 %v4257_v50, %v4263_v1 }
 0x1b1   :  { %v978_v57 = vrot.slane %v977_v18, 1  ;;  %v1066_v45 = vrot.slane %v1065_v19, 4 }
 0x1b2   :  { %v985_v46 = vrot.slane %v984_v56, 1  ;;  %v1073_v25 = vrot.slane %v1072_v0, 4  ;;  %v4267_v42 = vpop.f32.mrb[8].mxu0 }
 0x1b3   :  { %v979_v4 = vmax.f32 %v977_v18, %v978_v57  ;;  %v1067_v29 = vmax.f32 %v1065_v19, %v1066_v45  ;;  %v4269_v54 = vpop.f32.mrb[9].mxu0 }
 0x1b4   :  { %v986_v49 = vmax.f32 %v984_v56, %v985_v46  ;;  %v1074_v23 = vmax.f32 %v1072_v0, %v1073_v25 }
 0x1b5   :  { %v4271_v39 = vpop.f32.mrb[0].mxu1  ;;  %v1001_v16 = vsub.f32 %v621_v44, %v979_v4  ;;  %v1005_v33 = vsub.f32 %v627_v48, %v979_v4  ;;  %v1068_v30 = vrot.slane %v1067_v29, 2 }
 0x1b6   :  { %v4273_v43 = vpop.f32.mrb[1].mxu1  ;;  %v1002_v13 = vsub.f32 %v623_v40, %v986_v49  ;;  %v1006_v36 = vsub.f32 %v629_v12, %v986_v49  ;;  %v1075_v37 = vrot.slane %v1074_v23, 2  ;;  %v4275_v35 = vpop.f32.mrb[10].mxu0 }
 0x1b7   :  { %v1009_v14 = vmul.f32 1.442695, %v1001_v16  ;;  %v1017_v9 = vmul.f32 1.442695, %v1005_v33  ;;  %v1069_v59 = vmax.f32 %v1067_v29, %v1068_v30  ;;  %v1157_v62 = vmax.f32 %v4267_v42, %v4275_v35  ;;  %v4279_v10 = vpop.f32.mrb[11].mxu0 }
 0x1b8   :  { %v1011_v31 = vmul.f32 1.442695, %v1002_v13  ;;  %v1019_v53 = vmul.f32 1.442695, %v1006_v36  ;;  %v1076_v41 = vmax.f32 %v1074_v23, %v1075_v37  ;;  %v1164_v58 = vmax.f32 %v4269_v54, %v4279_v10 }
 0x1b9   :  { %v4283_v15 = vpop.f32.mrb[2].mxu1  ;;  %3329 = vpow2.f32 %v1009_v14  ;;  %v1070_v3 = vrot.slane %v1069_v59, 1  ;;  %v1158_v2 = vrot.slane %v1157_v62, 4 }
 0x1ba   :  { %v987_v60 = vmax.f32 %v4271_v39, %v4283_v15  ;;  %v4287_v8 = vpop.f32.mrb[3].mxu1  ;;  %3331 = vpow2.f32 %v1017_v9  ;;  %v1077_v11 = vrot.slane %v1076_v41, 1  ;;  %v1165_v55 = vrot.slane %v1164_v58, 4  ;;  %v4289_v20 = vpop.f32.mrb[12].mxu0 }
 0x1bb   :  { %v994_v51 = vmax.f32 %v4273_v43, %v4287_v8  ;;  %3333 = vpow2.f32 %v1011_v31  ;;  %v1071_v28 = vmax.f32 %v1069_v59, %v1070_v3  ;;  %v1159_v6 = vmax.f32 %v1157_v62, %v1158_v2  ;;  %v4293_v26 = vpop.f32.mrb[13].mxu0 }
 0x1bc   :  { %v988_v5 = vrot.slane %v987_v60, 4  ;;  %3335 = vpow2.f32 %v1019_v53  ;;  %v1078_v34 = vmax.f32 %v1076_v41, %v1077_v11  ;;  %v1166_v32 = vmax.f32 %v1164_v58, %v1165_v55 }
 0x1bd   :  { %v995_v44 = vrot.slane %v994_v51, 4  ;;  %v4295_v40 = vpop.f32.mrb[4].mxu1  ;;  %v1093_v48 = vsub.f32 %v4255_v38, %v1071_v28  ;;  %v1097_v61 = vsub.f32 %v4259_v21, %v1071_v28  ;;  %v1160_v12 = vrot.slane %v1159_v6, 2 }
 0x1be   :  { %v989_v24 = vmax.f32 %v987_v60, %v988_v5  ;;  %v4299_v22 = vpop.f32.mrb[5].mxu1  ;;  %v1094_v27 = vsub.f32 %v4257_v50, %v1078_v34  ;;  %v1098_v52 = vsub.f32 %v4263_v1, %v1078_v34  ;;  %v1167_v7 = vrot.slane %v1166_v32, 2  ;;  %v4303_v17 = vpop.f32.mrb[14].mxu0 }
 0x1bf   :  { %v4305_v47 = vmax.f32 %v994_v51, %v995_v44  ;;  %v1101_v18 = vmul.f32 1.442695, %v1093_v48  ;;  %v1109_v19 = vmul.f32 1.442695, %v1097_v61  ;;  %v1161_v56 = vmax.f32 %v1159_v6, %v1160_v12  ;;  %v4309_v21 = vpop.f32.mrb[15].mxu0 }
 0x1c0   :  { %v1249_v38 = vmax.f32 %v4289_v20, %v4303_v17  ;;  %v1103_v0 = vmul.f32 1.442695, %v1094_v27  ;;  %v1111_v57 = vmul.f32 1.442695, %v1098_v52  ;;  %v1168_v45 = vmax.f32 %v1166_v32, %v1167_v7 }
 0x1c1   :  { %v1256_v50 = vmax.f32 %v4293_v26, %v4309_v21  ;;  %v4313_v1 = vpop.f32.mrb[6].mxu1  ;;  %3337 = vpow2.f32 %v1101_v18  ;;  %v1162_v46 = vrot.slane %v1161_v56, 1  ;;  %v990_v4 = vrot.slane %v989_v24, 2 }
 0x1c2   :  { %v1250_v25 = vrot.slane %v1249_v38, 4  ;;  %v4315_v29 = vpop.f32.mrb[7].mxu1  ;;  %3339 = vpow2.f32 %v1109_v19  ;;  %v1169_v49 = vrot.slane %v1168_v45, 1  ;;  %v4317_v16 = vpop.f32.mrb[16].mxu0  ;;  %v997_v33 = vrot.slane %v4305_v47, 2 }
 0x1c3   :  { %v1257_v23 = vrot.slane %v1256_v50, 4  ;;  %5952 = vst [vmem:[#allocation5_spill] sm:$0xff] %v4317_v16  ;;  %v4320_v30 = vpop.eup %3329  ;;  %3341 = vpow2.f32 %v1103_v0  ;;  %v1163_v13 = vmax.f32 %v1161_v56, %v1162_v46  ;;  %v4322_v37 = vpop.f32.mrb[17].mxu0  ;;  %v991_v14 = vmax.f32 %v989_v24, %v990_v4 }
 0x1c4   :  { %v1251_v36 = vmax.f32 %v1249_v38, %v1250_v25  ;;  %5953 = vst [vmem:[#allocation9_spill] sm:$0xff] %v4322_v37  ;;  %v4324_v9 = vpop.eup %3331  ;;  %3343 = vpow2.f32 %v1111_v57  ;;  %v1170_v59 = vmax.f32 %v1168_v45, %v1169_v49  ;;  %v1349_v31 = vmax.f32 %v4317_v16, %v4322_v37 }
 0x1c5   :  { %v1258_v62 = vmax.f32 %v1256_v50, %v1257_v23  ;;  %v4328_v53 = vpop.f32.mrb[8].mxu1  ;;  %v4330_v41 = vpop.eup %3333  ;;  %v1025_v58 = vadd.f32 %v4324_v9, %v4320_v30  ;;  %v1185_v3 = vsub.f32 %v4267_v42, %v1163_v13  ;;  %v1189_v2 = vsub.f32 %v4275_v35, %v1163_v13 }
 0x1c6   :  { %v1252_v60 = vrot.slane %v1251_v36, 2  ;;  %v4336_v11 = vpop.f32.mrb[9].mxu1  ;;  %v4338_v55 = vpop.eup %3335  ;;  %v1186_v51 = vsub.f32 %v4269_v54, %v1170_v59  ;;  %v1190_v28 = vsub.f32 %v4279_v10, %v1170_v59  ;;  %1350 = vmax.xlane.f32.xlu1 %v1349_v31  ;;  %v992_v34 = vrot.slane %v991_v14, 1 }
 0x1c7   :  { %v1259_v6 = vrot.slane %v1258_v62, 2  ;;  %v4342_v5 = vpop.f32.mrb[18].mxu0  ;;  %v1026_v32 = vrot.slane %v1025_v58, 4  ;;  %v1032_v42 = vadd.f32 %v4338_v55, %v4330_v41  ;;  %v1193_v44 = vmul.f32 1.442695, %v1185_v3 }
 0x1c8   :  { %5954 = vst [vmem:[#allocation8_spill] sm:$0xff] %v4342_v5  ;;  %v1201_v35 = vmul.f32 1.442695, %v1189_v2  ;;  %v4346_v48 = vpop.f32.mrb[19].mxu0  ;;  %v1195_v61 = vmul.f32 1.442695, %v1186_v51  ;;  %v1253_v24 = vmax.f32 %v1251_v36, %v1252_v60  ;;  %v993_v0 = vmax.f32 %v991_v14, %v992_v34 }
 0x1c9   :  { %5955 = vst [vmem:[#allocation6_spill] sm:$0xff] %v4346_v48  ;;  %v1203_v12 = vmul.f32 1.442695, %v1190_v28  ;;  %v1260_v27 = vmax.f32 %v1258_v62, %v1259_v6  ;;  %v4348_v54 = vpop.f32.mrb[10].mxu1  ;;  %v1027_v10 = vadd.f32 %v1026_v32, %v1025_v58  ;;  %v1033_v52 = vrot.slane %v1032_v42, 4 }
 0x1ca   :  { %3345 = vpow2.f32 %v1193_v44  ;;  %v1352_v7 = vmax.f32 %v4342_v5, %v4346_v48  ;;  %v4352_v18 = vpop.f32.mrb[11].mxu1  ;;  %v1254_v19 = vrot.slane %v1253_v24, 1  ;;  %v4354_v38 = vpop.f32.mrb[20].mxu0  ;;  %v998_v25 = vmax.f32 %v4305_v47, %v997_v33 }
 0x1cb   :  { %3347 = vpow2.f32 %v1201_v35  ;;  %v1261_v56 = vrot.slane %v1260_v27, 1  ;;  %5956 = vst [vmem:[#allocation7_spill] sm:$0xff] %v4354_v38  ;;  %v4356_v57 = vpop.eup %3337  ;;  %v1028_v45 = vrot.slane %v1027_v10, 2  ;;  %v1034_v50 = vadd.f32 %v1033_v52, %v1032_v42  ;;  %v4358_v46 = vpop.f32.mrb[21].mxu0 }
 0x1cc   :  { %3349 = vpow2.f32 %v1195_v61  ;;  %1353 = vmax.xlane.f32.xlu0 %v1352_v7  ;;  %5957 = vst [vmem:[#allocation10_spill] sm:$0xff] %v4358_v46  ;;  %v4361_v4 = vpop.eup %3339  ;;  %v1255_v49 = vmax.f32 %v1253_v24, %v1254_v19  ;;  %v1355_v13 = vmax.f32 %v4354_v38, %v4358_v46  ;;  %v1003_v58 = vsub.f32 %v4271_v39, %v993_v0 }
 0x1cd   :  { %3351 = vpow2.f32 %v1203_v12  ;;  %v1262_v23 = vmax.f32 %v1260_v27, %v1261_v56  ;;  %v4365_v36 = vpop.f32.mrb[12].mxu1  ;;  %v4367_v14 = vpop.eup %3341  ;;  %v1029_v59 = vadd.f32 %v1028_v45, %v1027_v10  ;;  %v1035_v62 = vrot.slane %v1034_v50, 2 }
 0x1ce   :  { %5958 = vst [vmem:[#allocation11_spill] sm:$0xff] %v4367_v14  ;;  %v1117_v31 = vadd.f32 %v4361_v4, %v4356_v57  ;;  %v4372_v47 = vpop.f32.mrb[13].mxu1  ;;  %v4374_v33 = vpop.eup %3343  ;;  %v1277_v3 = vsub.f32 %v4289_v20, %v1255_v49  ;;  %v1281_v2 = vsub.f32 %v4303_v17, %v1255_v49  ;;  %v1007_v17 = vsub.f32 %v4283_v15, %v993_v0 }
 0x1cf   :  { %5959 = vst [vmem:[#allocation12_spill] sm:$0xff] %v4374_v33  ;;  %v1278_v60 = vsub.f32 %v4293_v26, %v1262_v23  ;;  %v1282_v51 = vsub.f32 %v4309_v21, %v1262_v23  ;;  %v4380_v28 = vpop.f32.mrb[22].mxu0  ;;  %v1030_v6 = vrot.slane %v1029_v59, 1  ;;  %v4382_v34 = vadd.f32 %v1035_v62, %v1034_v50 }
 0x1d0   :  { %5960 = vst [vmem:[#allocation13_spill] sm:$0xff] %v4380_v28  ;;  %v1118_v32 = vrot.slane %v1117_v31, 4  ;;  %v1124_v39 = vadd.f32 %v4374_v33, %v4367_v14  ;;  %1356 = vmax.xlane.f32.xlu0 %v1355_v13  ;;  %v4386_v42 = vpop.f32.mrb[23].mxu0  ;;  %v1285_v44 = vmul.f32 1.442695, %v1277_v3  ;;  %v999_v52 = vrot.slane %v998_v25, 1 }
 0x1d1   :  { %5961 = vst [vmem:[#allocation14_spill] sm:$0xff] %v4386_v42  ;;  %v1293_v20 = vmul.f32 1.442695, %v1281_v2  ;;  %v1287_v35 = vmul.f32 1.442695, %v1278_v60  ;;  %v1031_v26 = vadd.f32 %v1030_v6, %v1029_v59  ;;  %v4389_v24 = vpop.f32.mrb[14].mxu1  ;;  %v1358_v15 = vmax.f32 %v4380_v28, %v4386_v42 }
 0x1d2   :  { %v1119_v61 = vadd.f32 %v1118_v32, %v1117_v31  ;;  %v1125_v21 = vrot.slane %v1124_v39, 4  ;;  %v1295_v12 = vmul.f32 1.442695, %v1282_v51  ;;  %3353 = vpow2.f32 %v1285_v44  ;;  %v4391_v7 = vpop.f32.mrb[24].mxu0  ;;  %v4399_v50 = vpop.f32.mrb[15].mxu1 }
 0x1d3   :  { %v1013_v27 = vmul.f32 1.442695, %v1003_v58  ;;  %v1021_v10 = vmul.f32 1.442695, %v1007_v17  ;;  %5962 = vst [vmem:[#allocation15_spill] sm:$0xff] %v4391_v7  ;;  %3355 = vrcp.f32 %v1031_v26  ;;  %v4397_v0 = vpop.f32.mrb[25].mxu0  ;;  %v1000_v23 = vmax.f32 %v998_v25, %v999_v52  ;;  %1359 = vmax.xlane.f32.xlu1 %v1358_v15 }
 0x1d4   :  { %v4393_v19 = vpop.eup %3345  ;;  %v1120_v56 = vrot.slane %v1119_v61, 2  ;;  %v1126_v45 = vadd.f32 %v1125_v21, %v1124_v39  ;;  %5963 = vst [vmem:[#allocation16_spill] sm:$0xff] %v4397_v0  ;;  %3357 = vpow2.f32 %v1293_v20  ;;  %v1079_v13 = vmax.f32 %v4295_v40, %v4313_v1 }
 0x1d5   :  { %v4401_v49 = vpop.eup %3347  ;;  %v1086_v59 = vmax.f32 %v4299_v22, %v4315_v29  ;;  %v4407_v62 = vpop.f32.mrb[16].mxu1  ;;  %3359 = vpow2.f32 %v1287_v35  ;;  %v1004_v51 = vsub.f32 %v4273_v43, %v1000_v23  ;;  %v1008_v6 = vsub.f32 %v4287_v8, %v1000_v23 }
 0x1d6   :  { %v4409_v31 = vpop.eup %3349  ;;  %v1121_v58 = vadd.f32 %v1120_v56, %v1119_v61  ;;  %v1127_v3 = vrot.slane %v1126_v45, 2  ;;  %v1209_v2 = vadd.f32 %v4401_v49, %v4393_v19  ;;  %v4413_v60 = vpop.f32.mrb[17].mxu1  ;;  %3361 = vpow2.f32 %v1295_v12 }
 0x1d7   :  { %5964 = vst [vmem:[#allocation17_spill] sm:$0xff] %v4409_v31  ;;  %v4415_v25 = vpop.eup %3351  ;;  %v1080_v32 = vrot.slane %v1079_v13, 4  ;;  %v4419_v39 = vpop.f32.mrb[26].mxu0  ;;  %3363 = vpow2.f32 %v1013_v27  ;;  %v1015_v61 = vmul.f32 1.442695, %v1004_v51  ;;  %v1361_v27 = vmax.f32 %v4391_v7, %v4397_v0 }
 0x1d8   :  { %5965 = vst [vmem:[#allocation18_spill] sm:$0xff] %v4415_v25  ;;  %5966 = vst [vmem:[#allocation19_spill] sm:$0xff] %v4419_v39  ;;  %v1122_v44 = vrot.slane %v1121_v58, 1  ;;  %v4421_v20 = vadd.f32 %v1127_v3, %v1126_v45  ;;  %v1210_v17 = vrot.slane %v1209_v2, 4  ;;  %v1216_v35 = vadd.f32 %v4415_v25, %v4409_v31  ;;  %v4425_v26 = vpop.f32.mrb[27].mxu0  ;;  %v475_v45 = vld [vmem:[%s5874_s3 + $0x88] sm:$0xff] }
 0x1d9   :  { %5967 = vst [vmem:[#allocation20_spill] sm:$0xff] %v4425_v26  ;;  %v1023_v21 = vmul.f32 1.442695, %v1008_v6  ;;  %v1081_v12 = vmax.f32 %v1079_v13, %v1080_v32  ;;  %v4427_v52 = vpop.f32.mrb[18].mxu1  ;;  %3365 = vpow2.f32 %v1021_v10  ;;  %v1087_v3 = vrot.slane %v1086_v59, 4  ;;  %3148 = vmatmul.mubr.msk.f32.gmra.mrb[34].mxu0 %vm482_vm8, %v475_v45  ;;  %3172 = vmatmul.mubr.msk.f32.gmra.mrb[34].mxu1 %vm482_vm8, %v475_v45 }
 0x1da   :  { %v1123_v43 = vadd.f32 %v1122_v44, %v1121_v58  ;;  %v1211_v8 = vadd.f32 %v1210_v17, %v1209_v2  ;;  %v1217_v56 = vrot.slane %v1216_v35, 4  ;;  %v4429_v15 = vpop.f32.mrb[19].mxu1  ;;  %3367 = vpow2.f32 %v1015_v61  ;;  %v4436_v51 = vpop.f32.mrb[28].mxu0  ;;  %727 = vmatprep.mubr.f32.mxu0 %v5951_v63  ;;  %936 = vmatprep.mubr.f32.mxu1 %v5951_v63 }
 0x1db   :  { %v1082_v23 = vrot.slane %v1081_v12, 2  ;;  %v1171_v58 = vmax.f32 %v4328_v53, %v4348_v54  ;;  %v4442_v2 = vpop.f32.mrb[29].mxu0  ;;  %v1088_v44 = vmax.f32 %v1086_v59, %v1087_v3  ;;  %1362 = vmax.xlane.f32.xlu0 %v1361_v27  ;;  %v1178_v17 = vmax.f32 %v4336_v11, %v4352_v18 }
 0x1dc   :  { %3369 = vrcp.f32 %v1123_v43  ;;  %v1212_v10 = vrot.slane %v1211_v8, 2  ;;  %v1218_v13 = vadd.f32 %v1217_v56, %v1216_v35  ;;  %v4446_v6 = vpop.eup %3353  ;;  %v1364_v0 = vmax.f32 %v4419_v39, %v4425_v26 }
 0x1dd   :  { %3371 = vpow2.f32 %v1023_v21  ;;  %v1083_v32 = vmax.f32 %v1081_v12, %v1082_v23  ;;  %v4450_v61 = vpop.f32.mrb[20].mxu1  ;;  %v4452_v35 = vpop.eup %3355  ;;  %v1172_v45 = vrot.slane %v1171_v58, 4  ;;  %v1089_v59 = vrot.slane %v1088_v44, 2 }
 0x1de   :  { %5968 = vst [vmem:[#allocation21_spill] sm:$0xff] %v4450_v61  ;;  %v1213_v43 = vadd.f32 %v1212_v10, %v1211_v8  ;;  %v1219_v56 = vrot.slane %v1218_v13, 2  ;;  %v4456_v7 = vpop.f32.mrb[21].mxu1  ;;  %v4458_v42 = vpop.eup %3357  ;;  %v1179_v12 = vrot.slane %v1178_v17, 4  ;;  %v4462_v23 = vmax.f32 %v4365_v36, %v4389_v24  ;;  %v476_v8 = vld [vmem:[%s5874_s3 + $0x90] sm:$0xff]  ;;  %1365 = vmax.xlane.f32.xlu1 %v1364_v0 }
 0x1df   :  { %5969 = vst [vmem:[#allocation22_spill] sm:$0xff] %v4456_v7  ;;  %5970 = vst [vmem:[#allocation23_spill] sm:$0xff] %v4458_v42  ;;  %v1084_v21 = vrot.slane %v1083_v32, 1  ;;  %v4464_v3 = vpop.f32.mrb[30].mxu0  ;;  %v4469_v27 = vpop.eup %3359  ;;  %v1301_v39 = vadd.f32 %v4458_v42, %v4446_v6  ;;  %v1173_v28 = vmax.f32 %v1171_v58, %v1172_v45  ;;  %3149 = vmatmul.mubr.msk.f32.gmra.mrb[36].mxu0 %vm482_vm8, %v476_v8  ;;  %3173 = vmatmul.mubr.msk.f32.gmra.mrb[36].mxu1 %vm482_vm8, %v476_v8 }
 0x1e0   :  { %5971 = vst [vmem:[#allocation24_spill] sm:$0xff] %v4469_v27  ;;  %v1214_v10 = vrot.slane %v1213_v43, 1  ;;  %v4471_v26 = vadd.f32 %v1219_v56, %v1218_v13  ;;  %v4475_v46 = vpop.f32.mrb[31].mxu0  ;;  %v4478_v38 = vpop.eup %3361  ;;  %v1090_v5 = vmax.f32 %v1088_v44, %v1089_v59  ;;  %v1180_v37 = vmax.f32 %v1178_v17, %v1179_v12  ;;  %733 = vmatprep.mubr.f32.mxu0 %v5951_v63 }
 0x1e1   :  { %5972 = vst [vmem:[#allocation25_spill] sm:$0xff] %v4478_v38  ;;  %v1085_v48 = vmax.f32 %v1083_v32, %v1084_v21  ;;  %v4481_v25 = vpop.f32.mrb[22].mxu1  ;;  %v1302_v58 = vrot.slane %v1301_v39, 4  ;;  %v1308_v0 = vadd.f32 %v4478_v38, %v4469_v27  ;;  %v1174_v56 = vrot.slane %v1173_v28, 2  ;;  %942 = vmatprep.mubr.f32.mxu1 %v5951_v63  ;;  %v4490_v32 = vpop.eup %3363 }
 0x1e2   :  { %v1215_v13 = vadd.f32 %v1214_v10, %v1213_v43  ;;  %v4487_v45 = vpop.f32.mrb[23].mxu1  ;;  %5973 = vst [vmem:[#allocation26_spill] sm:$0xff] %v4490_v32  ;;  %v1091_v21 = vrot.slane %v1090_v5, 1  ;;  %v1181_v59 = vrot.slane %v1180_v37, 2  ;;  %v477_v43 = vld [vmem:[%s5874_s3 + $0x98] sm:$0xff] }
 0x1e3   :  { %v1095_v44 = vsub.f32 %v4295_v40, %v1085_v48  ;;  %v1099_v17 = vsub.f32 %v4313_v1, %v1085_v48  ;;  %v4497_v12 = vpop.eup %3365  ;;  %v1303_v8 = vadd.f32 %v1302_v58, %v1301_v39  ;;  %v1309_v10 = vrot.slane %v1308_v0, 4  ;;  %3150 = vmatmul.mubr.msk.f32.gmra.mrb[38].mxu0 %vm482_vm8, %v477_v43  ;;  %3174 = vmatmul.mubr.msk.f32.gmra.mrb[38].mxu1 %vm482_vm8, %v477_v43 }
 0x1e4   :  { %5974 = vst [vmem:[#allocation27_spill] sm:$0xff] %v4497_v12  ;;  %3373 = vrcp.f32 %v1215_v13  ;;  %v1175_v16 = vmax.f32 %v1173_v28, %v1174_v56  ;;  %v4500_v38 = vpop.eup %3367  ;;  %v1039_v40 = vadd.f32 %v4497_v12, %v4490_v32  ;;  %v1092_v27 = vmax.f32 %v1090_v5, %v1091_v21  ;;  %739 = vmatprep.mubr.f32.mxu0 %v5951_v63 }
 0x1e5   :  { %v1105_v1 = vmul.f32 1.442695, %v1095_v44  ;;  %v1113_v48 = vmul.f32 1.442695, %v1099_v17  ;;  %v4504_v31 = vpop.f32.mrb[24].mxu1  ;;  %v1304_v39 = vrot.slane %v1303_v8, 2  ;;  %v1310_v28 = vadd.f32 %v1309_v10, %v1308_v0  ;;  %948 = vmatprep.mubr.f32.mxu1 %v5951_v63 }
 0x1e6   :  { %v4508_v13 = vpop.eup %3369  ;;  %v1176_v58 = vrot.slane %v1175_v16, 1  ;;  %v1182_v56 = vmax.f32 %v1180_v37, %v1181_v59  ;;  %v4510_v33 = vpop.f32.mrb[25].mxu1  ;;  %v1040_v44 = vrot.slane %v1039_v40, 4  ;;  %v1096_v5 = vsub.f32 %v4299_v22, %v1092_v27 }
 0x1e7   :  { %v4513_v12 = vpop.eup %3371  ;;  %3375 = vpow2.f32 %v1105_v1  ;;  %v1100_v17 = vsub.f32 %v4315_v29, %v1092_v27  ;;  %v1305_v21 = vadd.f32 %v1304_v39, %v1303_v8  ;;  %v1311_v43 = vrot.slane %v1310_v28, 2  ;;  %v478_v1 = vld [vmem:[%s5874_s3 + $0xa0] sm:$0xff] }
 0x1e8   :  { %v1046_v32 = vadd.f32 %v4513_v12, %v4500_v38  ;;  %3377 = vpow2.f32 %v1113_v48  ;;  %v1041_v0 = vadd.f32 %v1040_v44, %v1039_v40  ;;  %v1107_v37 = vmul.f32 1.442695, %v1096_v5  ;;  %3151 = vmatmul.mubr.msk.f32.gmra.mrb[40].mxu0 %vm482_vm8, %v478_v1  ;;  %3175 = vmatmul.mubr.msk.f32.gmra.mrb[40].mxu1 %vm482_vm8, %v478_v1 }
 0x1e9   :  { %v1115_v59 = vmul.f32 1.442695, %v1100_v17  ;;  %v1177_v10 = vmax.f32 %v1175_v16, %v1176_v58  ;;  %v4519_v14 = vpop.f32.mrb[26].mxu1  ;;  %v1306_v42 = vrot.slane %v1305_v21, 1  ;;  %v4524_v22 = vadd.f32 %v1311_v43, %v1310_v28  ;;  %745 = vmatprep.mubr.f32.mxu0 %v5951_v63  ;;  %954 = vmatprep.mubr.f32.mxu1 %v5951_v63 }
 0x1ea   :  { %v1047_v29 = vrot.slane %v1046_v32, 4  ;;  %v1183_v27 = vrot.slane %v1182_v56, 1  ;;  %v4526_v8 = vpop.f32.mrb[27].mxu1  ;;  %v1042_v40 = vrot.slane %v1041_v0, 2  ;;  %3379 = vpow2.f32 %v1107_v37 }
 0x1eb   :  { %5975 = vst [vmem:[#allocation28_spill] sm:$0xff] %v4526_v8  ;;  %v1187_v16 = vsub.f32 %v4328_v53, %v1177_v10  ;;  %v1191_v48 = vsub.f32 %v4348_v54, %v1177_v10  ;;  %v1307_v39 = vadd.f32 %v1306_v42, %v1305_v21  ;;  %3381 = vpow2.f32 %v1115_v59 }
 0x1ec   :  { %v1048_v28 = vadd.f32 %v1047_v29, %v1046_v32  ;;  %v1184_v58 = vmax.f32 %v1182_v56, %v1183_v27  ;;  %v1043_v44 = vadd.f32 %v1042_v40, %v1041_v0  ;;  %v5976_v43 = vrot.slane %v4462_v23, 4  ;;  %v479_v27 = vld [vmem:[%s5874_s3 + $0xa8] sm:$0xff] }
 0x1ed   :  { %v1197_v5 = vmul.f32 1.442695, %v1187_v16  ;;  %v1205_v17 = vmul.f32 1.442695, %v1191_v48  ;;  %v4537_v37 = vpop.f32.mrb[28].mxu1  ;;  %3383 = vrcp.f32 %v1307_v39  ;;  %v1270_v0 = vmax.f32 %v4372_v47, %v4399_v50  ;;  %3152 = vmatmul.mubr.msk.f32.gmra.mrb[42].mxu0 %vm482_vm8, %v479_v27  ;;  %3176 = vmatmul.mubr.msk.f32.gmra.mrb[42].mxu1 %vm482_vm8, %v479_v27 }
 0x1ee   :  { %v1265_v1 = vmax.f32 %v4462_v23, %v5976_v43  ;;  %5977 = vst [vmem:[#allocation29_spill] sm:$0xff] %v4537_v37  ;;  %v4539_v53 = vpop.eup %3373  ;;  %v1049_v54 = vrot.slane %v1048_v28, 2  ;;  %v1188_v10 = vsub.f32 %v4336_v11, %v1184_v58  ;;  %v1192_v42 = vsub.f32 %v4352_v18, %v1184_v58  ;;  %v4543_v32 = vpop.f32.mrb[29].mxu1  ;;  %751 = vmatprep.mubr.f32.mxu0 %v5951_v63 }
 0x1ef   :  { %5978 = vst [vmem:[#allocation30_spill] sm:$0xff] %v4543_v32  ;;  %v1044_v56 = vrot.slane %v1043_v44, 1  ;;  %3385 = vpow2.f32 %v1197_v5  ;;  %v1271_v16 = vrot.slane %v1270_v0, 4  ;;  %v1367_v48 = vmax.f32 %v4436_v51, %v4442_v2  ;;  %960 = vmatprep.mubr.f32.mxu1 %v5951_v63 }
 0x1f0   :  { %v1266_v21 = vrot.slane %v1265_v1, 2  ;;  %v4547_v59 = vadd.f32 %v1049_v54, %v1048_v28  ;;  %3387 = vpow2.f32 %v1205_v17  ;;  %v1199_v23 = vmul.f32 1.442695, %v1188_v10  ;;  %v480_v10 = vld [vmem:[%s5874_s3 + $0xb0] sm:$0xff] }
 0x1f1   :  { %v1207_v29 = vmul.f32 1.442695, %v1192_v42  ;;  %v4552_v11 = vpop.eup %3375  ;;  %v1045_v18 = vadd.f32 %v1044_v56, %v1043_v44  ;;  %v4556_v39 = vpop.f32.mrb[30].mxu1  ;;  %v1037_v58 = vrot.slane %v4382_v34, 1  ;;  %v1720_v5 = vmax.f32 %v4407_v62, %v4413_v60  ;;  %1368 = vmax.xlane.f32.xlu0 %v1367_v48  ;;  %3153 = vmatmul.mubr.msk.f32.gmra.mrb[44].mxu0 %vm482_vm8, %v480_v10 }
 0x1f2   :  { %v1267_v40 = vmax.f32 %v1265_v1, %v1266_v21  ;;  %v4560_v28 = vpop.eup %3377  ;;  %3389 = vpow2.f32 %v1199_v23  ;;  %v1370_v44 = vmax.f32 %v4464_v3, %v4475_v46  ;;  %v4567_v17 = vpop.f32.mrb[31].mxu1  ;;  %v1272_v54 = vmax.f32 %v1270_v0, %v1271_v16  ;;  %3177 = vmatmul.mubr.msk.f32.gmra.mrb[44].mxu1 %vm482_vm8, %v480_v10  ;;  %757 = vmatprep.mubr.f32.mxu0 %v5951_v63 }
 0x1f3   :  { %3391 = vrcp.f32 %v1045_v18  ;;  %v1131_v43 = vadd.f32 %v4560_v28, %v4552_v11  ;;  %v1038_v42 = vadd.f32 %v1037_v58, %v4382_v34  ;;  %v4579_v56 = vmul.f32 %v4452_v35, %v4320_v30  ;;  %966 = vmatprep.mubr.f32.mxu1 %v5951_v63 }
 0x1f4   :  { %v1268_v1 = vrot.slane %v1267_v40, 1  ;;  %3393 = vpow2.f32 %v1207_v29  ;;  %1371 = vmax.xlane.f32.xlu1 %v1370_v44  ;;  %v4583_v21 = vmul.f32 %v4452_v35, %v4324_v9  ;;  %v4585_v23 = vpop.eup %3379  ;;  %v1273_v18 = vrot.slane %v1272_v54, 2 }
 0x1f5   :  { %v1132_v0 = vrot.slane %v1131_v43, 4  ;;  %v1726_v16 = vmax.f32 %v4450_v61, %v4456_v7  ;;  %v4591_v34 = vpop.eup %3381  ;;  %3395 = vrcp.f32 %v1038_v42  ;;  %v1723_v9 = vmax.f32 %v4427_v52, %v4429_v15  ;;  %1721 = vmax.xlane.f32.xlu0 %v1720_v5 }
 0x1f6   :  { %v1269_v27 = vmax.f32 %v1267_v40, %v1268_v1  ;;  %v1129_v35 = vrot.slane %v4421_v20, 1  ;;  %v1138_v40 = vadd.f32 %v4591_v34, %v4585_v23  ;;  %v1274_v1 = vmax.f32 %v1272_v54, %v1273_v18 }
 0x1f7   :  { %v1133_v29 = vadd.f32 %v1132_v0, %v1131_v43  ;;  %v4604_v44 = vpop.eup %3383  ;;  %v1732_v42 = vmax.f32 %v4504_v31, %v4510_v33  ;;  %v1729_v43 = vmax.f32 %v4481_v25, %v4487_v45  ;;  %v4617_v54 = vmul.f32 %v4508_v13, %v4356_v57 }
 0x1f8   :  { %v1279_v48 = vsub.f32 %v4365_v36, %v1269_v27  ;;  %v1283_v58 = vsub.f32 %v4389_v24, %v1269_v27  ;;  %1724 = vmax.xlane.f32.xlu1 %v1723_v9  ;;  %v1130_v10 = vadd.f32 %v1129_v35, %v4421_v20  ;;  %v1139_v7 = vrot.slane %v1138_v40, 4 }
 0x1f9   :  { %v4611_v0 = vpop.eup %3385  ;;  %v1134_v30 = vrot.slane %v1133_v29, 2  ;;  %v1275_v5 = vrot.slane %v1274_v1, 1  ;;  %v4621_v20 = vmul.f32 %v4508_v13, %v4361_v4  ;;  %1727 = vmax.xlane.f32.xlu0 %v1726_v16 }
 0x1fa   :  { %v1289_v36 = vmul.f32 1.442695, %v1279_v48  ;;  %v1297_v61 = vmul.f32 1.442695, %v1283_v58  ;;  %v4613_v24 = vpop.eup %3387  ;;  %3397 = vrcp.f32 %v1130_v10  ;;  %v1140_v18 = vadd.f32 %v1139_v7, %v1138_v40 }
 0x1fb   :  { %v1135_v27 = vadd.f32 %v1134_v30, %v1133_v29  ;;  %v1223_v9 = vadd.f32 %v4613_v24, %v4611_v0  ;;  %v1276_v48 = vmax.f32 %v1274_v1, %v1275_v5  ;;  %v1735_v58 = vmax.f32 %v4519_v14, %v4526_v8 }
 0x1fc   :  { %3399 = vpow2.f32 %v1289_v36  ;;  %v4625_v35 = vpop.eup %3389  ;;  %1730 = vmax.xlane.f32.xlu1 %v1729_v43  ;;  %v1141_v30 = vrot.slane %v1140_v18, 2  ;;  %v1738_v29 = vmax.f32 %v4537_v37, %v4543_v32  ;;  %v1221_v1 = vrot.slane %v4471_v26, 1 }
 0x1fd   :  { %3401 = vpow2.f32 %v1297_v61  ;;  %v3392_v4 = vpop.eup %3391  ;;  %v1136_v13 = vrot.slane %v1135_v27, 1  ;;  %v1224_v7 = vrot.slane %v1223_v9, 4  ;;  %v1280_v16 = vsub.f32 %v4372_v47, %v1276_v48  ;;  %1733 = vmax.xlane.f32.xlu0 %v1732_v42 }
 0x1fe   :  { %v4633_v40 = vpop.eup %3393  ;;  %v1284_v61 = vsub.f32 %v4399_v50, %v1276_v48  ;;  %v4640_v10 = vmul.f32 %v4539_v53, %v4393_v19  ;;  %v1142_v36 = vadd.f32 %v1141_v30, %v1140_v18  ;;  %v1222_v47 = vadd.f32 %v1221_v1, %v4471_v26 }
 0x1ff   :  { %v1137_v43 = vadd.f32 %v1136_v13, %v1135_v27  ;;  %v1225_v5 = vadd.f32 %v1224_v7, %v1223_v9  ;;  %v1230_v57 = vadd.f32 %v4633_v40, %v4625_v35  ;;  %v3396_v32 = vpop.eup %3395  ;;  %v1291_v37 = vmul.f32 1.442695, %v1280_v16 }
 0x200   :  { %v1299_v8 = vmul.f32 1.442695, %v1284_v61  ;;  %1736 = vmax.xlane.f32.xlu1 %v1735_v58  ;;  %v4647_v50 = vmul.f32 %v4539_v53, %v4401_v49  ;;  %v1058_v27 = vmul.f32 %v3396_v32, %v4330_v41  ;;  %v1062_v18 = vmul.f32 %v3396_v32, %v4338_v55  ;;  %v5979_v55 = vld [vmem:[#allocation23_spill] sm:$0xff] }
 0x201   :  { %3403 = vrcp.f32 %v1137_v43  ;;  %v1226_v19 = vrot.slane %v1225_v5, 2  ;;  %v1231_v48 = vrot.slane %v1230_v57, 4  ;;  %v1741_v9 = vmax.f32 %v4556_v39, %v4567_v17  ;;  %1739 = vmax.xlane.f32.xlu0 %v1738_v29  ;;  %v5981_v29 = vld [vmem:[#allocation12_spill] sm:$0xff] }
 0x202   :  { %3405 = vpow2.f32 %v1291_v37  ;;  %v3231_v42 = vpack.c.bf16 %v4647_v50, %v4640_v10  ;;  %v1313_v49 = vrot.slane %v4524_v22, 1  ;;  %v3221_v13 = vpack.c.bf16 %v1062_v18, %v1058_v27 }
 0x203   :  { %v1227_v58 = vadd.f32 %v1226_v19, %v1225_v5  ;;  %v1232_v26 = vadd.f32 %v1231_v48, %v1230_v57  ;;  %3407 = vpow2.f32 %v1299_v8  ;;  %v4658_v41 = vmul.f32 %v4604_v44, %v4446_v6  ;;  %v5980_v8 = vld [vmem:[#allocation11_spill] sm:$0xff]  ;;  %v5982_v5 = vld [vmem:[#allocation26_spill] sm:$0xff] }
 0x204   :  { %v3398_v53 = vpop.eup %3397  ;;  %3409 = vrcp.f32 %v1222_v47  ;;  %1742 = vmax.xlane.f32.xlu1 %v1741_v9  ;;  %v4662_v37 = vmul.f32 %v4604_v44, %v5979_v55  ;;  %3222 = vmatprep.subr.bf16.mxu1 %v3221_v13  ;;  %v1314_v1 = vadd.f32 %v1313_v49, %v4524_v22  ;;  %v1051_v43 = vrot.slane %v4547_v59, 1  ;;  %v481_v44 = vld [vmem:[%s5874_s3 + $0xb8] sm:$0xff]  ;;  %v5985_v49 = vld [vmem:[#allocation27_spill] sm:$0xff] }
 0x205   :  { %v1228_v30 = vrot.slane %v1227_v58, 1  ;;  %v1233_v57 = vrot.slane %v1232_v26, 2  ;;  %v1150_v7 = vmul.f32 %v3398_v53, %v5980_v8  ;;  %v1154_v16 = vmul.f32 %v3398_v53, %v5981_v29  ;;  %3154 = vmatmul.mubr.msk.f32.gmra.mrb[46].mxu0 %vm482_vm8, %v481_v44  ;;  %3178 = vmatmul.mubr.msk.f32.gmra.mrb[46].mxu1 %vm482_vm8, %v481_v44 }
 0x206   :  { %v4664_v32 = vpop.eup %3399  ;;  %v3235_v6 = vpack.c.bf16 %v4662_v37, %v4658_v41  ;;  %v4678_v47 = vmul.f32 %v3392_v4, %v5982_v5  ;;  %v5984_v22 = vpack.c.bf16 %v4583_v21, %v4579_v56  ;;  %3411 = vrcp.f32 %v1314_v1  ;;  %1671 = vmatprep.mubr.f32.mxu1 %v5951_v63  ;;  %v5991_v5 = vld [vmem:[#allocation18_spill] sm:$0xff] }
 0x207   :  { %v4668_v61 = vpop.eup %3401  ;;  %v1229_v19 = vadd.f32 %v1228_v30, %v1227_v58  ;;  %v1234_v48 = vadd.f32 %v1233_v57, %v1232_v26  ;;  %v3225_v18 = vpack.c.bf16 %v1154_v16, %v1150_v7  ;;  %v1052_v9 = vadd.f32 %v1051_v43, %v4547_v59 }
 0x208   :  { %5983 = vst [vmem:[#allocation23_spill] sm:$0xff] %v4678_v47  ;;  %v1315_v27 = vadd.f32 %v4668_v61, %v4664_v32  ;;  %3224 = vmatpush1.bf16.msra.mxu1 %v5984_v22  ;;  %v4689_v53 = vmul.f32 %v3392_v4, %v5985_v49  ;;  %v1143_v58 = vrot.slane %v1142_v36, 1  ;;  %v5987_v30 = vpack.c.bf16 %v4621_v20, %v4617_v54  ;;  %v5990_v54 = vld [vmem:[#allocation17_spill] sm:$0xff]  ;;  %v5992_v49 = vld [vmem:[#allocation24_spill] sm:$0xff] }
 0x209   :  { %3413 = vrcp.f32 %v1229_v19  ;;  %3226 = vmatprep.subr.bf16.mxu1 %v3225_v18  ;;  %v1235_v13 = vrot.slane %v1234_v48, 1 }
 0x20a   :  { %5986 = vst [vmem:[#allocation11_spill] sm:$0xff] %v4689_v53  ;;  %v1316_v26 = vrot.slane %v1315_v27, 4  ;;  %3415 = vrcp.f32 %v1052_v9  ;;  %v1144_v21 = vadd.f32 %v1143_v58, %v1142_v36 }
 0x20b   :  { %v3404_v59 = vpop.eup %3403  ;;  %v1236_v4 = vadd.f32 %v1235_v13, %v1234_v48 }
 0x20c   :  { %v1317_v55 = vadd.f32 %v1316_v26, %v1315_v27  ;;  %3228 = vmatpush1.bf16.msra.mxu1 %v5987_v30  ;;  %v3406_v57 = vpop.eup %3405  ;;  %3417 = vrcp.f32 %v1144_v21  ;;  %v4698_v8 = vmul.f32 %v3404_v59, %v4552_v11  ;;  %v4701_v7 = vmul.f32 %v3404_v59, %v4560_v28  ;;  %v5993_v26 = vld [vmem:[#allocation25_spill] sm:$0xff] }
 0x20d   :  { %v3408_v29 = vpop.eup %3407  ;;  %3419 = vrcp.f32 %v1236_v4 }
 0x20e   :  { %5988 = vst [vmem:[#allocation12_spill] sm:$0xff] %v4698_v8  ;;  %5989 = vst [vmem:[#allocation26_spill] sm:$0xff] %v4701_v7  ;;  %v1318_v16 = vrot.slane %v1317_v55, 2  ;;  %v3410_v1 = vpop.eup %3409  ;;  %v1322_v36 = vadd.f32 %v3408_v29, %v3406_v57 }
 0x20f   :  { %v1242_v20 = vmul.f32 %v3410_v1, %v5990_v54  ;;  %v1246_v19 = vmul.f32 %v3410_v1, %v5991_v5 }
 0x210   :  { %v1319_v44 = vadd.f32 %v1318_v16, %v1317_v55  ;;  %v1323_v48 = vrot.slane %v1322_v36, 4  ;;  %v3412_v22 = vpop.eup %3411 }
 0x211   :  { %v3229_v11 = vpack.c.bf16 %v1246_v19, %v1242_v20  ;;  %v1334_v58 = vmul.f32 %v3412_v22, %v5992_v49  ;;  %v1338_v13 = vmul.f32 %v3412_v22, %v5993_v26  ;;  %v6006_v49 = vld [vmem:[#allocation8_spill] sm:$0xff]  ;;  %v6007_v26 = vld [vmem:[#allocation6_spill] sm:$0xff] }
 0x212   :  { %v1320_v27 = vrot.slane %v1319_v44, 1  ;;  %v1324_v18 = vadd.f32 %v1323_v48, %v1322_v36 }
 0x213   :  { %v3414_v28 = vpop.eup %3413  ;;  %3230 = vmatprep.subr.bf16.mxu1 %v3229_v11  ;;  %v3233_v4 = vpack.c.bf16 %v1338_v13, %v1334_v58  ;;  %v6004_v11 = vld [vmem:[#allocation5_spill] sm:$0xff] }
 0x214   :  { %v1321_v9 = vadd.f32 %v1320_v27, %v1319_v44  ;;  %v3416_v21 = vpop.eup %3415  ;;  %v1325_v59 = vrot.slane %v1324_v18, 2  ;;  %3232 = vmatpush1.bf16.msra.mxu1 %v3231_v42  ;;  %v4713_v55 = vmul.f32 %v3414_v28, %v4611_v0  ;;  %v4716_v30 = vmul.f32 %v3414_v28, %v4613_v24 }
 0x215   :  { %v1060_v16 = vmul.f32 %v3416_v21, %v4500_v38  ;;  %v1064_v1 = vmul.f32 %v3416_v21, %v4513_v12  ;;  %3234 = vmatprep.subr.bf16.mxu1 %v3233_v4 }
 0x216   :  { %5994 = vst [vmem:[#allocation27_spill] sm:$0xff] %v4713_v55  ;;  %5995 = vst [vmem:[#allocation17_spill] sm:$0xff] %v4716_v30  ;;  %3421 = vrcp.f32 %v1321_v9  ;;  %v3418_v36 = vpop.eup %3417  ;;  %v1326_v44 = vadd.f32 %v1325_v59, %v1324_v18  ;;  %v6005_v18 = vld [vmem:[#allocation9_spill] sm:$0xff]  ;;  %v6008_v59 = vld [vmem:[#allocation7_spill] sm:$0xff] }
 0x217   :  { %v3420_v20 = vpop.eup %3419  ;;  %v3253_v10 = vpack.c.bf16 %v1064_v1, %v1060_v16  ;;  %v4723_v0 = vmul.f32 %v3418_v36, %v4585_v23  ;;  %v4726_v24 = vmul.f32 %v3418_v36, %v4591_v34  ;;  %v6009_v16 = vld [vmem:[#allocation10_spill] sm:$0xff]  ;;  %v4912_v23 = vpop.f32.mrb[32].mxu1 }
 0x218   :  { %3236 = vmatpush1.bf16.msra.mxu1 %v3235_v6  ;;  %v4732_v38 = vmul.f32 %v3420_v20, %v4625_v35  ;;  %v4735_v12 = vmul.f32 %v3420_v20, %v4633_v40  ;;  %v1327_v50 = vrot.slane %v1326_v44, 1  ;;  %v4914_v43 = vpop.f32.mrb[33].mxu1 }
 0x219   :  { %5996 = vst [vmem:[#allocation18_spill] sm:$0xff] %v4723_v0  ;;  %5997 = vst [vmem:[#allocation24_spill] sm:$0xff] %v4726_v24  ;;  %3254 = vmatprep.subr.bf16.mxu1 %v3253_v10 }
 0x21a   :  { %5998 = vst [vmem:[#allocation25_spill] sm:$0xff] %v4732_v38  ;;  %5999 = vst [vmem:[#allocation31_spill] sm:$0xff] %v4735_v12  ;;  %v1328_v34 = vadd.f32 %v1327_v50, %v1326_v44 }
 0x21c   :  { %3423 = vrcp.f32 %v1328_v34  ;;  %v6010_v34 = vld [vmem:[#allocation13_spill] sm:$0xff] }
 0x220   :  { %v3422_v5 = vpop.eup %3421 }
 0x221   :  { %v4742_v41 = vmul.f32 %v3422_v5, %v4664_v32  ;;  %v4745_v35 = vmul.f32 %v3422_v5, %v4668_v61 }
 0x223   :  { %6000 = vst [vmem:[#allocation32_spill] sm:$0xff] %v4742_v41  ;;  %6001 = vst [vmem:[#allocation33_spill] sm:$0xff] %v4745_v35 }
 0x226   :  { %v3424_v37 = vpop.eup %3423 }
 0x227   :  { %v4749_v6 = vmul.f32 %v3424_v37, %v3406_v57  ;;  %v4751_v19 = vmul.f32 %v3424_v37, %v3408_v29  ;;  %v6011_v37 = vld [vmem:[#allocation14_spill] sm:$0xff] }
 0x229   :  { %6002 = vst [vmem:[#allocation34_spill] sm:$0xff] %v4749_v6  ;;  %6003 = vst [vmem:[#allocation35_spill] sm:$0xff] %v4751_v19 }
 0x253   :  { %v1351_v27 = vpop.xlane.xlu1 %1350 }
 0x254   :  { %v1373_v22 = vsub.f32 %v6004_v11, %v1351_v27  ;;  %v1374_v32 = vsub.f32 %v6005_v18, %v1351_v27 }
 0x256   :  { %v1389_v28 = vmul.f32 1.442695, %v1373_v22  ;;  %v1391_v9 = vmul.f32 1.442695, %v1374_v32 }
 0x258   :  { %3425 = vpow2.f32 %v1389_v28 }
 0x259   :  { %v1354_v61 = vpop.xlane.xlu0 %1353  ;;  %3427 = vpow2.f32 %v1391_v9 }
 0x25a   :  { %v1375_v58 = vsub.f32 %v6006_v49, %v1354_v61  ;;  %v1376_v57 = vsub.f32 %v6007_v26, %v1354_v61  ;;  %v6012_v49 = vld [vmem:[#allocation15_spill] sm:$0xff]  ;;  %v6013_v26 = vld [vmem:[#allocation16_spill] sm:$0xff] }
 0x25c   :  { %v1393_v13 = vmul.f32 1.442695, %v1375_v58  ;;  %v1395_v29 = vmul.f32 1.442695, %v1376_v57 }
 0x25d   :  { %v1357_v21 = vpop.xlane.xlu0 %1356 }
 0x25e   :  { %3429 = vpow2.f32 %v1393_v13  ;;  %v1377_v4 = vsub.f32 %v6008_v59, %v1357_v21  ;;  %v1378_v1 = vsub.f32 %v6009_v16, %v1357_v21  ;;  %v6014_v16 = vld [vmem:[#allocation19_spill] sm:$0xff] }
 0x25f   :  { %3431 = vpow2.f32 %v1395_v29 }
 0x260   :  { %v1397_v36 = vmul.f32 1.442695, %v1377_v4  ;;  %v1399_v44 = vmul.f32 1.442695, %v1378_v1  ;;  %v1360_v10 = vpop.xlane.xlu1 %1359 }
 0x261   :  { %v1379_v5 = vsub.f32 %v6010_v34, %v1360_v10  ;;  %v1380_v27 = vsub.f32 %v6011_v37, %v1360_v10 }
 0x262   :  { %3433 = vpow2.f32 %v1397_v36  ;;  %v4761_v20 = vpop.eup %3425  ;;  %v6015_v36 = vld [vmem:[#allocation20_spill] sm:$0xff] }
 0x263   :  { %3435 = vpow2.f32 %v1399_v44  ;;  %v4763_v50 = vpop.eup %3427  ;;  %v1401_v22 = vmul.f32 1.442695, %v1379_v5  ;;  %v1403_v18 = vmul.f32 1.442695, %v1380_v27 }
 0x264   :  { %v1421_v11 = vadd.f32 %v4763_v50, %v4761_v20 }
 0x265   :  { %3437 = vpow2.f32 %v1401_v22 }
 0x266   :  { %1422 = vadd.xlane.f32.xlu0 %v1421_v11  ;;  %3439 = vpow2.f32 %v1403_v18 }
 0x268   :  { %v4769_v32 = vpop.eup %3429  ;;  %v1363_v9 = vpop.xlane.xlu0 %1362 }
 0x269   :  { %v4771_v28 = vpop.eup %3431  ;;  %v1381_v58 = vsub.f32 %v6012_v49, %v1363_v9  ;;  %v1382_v57 = vsub.f32 %v6013_v26, %v1363_v9 }
 0x26a   :  { %v1424_v61 = vadd.f32 %v4771_v28, %v4769_v32 }
 0x26b   :  { %v1405_v21 = vmul.f32 1.442695, %v1381_v58  ;;  %v1407_v59 = vmul.f32 1.442695, %v1382_v57  ;;  %v1366_v4 = vpop.xlane.xlu1 %1365 }
 0x26c   :  { %v4777_v13 = vpop.eup %3433  ;;  %1425 = vadd.xlane.f32.xlu1 %v1424_v61  ;;  %v1383_v1 = vsub.f32 %v6014_v16, %v1366_v4  ;;  %v1384_v44 = vsub.f32 %v6015_v36, %v1366_v4 }
 0x26d   :  { %v4779_v29 = vpop.eup %3435  ;;  %3441 = vpow2.f32 %v1405_v21 }
 0x26e   :  { %v1427_v10 = vadd.f32 %v4779_v29, %v4777_v13  ;;  %3443 = vpow2.f32 %v1407_v59  ;;  %v1409_v34 = vmul.f32 1.442695, %v1383_v1  ;;  %v1411_v5 = vmul.f32 1.442695, %v1384_v44 }
 0x26f   :  { %v4785_v37 = vpop.eup %3437 }
 0x270   :  { %1428 = vadd.xlane.f32.xlu0 %v1427_v10  ;;  %3445 = vpow2.f32 %v1409_v34  ;;  %v4787_v27 = vpop.eup %3439 }
 0x271   :  { %3447 = vpow2.f32 %v1411_v5  ;;  %v1430_v11 = vadd.f32 %v4787_v27, %v4785_v37 }
 0x273   :  { %1431 = vadd.xlane.f32.xlu1 %v1430_v11 }
 0x277   :  { %v4791_v22 = vpop.eup %3441 }
 0x278   :  { %v4793_v18 = vpop.eup %3443 }
 0x279   :  { %v1433_v9 = vadd.f32 %v4793_v18, %v4791_v22 }
 0x27a   :  { %v4797_v61 = vpop.eup %3445 }
 0x27b   :  { %v4799_v49 = vpop.eup %3447  ;;  %1434 = vadd.xlane.f32.xlu0 %v1433_v9 }
 0x27c   :  { %v1436_v58 = vadd.f32 %v4799_v49, %v4797_v61 }
 0x27e   :  { %v1369_v26 = vpop.xlane.xlu0 %1368  ;;  %1437 = vadd.xlane.f32.xlu1 %v1436_v58 }
 0x27f   :  { %v1385_v57 = vsub.f32 %v4436_v51, %v1369_v26  ;;  %v1386_v21 = vsub.f32 %v4442_v2, %v1369_v26 }
 0x281   :  { %v1372_v59 = vpop.xlane.xlu1 %1371  ;;  %v1413_v1 = vmul.f32 1.442695, %v1385_v57  ;;  %v1415_v36 = vmul.f32 1.442695, %v1386_v21  ;;  %v6016_v21 = vld [vmem:[#allocation21_spill] sm:$0xff] }
 0x282   :  { %v1387_v4 = vsub.f32 %v4464_v3, %v1372_v59  ;;  %v1388_v16 = vsub.f32 %v4475_v46, %v1372_v59  ;;  %v1722_v44 = vpop.xlane.xlu0 %1721 }
 0x283   :  { %3449 = vpow2.f32 %v1413_v1  ;;  %v1744_v5 = vsub.f32 %v4407_v62, %v1722_v44  ;;  %v1745_v11 = vsub.f32 %v4413_v60, %v1722_v44 }
 0x284   :  { %v1417_v10 = vmul.f32 1.442695, %v1387_v4  ;;  %v1419_v34 = vmul.f32 1.442695, %v1388_v16  ;;  %3451 = vpow2.f32 %v1415_v36  ;;  %v6017_v4 = vld [vmem:[#allocation22_spill] sm:$0xff] }
 0x285   :  { %v1725_v9 = vpop.xlane.xlu1 %1724  ;;  %v1760_v58 = vmul.f32 1.442695, %v1744_v5  ;;  %v1762_v3 = vmul.f32 1.442695, %v1745_v11 }
 0x286   :  { %v1746_v51 = vsub.f32 %v4427_v52, %v1725_v9  ;;  %v1747_v2 = vsub.f32 %v4429_v15, %v1725_v9  ;;  %3453 = vpow2.f32 %v1417_v10  ;;  %v1728_v46 = vpop.xlane.xlu0 %1727 }
 0x287   :  { %3455 = vpow2.f32 %v1419_v34  ;;  %v1748_v59 = vsub.f32 %v6016_v21, %v1728_v46  ;;  %v1749_v62 = vsub.f32 %v6017_v4, %v1728_v46 }
 0x288   :  { %v1764_v26 = vmul.f32 1.442695, %v1746_v51  ;;  %v1766_v57 = vmul.f32 1.442695, %v1747_v2  ;;  %3457 = vpow2.f32 %v1760_v58  ;;  %v6018_v51 = vld [vmem:[#allocation28_spill] sm:$0xff] }
 0x289   :  { %v1731_v16 = vpop.xlane.xlu1 %1730  ;;  %3459 = vpow2.f32 %v1762_v3  ;;  %v1768_v1 = vmul.f32 1.442695, %v1748_v59  ;;  %v1770_v15 = vmul.f32 1.442695, %v1749_v62  ;;  %v6020_v59 = vld [vmem:[#allocation30_spill] sm:$0xff] }
 0x28a   :  { %v1750_v60 = vsub.f32 %v4481_v25, %v1731_v16  ;;  %v1751_v52 = vsub.f32 %v4487_v45, %v1731_v16  ;;  %3461 = vpow2.f32 %v1764_v26  ;;  %v1734_v36 = vpop.xlane.xlu0 %1733 }
 0x28b   :  { %3463 = vpow2.f32 %v1766_v57  ;;  %v1752_v34 = vsub.f32 %v4504_v31, %v1734_v36  ;;  %v1753_v5 = vsub.f32 %v4510_v33, %v1734_v36 }
 0x28c   :  { %v1772_v44 = vmul.f32 1.442695, %v1750_v60  ;;  %v1774_v10 = vmul.f32 1.442695, %v1751_v52  ;;  %3465 = vpow2.f32 %v1768_v1 }
 0x28d   :  { %v1737_v11 = vpop.xlane.xlu1 %1736  ;;  %3467 = vpow2.f32 %v1770_v15  ;;  %v4819_v2 = vpop.eup %3449  ;;  %v1776_v45 = vmul.f32 1.442695, %v1752_v34  ;;  %v1778_v58 = vmul.f32 1.442695, %v1753_v5 }
 0x28e   :  { %v1754_v9 = vsub.f32 %v4519_v14, %v1737_v11  ;;  %v1755_v25 = vsub.f32 %v6018_v51, %v1737_v11  ;;  %3469 = vpow2.f32 %v1772_v44  ;;  %v4821_v3 = vpop.eup %3451  ;;  %v1740_v57 = vpop.xlane.xlu0 %1739  ;;  %v6019_v14 = vld [vmem:[#allocation29_spill] sm:$0xff] }
 0x28f   :  { %3471 = vpow2.f32 %v1774_v10  ;;  %v1439_v33 = vadd.f32 %v4821_v3, %v4819_v2  ;;  %v1756_v21 = vsub.f32 %v6019_v14, %v1740_v57  ;;  %v1757_v4 = vsub.f32 %v6020_v59, %v1740_v57 }
 0x290   :  { %v1780_v46 = vmul.f32 1.442695, %v1754_v9  ;;  %v1782_v26 = vmul.f32 1.442695, %v1755_v25  ;;  %v4823_v31 = vpop.eup %3453  ;;  %3473 = vpow2.f32 %v1776_v45 }
 0x291   :  { %v1743_v62 = vpop.xlane.xlu1 %1742  ;;  %v4829_v16 = vpop.eup %3455  ;;  %3475 = vpow2.f32 %v1778_v58  ;;  %1440 = vadd.xlane.f32.xlu0 %v1439_v33  ;;  %v1784_v15 = vmul.f32 1.442695, %v1756_v21  ;;  %v1786_v36 = vmul.f32 1.442695, %v1757_v4 }
 0x292   :  { %v1758_v60 = vsub.f32 %v4556_v39, %v1743_v62  ;;  %v1759_v52 = vsub.f32 %v4567_v17, %v1743_v62  ;;  %v4833_v1 = vpop.eup %3457  ;;  %3477 = vpow2.f32 %v1780_v46  ;;  %v1442_v44 = vadd.f32 %v4829_v16, %v4823_v31 }
 0x293   :  { %v4837_v10 = vpop.eup %3459  ;;  %3479 = vpow2.f32 %v1782_v26 }
 0x294   :  { %v1788_v34 = vmul.f32 1.442695, %v1758_v60  ;;  %v1790_v5 = vmul.f32 1.442695, %v1759_v52  ;;  %v4839_v11 = vpop.eup %3461  ;;  %3481 = vpow2.f32 %v1784_v15  ;;  %v1792_v39 = vadd.f32 %v4837_v10, %v4833_v1  ;;  %1443 = vadd.xlane.f32.xlu1 %v1442_v44 }
 0x295   :  { %v4843_v17 = vpop.eup %3463  ;;  %3483 = vpow2.f32 %v1786_v36 }
 0x296   :  { %v4845_v9 = vpop.eup %3465  ;;  %1793 = vadd.xlane.f32.xlu0 %v1792_v39  ;;  %3485 = vpow2.f32 %v1788_v34  ;;  %v1795_v51 = vadd.f32 %v4843_v17, %v4839_v11  ;;  %v2955_v34 = vld [vmem:[%s5877_s6] sm:$0xff] }
 0x297   :  { %v4849_v25 = vpop.eup %3467  ;;  %3487 = vpow2.f32 %v1790_v5  ;;  %v4886_v5 = vpop.f32.mrb[32].mxu0 }
 0x298   :  { %v4851_v45 = vpop.eup %3469  ;;  %v1798_v58 = vadd.f32 %v4849_v25, %v4845_v9  ;;  %1796 = vadd.xlane.f32.xlu1 %v1795_v51  ;;  %v719_v39 = vpop.f32.mrb[33].mxu0 }
 0x299   :  { %v4855_v46 = vpop.eup %3471  ;;  %1533 = vmatprep.mubr.f32.mxu0 %v719_v39 }
 0x29a   :  { %v4857_v26 = vpop.eup %3473  ;;  %1799 = vadd.xlane.f32.xlu0 %v1798_v58  ;;  %v1801_v57 = vadd.f32 %v4855_v46, %v4851_v45 }
 0x29b   :  { %v4861_v33 = vpop.eup %3475 }
 0x29c   :  { %v4863_v14 = vpop.eup %3477  ;;  %v1804_v21 = vadd.f32 %v4861_v33, %v4857_v26  ;;  %1802 = vadd.xlane.f32.xlu1 %v1801_v57 }
 0x29d   :  { %v4867_v59 = vpop.eup %3479 }
 0x29e   :  { %v4869_v4 = vpop.eup %3481  ;;  %1805 = vadd.xlane.f32.xlu0 %v1804_v21  ;;  %v1807_v62 = vadd.f32 %v4867_v59, %v4863_v14 }
 0x29f   :  { %v4873_v60 = vpop.eup %3483 }
 0x2a0   :  { %v4875_v52 = vpop.eup %3485  ;;  %1808 = vadd.xlane.f32.xlu1 %v1807_v62  ;;  %v1810_v15 = vadd.f32 %v4873_v60, %v4869_v4 }
 0x2a1   :  { %v4879_v36 = vpop.eup %3487 }
 0x2a2   :  { %1811 = vadd.xlane.f32.xlu0 %v1810_v15  ;;  %v1813_v44 = vadd.f32 %v4879_v36, %v4875_v52 }
 0x2a4   :  { %1814 = vadd.xlane.f32.xlu1 %v1813_v44 }
 0x2ac   :  { %v4888_v51 = vpop.f32.mrb[34].mxu0  ;;  %v4916_v42 = vpop.f32.mrb[34].mxu1 }
 0x2ad   :  { %v4890_v58 = vpop.f32.mrb[35].mxu0  ;;  %v4920_v41 = vpop.f32.mrb[35].mxu1 }
 0x2b2   :  { %v4892_v57 = vpop.f32.mrb[36].mxu0  ;;  %v4924_v6 = vpop.f32.mrb[36].mxu1 }
 0x2b3   :  { %v4894_v21 = vpop.f32.mrb[37].mxu0  ;;  %6021 = vst [vmem:[#allocation5_spill] sm:$0xff] %v4924_v6  ;;  %v4926_v19 = vpop.f32.mrb[37].mxu1 }
 0x2b4   :  { %6022 = vst [vmem:[#allocation9_spill] sm:$0xff] %v4926_v19 }
 0x2b6   :  { %v4896_v62 = vpop.f32.mrb[38].mxu0  ;;  %v4928_v55 = vpop.f32.mrb[38].mxu1 }
 0x2b7   :  { %v4898_v15 = vpop.f32.mrb[39].mxu0  ;;  %6023 = vst [vmem:[#allocation8_spill] sm:$0xff] %v4928_v55  ;;  %v4930_v30 = vpop.f32.mrb[39].mxu1 }
 0x2b8   :  { %2958 = vperm.xlu0 %3323, %v2955_v34   ;;  %6024 = vst [vmem:[#allocation6_spill] sm:$0xff] %v4930_v30 }
 0x2bb   :  { %v4900_v44 = vpop.f32.mrb[40].mxu0  ;;  %v4932_v38 = vpop.f32.mrb[40].mxu1 }
 0x2bc   :  { %v4902_v40 = vpop.f32.mrb[41].mxu0  ;;  %6025 = vst [vmem:[#allocation7_spill] sm:$0xff] %v4932_v38  ;;  %v4934_v12 = vpop.f32.mrb[41].mxu1 }
 0x2bd   :  { %6026 = vst [vmem:[#allocation10_spill] sm:$0xff] %v4934_v12 }
 0x2c0   :  { %v4904_v48 = vpop.f32.mrb[42].mxu0  ;;  %v4936_v8 = vpop.f32.mrb[42].mxu1 }
 0x2c1   :  { %v4906_v34 = vpop.f32.mrb[43].mxu0  ;;  %6027 = vst [vmem:[#allocation13_spill] sm:$0xff] %v4936_v8  ;;  %v4938_v7 = vpop.f32.mrb[43].mxu1 }
 0x2c2   :  { %6028 = vst [vmem:[#allocation14_spill] sm:$0xff] %v4938_v7 }
 0x2c4   :  { %v4908_v39 = vpop.f32.mrb[44].mxu0 }
 0x2c5   :  { %v4910_v54 = vpop.f32.mrb[45].mxu0  ;;  %v4940_v0 = vpop.f32.mrb[44].mxu1 }
 0x2c6   :  { %6029 = vst [vmem:[#allocation15_spill] sm:$0xff] %v4940_v0  ;;  %v4942_v24 = vpop.f32.mrb[45].mxu1 }
 0x2c7   :  { %6030 = vst [vmem:[#allocation16_spill] sm:$0xff] %v4942_v24 }
 0x2d8   :  { %v4918_v56 = vpop.f32.mrb[46].mxu0  ;;  %v4944_v47 = vpop.f32.mrb[46].mxu1 }
 0x2d9   :  { %v4922_v35 = vpop.f32.mrb[47].mxu0  ;;  %6031 = vst [vmem:[#allocation19_spill] sm:$0xff] %v4944_v47  ;;  %v4946_v53 = vpop.f32.mrb[47].mxu1 }
 0x2da   :  { %6032 = vst [vmem:[#allocation20_spill] sm:$0xff] %v4946_v53 }
 0x2f3   :  { %v1423_v63 = vpop.xlane.xlu0 %1422 }
 0x2f4   :  { %3489 = vrcp.f32 %v1423_v63 }
 0x2f9   :  { %v1426_v55 = vpop.xlane.xlu1 %1425 }
 0x2fa   :  { %3491 = vrcp.f32 %v1426_v55 }
 0x2fd   :  { %v1429_v30 = vpop.xlane.xlu0 %1428 }
 0x2fe   :  { %v3490_v38 = vpop.eup %3489  ;;  %3493 = vrcp.f32 %v1429_v30 }
 0x2ff   :  { %v1454_v8 = vmul.f32 %v3490_v38, %v4763_v50  ;;  %v1453_v24 = vmul.f32 %v3490_v38, %v4761_v20 }
 0x300   :  { %v1432_v12 = vpop.xlane.xlu1 %1431 }
 0x301   :  { %3495 = vrcp.f32 %v1432_v12 }
 0x304   :  { %v3492_v6 = vpop.eup %3491 }
 0x305   :  { %v1456_v0 = vmul.f32 %v3492_v6, %v4771_v28  ;;  %v1455_v47 = vmul.f32 %v3492_v6, %v4769_v32 }
 0x307   :  { %v3205_v7 = vpack.c.bf16 %v1456_v0, %v1454_v8  ;;  %v3207_v53 = vpack.c.bf16 %v1455_v47, %v1453_v24 }
 0x308   :  { %v1435_v63 = vpop.xlane.xlu0 %1434  ;;  %v3494_v55 = vpop.eup %3493 }
 0x309   :  { %3206 = vmatprep.subr.bf16.mxu0 %v3205_v7  ;;  %3497 = vrcp.f32 %v1435_v63  ;;  %v1458_v12 = vmul.f32 %v3494_v55, %v4779_v29  ;;  %v1457_v28 = vmul.f32 %v3494_v55, %v4777_v13 }
 0x30a   :  { %3208 = vmatpush1.bf16.xpose.msra.mxu0 %v3207_v53 }
 0x30b   :  { %v1438_v19 = vpop.xlane.xlu1 %1437  ;;  %v3496_v30 = vpop.eup %3495 }
 0x30c   :  { %3499 = vrcp.f32 %v1438_v19  ;;  %v1460_v50 = vmul.f32 %v3496_v30, %v4787_v27  ;;  %v1459_v38 = vmul.f32 %v3496_v30, %v4785_v37 }
 0x30e   :  { %v3209_v20 = vpack.c.bf16 %v1460_v50, %v1458_v12  ;;  %v3211_v6 = vpack.c.bf16 %v1459_v38, %v1457_v28 }
 0x310   :  { %3210 = vmatprep.subr.bf16.mxu0 %v3209_v20 }
 0x312   :  { %3212 = vmatpush1.bf16.xpose.msra.mxu0 %v3211_v6 }
 0x313   :  { %v3498_v47 = vpop.eup %3497 }
 0x314   :  { %v1462_v53 = vmul.f32 %v3498_v47, %v4793_v18  ;;  %v1461_v0 = vmul.f32 %v3498_v47, %v4791_v22 }
 0x316   :  { %v3500_v8 = vpop.eup %3499 }
 0x317   :  { %v1464_v7 = vmul.f32 %v3500_v8, %v4799_v49  ;;  %v1463_v24 = vmul.f32 %v3500_v8, %v4797_v61 }
 0x319   :  { %v3213_v19 = vpack.c.bf16 %v1464_v7, %v1462_v53  ;;  %v3215_v32 = vpack.c.bf16 %v1463_v24, %v1461_v0 }
 0x31b   :  { %3214 = vmatprep.subr.bf16.mxu0 %v3213_v19 }
 0x31c   :  { %3216 = vmatpush1.bf16.xpose.msra.mxu0 %v3215_v32 }
 0x31e   :  { %v1441_v13 = vpop.xlane.xlu0 %1440 }
 0x31f   :  { %3501 = vrcp.f32 %v1441_v13 }
 0x321   :  { %v1444_v29 = vpop.xlane.xlu1 %1443 }
 0x322   :  { %3503 = vrcp.f32 %v1444_v29 }
 0x323   :  { %v1794_v37 = vpop.xlane.xlu0 %1793 }
 0x324   :  { %3505 = vrcp.f32 %v1794_v37 }
 0x325   :  { %v1797_v27 = vpop.xlane.xlu1 %1796 }
 0x326   :  { %3507 = vrcp.f32 %v1797_v27 }
 0x327   :  { %v1800_v63 = vpop.xlane.xlu0 %1799 }
 0x328   :  { %3509 = vrcp.f32 %v1800_v63  ;;  %v6046_v63 = vld [vmem:[#allocation11_spill] sm:$0xff] }
 0x329   :  { %v1803_v18 = vpop.xlane.xlu1 %1802  ;;  %v3502_v49 = vpop.eup %3501 }
 0x32a   :  { %3511 = vrcp.f32 %v1803_v18  ;;  %v1466_v61 = vmul.f32 %v3502_v49, %v4821_v3  ;;  %v1465_v12 = vmul.f32 %v3502_v49, %v4819_v2  ;;  %v6047_v18 = vld [vmem:[#allocation23_spill] sm:$0xff] }
 0x32b   :  { %v1806_v38 = vpop.xlane.xlu0 %1805  ;;  %v6048_v49 = vpack.c.bf16 %v6046_v63, %v6047_v18 }
 0x32c   :  { %v3504_v22 = vpop.eup %3503 }
 0x32d   :  { %v1809_v55 = vpop.xlane.xlu1 %1808  ;;  %v1468_v30 = vmul.f32 %v3504_v22, %v4829_v16  ;;  %v1467_v50 = vmul.f32 %v3504_v22, %v4823_v31 }
 0x32e   :  { %v3506_v28 = vpop.eup %3505  ;;  %3513 = vrcp.f32 %v1809_v55 }
 0x32f   :  { %v3217_v20 = vpack.c.bf16 %v1468_v30, %v1466_v61  ;;  %v3219_v6 = vpack.c.bf16 %v1467_v50, %v1465_v12  ;;  %v1825_v8 = vmul.f32 %v3506_v28, %v4837_v10  ;;  %3515 = vrcp.f32 %v1806_v38  ;;  %v1812_v19 = vpop.xlane.xlu0 %1811  ;;  %v6049_v61 = vld [vmem:[#allocation24_spill] sm:$0xff]  ;;  %v6050_v30 = vld [vmem:[#allocation18_spill] sm:$0xff] }
 0x330   :  { %v3508_v47 = vpop.eup %3507  ;;  %v1824_v24 = vmul.f32 %v3506_v28, %v4833_v1  ;;  %v6051_v12 = vpack.c.bf16 %v6049_v61, %v6050_v30  ;;  %v1343_v28 = vld [vmem:[%s5875_s4 + $0x10] sm:$0xff]  ;;  %v6052_v38 = vld [vmem:[#allocation26_spill] sm:$0xff] }
 0x331   :  { %3218 = vmatprep.subr.bf16.mxu0 %v3217_v20  ;;  %v1827_v53 = vmul.f32 %v3508_v47, %v4843_v17  ;;  %v1826_v2 = vmul.f32 %v3508_v47, %v4839_v11  ;;  %v1815_v0 = vpop.xlane.xlu1 %1814  ;;  %v6053_v20 = vld [vmem:[#allocation12_spill] sm:$0xff] }
 0x332   :  { %3220 = vmatpush1.bf16.xpose.msra.mxu0 %v3219_v6  ;;  %v3510_v3 = vpop.eup %3509  ;;  %3517 = vrcp.f32 %v1815_v0  ;;  %v6054_v6 = vpack.c.bf16 %v6052_v38, %v6053_v20  ;;  %v6058_v0 = vld [vmem:[#allocation17_spill] sm:$0xff] }
 0x333   :  { %v3237_v7 = vpack.c.bf16 %v1827_v53, %v1825_v8  ;;  %v1829_v32 = vmul.f32 %v3510_v3, %v4849_v25  ;;  %v3239_v10 = vpack.c.bf16 %v1826_v2, %v1824_v24  ;;  %3519 = vrcp.f32 %v1812_v19  ;;  %v6055_v53 = vld [vmem:[#allocation31_spill] sm:$0xff]  ;;  %v1344_v2 = vld [vmem:[%s5875_s4 + $0x18] sm:$0xff] }
 0x334   :  { %v3512_v16 = vpop.eup %3511  ;;  %v1828_v25 = vmul.f32 %v3510_v3, %v4845_v9  ;;  %v6056_v3 = vld [vmem:[#allocation25_spill] sm:$0xff] }
 0x335   :  { %3238 = vmatprep.subr.bf16.mxu0 %v3237_v7  ;;  %v1831_v31 = vmul.f32 %v3512_v16, %v4855_v46  ;;  %v1830_v29 = vmul.f32 %v3512_v16, %v4851_v45  ;;  %v6057_v7 = vpack.c.bf16 %v6055_v53, %v6056_v3 }
 0x337   :  { %v3241_v17 = vpack.c.bf16 %v1831_v31, %v1829_v32  ;;  %v6059_v31 = vld [vmem:[#allocation27_spill] sm:$0xff] }
 0x338   :  { %v3514_v13 = vpop.eup %3513  ;;  %v6060_v24 = vpack.c.bf16 %v6058_v0, %v6059_v31 }
 0x339   :  { %1534 = vmatmul.mubr.f32.vlgmr.msra.gmra.mrb[48].mxu0 %v4886_v5  ;;  %v3516_v11 = vpop.eup %3515  ;;  %v1835_v1 = vmul.f32 %v3514_v13, %v4867_v59  ;;  %v3243_v5 = vpack.c.bf16 %v1830_v29, %v1828_v25  ;;  %v1345_v29 = vld [vmem:[%s5875_s4 + $0x20] sm:$0xff]  ;;  %v6065_v25 = vld [vmem:[#allocation32_spill] sm:$0xff] }
 0x33a   :  { %3240 = vmatpush1.bf16.xpose.msra.mxu0 %v3239_v10  ;;  %1538 = vmatprep.mubr.f32.mxu0 %v4890_v58  ;;  %v1833_v46 = vmul.f32 %v3516_v11, %v4861_v33  ;;  %v1832_v9 = vmul.f32 %v3516_v11, %v4857_v26  ;;  %v6035_v26 = vld [vmem:[#allocation6_spill] sm:$0xff]  ;;  %v6061_v10 = vld [vmem:[#allocation35_spill] sm:$0xff] }
 0x33b   :  { %3242 = vmatprep.subr.bf16.mxu0 %v3241_v17  ;;  %v6062_v17 = vld [vmem:[#allocation34_spill] sm:$0xff] }
 0x33c   :  { %v3245_v37 = vpack.c.bf16 %v1835_v1, %v1833_v46  ;;  %v3518_v27 = vpop.eup %3517  ;;  %v6064_v1 = vld [vmem:[#allocation33_spill] sm:$0xff] }
 0x33d   :  { %1539 = vmatmul.mubr.f32.gmra.mrb[50].mxu0 %v4888_v51  ;;  %v3520_v45 = vpop.eup %3519  ;;  %v1834_v51 = vmul.f32 %v3514_v13, %v4863_v14  ;;  %v1839_v59 = vmul.f32 %v3518_v27, %v4879_v36  ;;  %v1838_v14 = vmul.f32 %v3518_v27, %v4875_v52  ;;  %v6044_v52 = vld [vmem:[#allocation19_spill] sm:$0xff]  ;;  %v6063_v13 = vpack.c.bf16 %v6061_v10, %v6062_v17 }
 0x33e   :  { %1543 = vmatprep.mubr.f32.mxu0 %v4894_v21  ;;  %v1837_v33 = vmul.f32 %v3520_v45, %v4873_v60  ;;  %v6037_v60 = vld [vmem:[#allocation10_spill] sm:$0xff]  ;;  %v6045_v21 = vmov 0.0   ;;  %v6066_v46 = vpack.c.bf16 %v6064_v1, %v6065_v25 }
 0x33f   :  { %v3247_v58 = vpack.c.bf16 %v1834_v51, %v1832_v9 }
 0x341   :  { %1544 = vmatmul.mubr.f32.gmra.mrb[52].mxu0 %v4892_v57  ;;  %v3249_v57 = vpack.c.bf16 %v1839_v59, %v1837_v33  ;;  %v1347_v33 = vld [vmem:[%s5875_s4 + $0x30] sm:$0xff] }
 0x342   :  { %3244 = vmatpush1.bf16.xpose.msra.mxu0 %v3243_v5  ;;  %1548 = vmatprep.mubr.f32.mxu0 %v4898_v15 }
 0x343   :  { %3246 = vmatprep.subr.bf16.mxu0 %v3245_v37 }
 0x345   :  { %1549 = vmatmul.mubr.f32.gmra.mrb[54].mxu0 %v4896_v62  ;;  %v1341_v62 = vld [vmem:[%s5875_s4] sm:$0xff] }
 0x346   :  { %1553 = vmatprep.mubr.f32.mxu0 %v4902_v40  ;;  %v1836_v40 = vmul.f32 %v3520_v45, %v4869_v4  ;;  %v6036_v4 = vld [vmem:[#allocation8_spill] sm:$0xff]  ;;  %v1346_v45 = vld [vmem:[%s5875_s4 + $0x28] sm:$0xff] }
 0x348   :  { %v3251_v36 = vpack.c.bf16 %v1838_v14, %v1836_v40  ;;  %v1348_v40 = vld [vmem:[%s5875_s4 + $0x38] sm:$0xff] }
 0x349   :  { %1554 = vmatmul.mubr.f32.gmra.mrb[56].mxu0 %v4900_v44 }
 0x34a   :  { %3248 = vmatpush1.bf16.xpose.msra.mxu0 %v3247_v58  ;;  %1558 = vmatprep.mubr.f32.mxu0 %v4906_v34 }
 0x34b   :  { %3250 = vmatprep.subr.bf16.mxu0 %v3249_v57 }
 0x34d   :  { %1559 = vmatmul.mubr.f32.gmra.mrb[58].mxu0 %v4904_v48  ;;  %v6033_v48 = vld [vmem:[#allocation9_spill] sm:$0xff] }
 0x34e   :  { %1563 = vmatprep.mubr.f32.mxu0 %v4910_v54  ;;  %v6034_v54 = vld [vmem:[#allocation5_spill] sm:$0xff] }
 0x351   :  { %1564 = vmatmul.mubr.f32.gmra.mrb[60].mxu0 %v4908_v39  ;;  %v1342_v39 = vld [vmem:[%s5875_s4 + $0x8] sm:$0xff] }
 0x352   :  { %3252 = vmatpush1.bf16.xpose.msra.mxu0 %v3251_v36  ;;  %1568 = vmatprep.mubr.f32.mxu0 %v4922_v35  ;;  %v6038_v35 = vld [vmem:[#allocation7_spill] sm:$0xff] }
 0x355   :  { %1569 = vmatmul.mubr.f32.gmra.mrb[62].mxu0 %v4918_v56  ;;  %v6039_v56 = vld [vmem:[#allocation14_spill] sm:$0xff] }
 0x356   :  { %1904 = vmatprep.mubr.f32.mxu0 %v4914_v43  ;;  %v6040_v43 = vld [vmem:[#allocation13_spill] sm:$0xff] }
 0x359   :  { %1905 = vmatmul.mubr.f32.vlgmr.msra.gmra.mrb[64].mxu0 %v4912_v23  ;;  %v6041_v23 = vld [vmem:[#allocation16_spill] sm:$0xff] }
 0x35a   :  { %1909 = vmatprep.mubr.f32.mxu0 %v4920_v41  ;;  %v6042_v41 = vld [vmem:[#allocation15_spill] sm:$0xff] }
 0x35d   :  { %1910 = vmatmul.mubr.f32.gmra.mrb[66].mxu0 %v4916_v42  ;;  %v6043_v42 = vld [vmem:[#allocation20_spill] sm:$0xff] }
 0x35e   :  { %1914 = vmatprep.mubr.f32.mxu0 %v6033_v48 }
 0x361   :  { %1915 = vmatmul.mubr.f32.gmra.mrb[68].mxu0 %v6034_v54 }
 0x362   :  { %1919 = vmatprep.mubr.f32.mxu0 %v6035_v26 }
 0x365   :  { %1920 = vmatmul.mubr.f32.gmra.mrb[70].mxu0 %v6036_v4 }
 0x366   :  { %1924 = vmatprep.mubr.f32.mxu0 %v6037_v60 }
 0x369   :  { %1925 = vmatmul.mubr.f32.gmra.mrb[72].mxu0 %v6038_v35 }
 0x36a   :  { %1929 = vmatprep.mubr.f32.mxu0 %v6039_v56 }
 0x36d   :  { %1930 = vmatmul.mubr.f32.gmra.mrb[74].mxu0 %v6040_v43 }
 0x36e   :  { %1934 = vmatprep.mubr.f32.mxu0 %v6041_v23 }
 0x371   :  { %1935 = vmatmul.mubr.f32.gmra.mrb[76].mxu0 %v6042_v41 }
 0x372   :  { %1939 = vmatprep.mubr.f32.mxu0 %v6043_v42 }
 0x375   :  { %1940 = vmatmul.mubr.f32.gmra.mrb[78].mxu0 %v6044_v52 }
 0x376   :  { %3028 = vmatprep.mubr.f32.mxu0 %v6045_v21 }
 0x40c   :  { %v1535_v15 = vpop.f32.mrb[48].mxu0 }
 0x40d   :  { %v1574_v44 = vmul.f32 %v1535_v15, %v1341_v62  ;;  %v1537_v34 = vpop.f32.mrb[49].mxu0 }
 0x40f   :  { %3179 = vmatmul.mubr.msk.f32.vlgmr.msra.gmra.mrb[48].mxu1 %vm1582_vm9, %v1574_v44 }
 0x410   :  { %3256 = vmatpush1.bf16.msra.mxu1 %v6048_v49  ;;  %v1540_v22 = vpop.f32.mrb[50].mxu0  ;;  %1677 = vmatprep.mubr.f32.mxu1 %v6045_v21 }
 0x411   :  { %v1575_v55 = vmul.f32 %v1540_v22, %v1342_v39  ;;  %3258 = vmatprep.subr.bf16.mxu1 %v6051_v12  ;;  %v1542_v50 = vpop.f32.mrb[51].mxu0 }
 0x413   :  { %3180 = vmatmul.mubr.msk.f32.gmra.mrb[50].mxu1 %vm1582_vm9, %v1575_v55 }
 0x414   :  { %3260 = vmatpush1.bf16.msra.mxu1 %v6054_v6  ;;  %v1545_v47 = vpop.f32.mrb[52].mxu0  ;;  %1683 = vmatprep.mubr.f32.mxu1 %v6045_v21 }
 0x415   :  { %v1576_v8 = vmul.f32 %v1545_v47, %v1343_v28  ;;  %3262 = vmatprep.subr.bf16.mxu1 %v6057_v7  ;;  %v1547_v16 = vpop.f32.mrb[53].mxu0 }
 0x417   :  { %3181 = vmatmul.mubr.msk.f32.gmra.mrb[52].mxu1 %vm1582_vm9, %v1576_v8 }
 0x418   :  { %3264 = vmatpush1.bf16.msra.mxu1 %v6060_v24  ;;  %v1550_v19 = vpop.f32.mrb[54].mxu0  ;;  %1689 = vmatprep.mubr.f32.mxu1 %v6045_v21 }
 0x419   :  { %v1577_v32 = vmul.f32 %v1550_v19, %v1344_v2  ;;  %3266 = vmatprep.subr.bf16.mxu1 %v6063_v13  ;;  %v1552_v11 = vpop.f32.mrb[55].mxu0 }
 0x41b   :  { %3182 = vmatmul.mubr.msk.f32.gmra.mrb[54].mxu1 %vm1582_vm9, %v1577_v32 }
 0x41c   :  { %3268 = vmatpush1.bf16.msra.mxu1 %v6066_v46  ;;  %v1555_v5 = vpop.f32.mrb[56].mxu0  ;;  %1695 = vmatprep.mubr.f32.mxu1 %v6045_v21 }
 0x41d   :  { %v1578_v37 = vmul.f32 %v1555_v5, %v1345_v29  ;;  %v1557_v27 = vpop.f32.mrb[57].mxu0 }
 0x41f   :  { %3183 = vmatmul.mubr.msk.f32.gmra.mrb[56].mxu1 %vm1582_vm9, %v1578_v37 }
 0x420   :  { %v1560_v51 = vpop.f32.mrb[58].mxu0  ;;  %1701 = vmatprep.mubr.f32.mxu1 %v6045_v21 }
 0x421   :  { %v1579_v59 = vmul.f32 %v1560_v51, %v1346_v45  ;;  %v1562_v9 = vpop.f32.mrb[59].mxu0 }
 0x423   :  { %3184 = vmatmul.mubr.msk.f32.gmra.mrb[58].mxu1 %vm1582_vm9, %v1579_v59 }
 0x424   :  { %v1565_v58 = vpop.f32.mrb[60].mxu0  ;;  %1707 = vmatprep.mubr.f32.mxu1 %v6045_v21 }
 0x425   :  { %v1580_v57 = vmul.f32 %v1565_v58, %v1347_v33  ;;  %v1567_v14 = vpop.f32.mrb[61].mxu0 }
 0x427   :  { %3185 = vmatmul.mubr.msk.f32.gmra.mrb[60].mxu1 %vm1582_vm9, %v1580_v57 }
 0x428   :  { %v1570_v36 = vpop.f32.mrb[62].mxu0  ;;  %1713 = vmatprep.mubr.f32.mxu1 %v6045_v21 }
 0x429   :  { %v1581_v48 = vmul.f32 %v1570_v36, %v1348_v40  ;;  %v1572_v54 = vpop.f32.mrb[63].mxu0 }
 0x42b   :  { %3186 = vmatmul.mubr.msk.f32.gmra.mrb[62].mxu1 %vm1582_vm9, %v1581_v48 }
 0x42c   :  { %v1906_v26 = vpop.f32.mrb[64].mxu0  ;;  %2041 = vmatprep.mubr.f32.mxu1 %v6045_v21 }
 0x42d   :  { %v1945_v4 = vmul.f32 %v1906_v26, %v1341_v62  ;;  %v1908_v60 = vpop.f32.mrb[65].mxu0 }
 0x42f   :  { %3187 = vmatmul.mubr.msk.f32.vlgmr.msra.gmra.mrb[64].mxu1 %vm1582_vm9, %v1945_v4 }
 0x430   :  { %v1911_v35 = vpop.f32.mrb[66].mxu0  ;;  %2047 = vmatprep.mubr.f32.mxu1 %v6045_v21 }
 0x431   :  { %v1946_v56 = vmul.f32 %v1911_v35, %v1342_v39  ;;  %v1913_v43 = vpop.f32.mrb[67].mxu0 }
 0x433   :  { %3188 = vmatmul.mubr.msk.f32.gmra.mrb[66].mxu1 %vm1582_vm9, %v1946_v56 }
 0x434   :  { %v1916_v23 = vpop.f32.mrb[68].mxu0  ;;  %2053 = vmatprep.mubr.f32.mxu1 %v6045_v21 }
 0x435   :  { %v1947_v41 = vmul.f32 %v1916_v23, %v1343_v28  ;;  %v1918_v42 = vpop.f32.mrb[69].mxu0 }
 0x437   :  { %3189 = vmatmul.mubr.msk.f32.gmra.mrb[68].mxu1 %vm1582_vm9, %v1947_v41 }
 0x438   :  { %v1921_v52 = vpop.f32.mrb[70].mxu0  ;;  %2059 = vmatprep.mubr.f32.mxu1 %v6045_v21 }
 0x439   :  { %v1948_v62 = vmul.f32 %v1921_v52, %v1344_v2  ;;  %v1923_v15 = vpop.f32.mrb[71].mxu0 }
 0x43b   :  { %3190 = vmatmul.mubr.msk.f32.gmra.mrb[70].mxu1 %vm1582_vm9, %v1948_v62 }
 0x43c   :  { %v1926_v44 = vpop.f32.mrb[72].mxu0  ;;  %2065 = vmatprep.mubr.f32.mxu1 %v6045_v21 }
 0x43d   :  { %v1949_v34 = vmul.f32 %v1926_v44, %v1345_v29  ;;  %v1928_v39 = vpop.f32.mrb[73].mxu0 }
 0x43f   :  { %3191 = vmatmul.mubr.msk.f32.gmra.mrb[72].mxu1 %vm1582_vm9, %v1949_v34 }
 0x440   :  { %v1931_v63 = vpop.f32.mrb[74].mxu0  ;;  %2071 = vmatprep.mubr.f32.mxu1 %v6045_v21 }
 0x441   :  { %v1950_v18 = vmul.f32 %v1931_v63, %v1346_v45  ;;  %v1933_v49 = vpop.f32.mrb[75].mxu0 }
 0x443   :  { %3192 = vmatmul.mubr.msk.f32.gmra.mrb[74].mxu1 %vm1582_vm9, %v1950_v18 }
 0x444   :  { %v1936_v22 = vpop.f32.mrb[76].mxu0  ;;  %2077 = vmatprep.mubr.f32.mxu1 %v6045_v21 }
 0x445   :  { %v1951_v55 = vmul.f32 %v1936_v22, %v1347_v33  ;;  %v1938_v61 = vpop.f32.mrb[77].mxu0 }
 0x447   :  { %3193 = vmatmul.mubr.msk.f32.gmra.mrb[76].mxu1 %vm1582_vm9, %v1951_v55 }
 0x448   :  { %v1941_v30 = vpop.f32.mrb[78].mxu0  ;;  %2083 = vmatprep.mubr.f32.mxu1 %v6045_v21 }
 0x449   :  { %v1952_v12 = vmul.f32 %v1941_v30, %v1348_v40  ;;  %v1943_v50 = vpop.f32.mrb[79].mxu0 }
 0x44b   :  { %3194 = vmatmul.mubr.msk.f32.gmra.mrb[78].mxu1 %vm1582_vm9, %v1952_v12 }
 0x44c   :  { %3099 = vmatprep.mubr.f32.mxu1 %v6045_v21 }
 0x4e2   :  { %v5089_v28 = vpop.f32.mrb[48].mxu1 }
 0x4e3   :  { %v5092_v38 = vmul.f32 0.70710677, %v5089_v28  ;;  %v5094_v20 = vpop.f32.mrb[49].mxu1 }
 0x4e4   :  { %v5097_v6 = vmul.f32 0.70710677, %v5094_v20 }
 0x4e5   :  { %v2154_v47 = vand.u32 2147483647, %v5092_v38  ;;  %vm2794_vm10 = vcmp.lt.f32.partialorder %v5092_v38, 0.0 }
 0x4e6   :  { %v2155_v8 = vand.u32 2147483647, %v5097_v6  ;;  %v5101_v53 = vpop.f32.mrb[50].mxu1  ;;  %vm2795_vm13 = vcmp.lt.f32.partialorder %v5097_v6, 0.0 }
 0x4e7   :  { %v2186_v3 = vmul.f32 0.3275911, %v2154_v47  ;;  %v5104_v7 = vmul.f32 0.70710677, %v5101_v53  ;;  %v5106_v21 = vpop.f32.mrb[51].mxu1  ;;  %v2602_v27 = vmul.f32 %v2154_v47, %v2154_v47 }
 0x4e8   :  { %v2187_v16 = vmul.f32 0.3275911, %v2155_v8  ;;  %v5109_v2 = vmul.f32 0.70710677, %v5106_v21  ;;  %v2603_v56 = vmul.f32 %v2155_v8, %v2155_v8 }
 0x4e9   :  { %v2218_v0 = vadd.f32 1.0, %v2186_v3  ;;  %v2158_v31 = vand.u32 2147483647, %v5104_v7  ;;  %v2634_v54 = vsub.f32 0.0, %v2602_v27  ;;  %vm2798_vm11 = vcmp.lt.f32.partialorder %v5104_v7, 0.0 }
 0x4ea   :  { %v2219_v24 = vadd.f32 1.0, %v2187_v16  ;;  %v2159_v19 = vand.u32 2147483647, %v5109_v2  ;;  %v5113_v32 = vpop.f32.mrb[52].mxu1  ;;  %v2635_v50 = vsub.f32 0.0, %v2603_v56  ;;  %vm2799_vm15 = vcmp.lt.f32.partialorder %v5109_v2, 0.0 }
 0x4eb   :  { %3521 = vrcp.f32 %v2218_v0  ;;  %v2190_v10 = vmul.f32 0.3275911, %v2158_v31  ;;  %v5115_v17 = vpop.f32.mrb[53].mxu1  ;;  %v5118_v1 = vmul.f32 0.70710677, %v5113_v32  ;;  %v2606_v33 = vmul.f32 %v2158_v31, %v2158_v31 }
 0x4ec   :  { %3523 = vrcp.f32 %v2219_v24  ;;  %v2191_v13 = vmul.f32 0.3275911, %v2159_v19  ;;  %v5123_v46 = vmul.f32 0.70710677, %v5115_v17  ;;  %v2607_v42 = vmul.f32 %v2159_v19, %v2159_v19 }
 0x4ed   :  { %v2222_v11 = vadd.f32 1.0, %v2190_v10  ;;  %v2162_v37 = vand.u32 2147483647, %v5118_v1  ;;  %v2638_v41 = vsub.f32 0.0, %v2606_v33  ;;  %v2666_v63 = vmul.f32 1.442695, %v2634_v54 }
 0x4ee   :  { %v2223_v29 = vadd.f32 1.0, %v2191_v13  ;;  %v5120_v25 = vpop.f32.mrb[54].mxu1  ;;  %v5129_v45 = vand.u32 2147483647, %v5123_v46  ;;  %v2639_v8 = vsub.f32 0.0, %v2607_v42  ;;  %vm2802_vm12 = vcmp.lt.f32.partialorder %v5118_v1, 0.0 }
 0x4ef   :  { %3525 = vrcp.f32 %v2222_v11  ;;  %v5125_v5 = vpop.f32.mrb[55].mxu1  ;;  %v2194_v51 = vmul.f32 0.3275911, %v2162_v37  ;;  %v5132_v59 = vmul.f32 0.70710677, %v5120_v25  ;;  %v2610_v49 = vmul.f32 %v2162_v37, %v2162_v37 }
 0x4f0   :  { %3527 = vrcp.f32 %v2223_v29  ;;  %v2195_v58 = vmul.f32 0.3275911, %v5129_v45  ;;  %v5138_v57 = vmul.f32 0.70710677, %v5125_v5  ;;  %v2674_v31 = vmul.f32 1.442695, %v2638_v41 }
 0x4f1   :  { %v2226_v40 = vadd.f32 1.0, %v2194_v51  ;;  %v2166_v36 = vand.u32 2147483647, %v5132_v59  ;;  %v2642_v19 = vsub.f32 0.0, %v2610_v49  ;;  %v5173_v37 = vmul.f32 1.442695, %v2635_v50 }
 0x4f2   :  { %v5134_v9 = vpop.f32.mrb[56].mxu1  ;;  %v2227_v26 = vadd.f32 1.0, %v2195_v58  ;;  %v5146_v4 = vand.u32 2147483647, %v5138_v57  ;;  %v2611_v50 = vmul.f32 %v5129_v45, %v5129_v45  ;;  %vm2806_vm14 = vcmp.lt.f32.partialorder %v5132_v59, 0.0 }
 0x4f3   :  { %v5140_v14 = vpop.f32.mrb[57].mxu1  ;;  %3529 = vrcp.f32 %v2226_v40  ;;  %v2198_v43 = vmul.f32 0.3275911, %v2166_v36  ;;  %v5179_v40 = vmul.f32 1.442695, %v2639_v8  ;;  %vm2803_vm0 = vcmp.lt.f32.partialorder %v5123_v46, 0.0 }
 0x4f4   :  { %3531 = vrcp.f32 %v2227_v26  ;;  %v2199_v44 = vmul.f32 0.3275911, %v5146_v4  ;;  %v2682_v56 = vmul.f32 1.442695, %v2642_v19  ;;  %v5367_v2 = vmul.f32 0.5, %v5140_v14 }
 0x4f5   :  { %v5143_v48 = vpop.eup %3521  ;;  %v2230_v15 = vadd.f32 1.0, %v2198_v43  ;;  %v2614_v43 = vmul.f32 %v2166_v36, %v2166_v36  ;;  %vm2807_vm3 = vcmp.lt.f32.partialorder %v5138_v57, 0.0 }
 0x4f6   :  { %v5148_v60 = vpop.eup %3523  ;;  %v2314_v35 = vmul.f32 1.0614054, %v5143_v48  ;;  %v5152_v52 = vpop.f32.mrb[58].mxu1  ;;  %v2231_v30 = vadd.f32 1.0, %v2199_v44  ;;  %v5191_v44 = vmul.f32 0.5, %v5089_v28 }
 0x4f7   :  { %v2315_v23 = vmul.f32 1.0614054, %v5148_v60  ;;  %v5155_v34 = vpop.f32.mrb[59].mxu1  ;;  %3533 = vrcp.f32 %v2230_v15 }
 0x4f8   :  { %v2346_v62 = vadd.f32 -1.4531521, %v2314_v35  ;;  %3535 = vrcp.f32 %v2231_v30 }
 0x4f9   :  { %v5157_v39 = vpop.eup %3525  ;;  %v2347_v18 = vadd.f32 -1.4531521, %v2315_v23  ;;  %3537 = vpow2.f32 %v2666_v63 }
 0x4fa   :  { %v5159_v22 = vpop.eup %3527  ;;  %v2378_v55 = vmul.f32 %v5143_v48, %v2346_v62  ;;  %v2318_v61 = vmul.f32 1.0614054, %v5157_v39  ;;  %v5163_v12 = vpop.f32.mrb[60].mxu1  ;;  %3539 = vpow2.f32 %v2674_v31 }
 0x4fb   :  { %v2319_v47 = vmul.f32 1.0614054, %v5159_v22  ;;  %v5166_v3 = vpop.f32.mrb[61].mxu1  ;;  %v2379_v24 = vmul.f32 %v5148_v60, %v2347_v18  ;;  %v5194_v18 = vmul.f32 0.70710677, %v5134_v9  ;;  %3541 = vpow2.f32 %v2682_v56 }
 0x4fc   :  { %v2410_v16 = vadd.f32 1.4214138, %v2378_v55  ;;  %v2350_v0 = vadd.f32 -1.4531521, %v2318_v61 }
 0x4fd   :  { %v2351_v11 = vadd.f32 -1.4531521, %v2319_v47  ;;  %v5177_v51 = vpop.eup %3529  ;;  %v2411_v26 = vadd.f32 1.4214138, %v2379_v24  ;;  %vm2810_vm1 = vcmp.lt.f32.partialorder %v5194_v18, 0.0 }
 0x4fe   :  { %v2442_v10 = vmul.f32 %v5143_v48, %v2410_v16  ;;  %v2382_v13 = vmul.f32 %v5157_v39, %v2350_v0  ;;  %v5171_v29 = vpop.f32.mrb[62].mxu1  ;;  %v5181_v54 = vpop.eup %3531  ;;  %v2322_v35 = vmul.f32 1.0614054, %v5177_v51  ;;  %v2646_v16 = vsub.f32 0.0, %v2614_v43 }
 0x4ff   :  { %v5175_v27 = vpop.f32.mrb[63].mxu1  ;;  %v2383_v42 = vmul.f32 %v5159_v22, %v2351_v11  ;;  %v2323_v62 = vmul.f32 1.0614054, %v5181_v54  ;;  %v2443_v47 = vmul.f32 %v5148_v60, %v2411_v26 }
 0x500   :  { %v2474_v33 = vadd.f32 -0.28449672, %v2442_v10  ;;  %v2414_v58 = vadd.f32 1.4214138, %v2382_v13  ;;  %v2354_v63 = vadd.f32 -1.4531521, %v2322_v35 }
 0x501   :  { %v5198_v36 = vpop.eup %3533  ;;  %v2355_v30 = vadd.f32 -1.4531521, %v2323_v62  ;;  %v2415_v19 = vadd.f32 1.4214138, %v2383_v42  ;;  %v2690_v42 = vmul.f32 1.442695, %v2646_v16 }
 0x502   :  { %v2506_v23 = vmul.f32 %v5143_v48, %v2474_v33  ;;  %v2446_v41 = vmul.f32 %v5157_v39, %v2414_v58  ;;  %v5188_v15 = vpop.f32.mrb[64].mxu1  ;;  %v2386_v8 = vmul.f32 %v5177_v51, %v2354_v63  ;;  %v2326_v28 = vmul.f32 1.0614054, %v5198_v36  ;;  %v5205_v0 = vpop.eup %3535 }
 0x503   :  { %v5196_v49 = vpop.f32.mrb[65].mxu1  ;;  %v2387_v10 = vmul.f32 %v5181_v54, %v2355_v30  ;;  %v3538_v11 = vpop.eup %3537  ;;  %v2327_v62 = vmul.f32 1.0614054, %v5205_v0  ;;  %v2643_v30 = vsub.f32 0.0, %v2611_v50  ;;  %3543 = vpow2.f32 %v2690_v42 }
 0x504   :  { %v2538_v55 = vadd.f32 0.2548296, %v2506_v23  ;;  %v2478_v61 = vadd.f32 -0.28449672, %v2446_v41  ;;  %v2418_v45 = vadd.f32 1.4214138, %v2386_v8  ;;  %v3540_v63 = vpop.eup %3539  ;;  %3545 = vpow2.f32 %v5173_v37 }
 0x505   :  { %v2358_v33 = vadd.f32 -1.4531521, %v2326_v28  ;;  %v2419_v43 = vadd.f32 1.4214138, %v2387_v10  ;;  %v2094_v28 = vmul.f32 0.5, %v5101_v53  ;;  %v3542_v38 = vpop.eup %3541  ;;  %3547 = vpow2.f32 %v5179_v40 }
 0x506   :  { %v2570_v31 = vmul.f32 %v5143_v48, %v2538_v55  ;;  %v2510_v24 = vmul.f32 %v5157_v39, %v2478_v61  ;;  %v5210_v13 = vpop.f32.mrb[66].mxu1  ;;  %v5216_v48 = vand.u32 2147483647, %v5194_v18  ;;  %v2450_v23 = vmul.f32 %v5177_v51, %v2418_v45 }
 0x507   :  { %v5213_v58 = vpop.f32.mrb[67].mxu1  ;;  %v2390_v41 = vmul.f32 %v5198_v36, %v2358_v33  ;;  %v2475_v61 = vadd.f32 -0.28449672, %v2443_v47  ;;  %v2451_v33 = vmul.f32 %v5181_v54, %v2419_v43  ;;  %v2359_v50 = vadd.f32 -1.4531521, %v2327_v62 }
 0x508   :  { %v2730_v26 = vmul.f32 %v3538_v11, %v2570_v31  ;;  %v2542_v35 = vadd.f32 0.2548296, %v2510_v24  ;;  %v2447_v31 = vmul.f32 %v5159_v22, %v2415_v19  ;;  %v2482_v24 = vadd.f32 -0.28449672, %v2450_v23 }
 0x509   :  { %v2422_v10 = vadd.f32 1.4214138, %v2390_v41  ;;  %v2507_v19 = vmul.f32 %v5148_v60, %v2475_v61  ;;  %v2684_v23 = vmul.f32 1.442695, %v2643_v30  ;;  %v2483_v42 = vadd.f32 -0.28449672, %v2451_v33 }
 0x50a   :  { %v2762_v55 = vsub.f32 1.0, %v2730_v26  ;;  %v2574_v56 = vmul.f32 %v5157_v39, %v2542_v35  ;;  %v5222_v8 = vpop.f32.mrb[68].mxu1  ;;  %v2202_v26 = vmul.f32 0.3275911, %v5216_v48  ;;  %v2514_v47 = vmul.f32 %v5177_v51, %v2482_v24 }
 0x50b   :  { %v5226_v11 = vpop.f32.mrb[69].mxu1  ;;  %v2454_v39 = vmul.f32 %v5198_v36, %v2422_v10  ;;  %v2479_v43 = vadd.f32 -0.28449672, %v2447_v31  ;;  %v2391_v30 = vmul.f32 %v5205_v0, %v2359_v50  ;;  %3549 = vpow2.f32 %v2684_v23 }
 0x50c   :  { %v2826_v45 = vsub.f32 0.0, %v2762_v55  ;;  %v2734_v16 = vmul.f32 %v3540_v63, %v2574_v56  ;;  %v2546_v63 = vadd.f32 0.2548296, %v2514_v47  ;;  %v2234_v10 = vadd.f32 1.0, %v2202_v26 }
 0x50d   :  { %v2486_v62 = vadd.f32 -0.28449672, %v2454_v39  ;;  %v2615_v33 = vmul.f32 %v5146_v4, %v5146_v4  ;;  %v5250_v26 = vmul.f32 0.70710677, %v5140_v14  ;;  %v2515_v39 = vmul.f32 %v5181_v54, %v2483_v42 }
 0x50e   :  { %v2858_v53 = vsel %vm2794_vm10, %v2826_v45, %v2762_v55  ;;  %v2766_v35 = vsub.f32 1.0, %v2734_v16  ;;  %v5235_v41 = vpop.f32.mrb[70].mxu1  ;;  %v2578_v61 = vmul.f32 %v5177_v51, %v2546_v63  ;;  %v2539_v45 = vadd.f32 0.2548296, %v2507_v19 }
 0x50f   :  { %v5239_v56 = vpop.f32.mrb[71].mxu1  ;;  %v2890_v55 = vadd.f32 1.0, %v2858_v53  ;;  %v2518_v7 = vmul.f32 %v5198_v36, %v2486_v62  ;;  %v2511_v51 = vmul.f32 %v5159_v22, %v2479_v43  ;;  %3551 = vrcp.f32 %v2234_v10  ;;  %v3544_v62 = vpop.eup %3543 }
 0x510   :  { %v2830_v24 = vsub.f32 0.0, %v2766_v35  ;;  %v2738_v47 = vmul.f32 %v3542_v38, %v2578_v61  ;;  %v2423_v23 = vadd.f32 1.4214138, %v2391_v30  ;;  %v2571_v4 = vmul.f32 %v5148_v60, %v2539_v45  ;;  %v3546_v30 = vpop.eup %3545 }
 0x511   :  { %v2550_v50 = vadd.f32 0.2548296, %v2518_v7  ;;  %v5257_v53 = vmul.f32 %v2890_v55, %v5191_v44  ;;  %v2647_v38 = vsub.f32 0.0, %v2615_v33  ;;  %v2543_v44 = vadd.f32 0.2548296, %v2511_v51  ;;  %v3548_v51 = vpop.eup %3547 }
 0x512   :  { %v2862_v37 = vsel %vm2798_vm11, %v2830_v24, %v2766_v35  ;;  %v5245_v31 = vpop.f32.mrb[72].mxu1  ;;  %v2770_v35 = vsub.f32 1.0, %v2738_v47  ;;  %v2547_v55 = vadd.f32 0.2548296, %v2515_v39  ;;  %v5270_v61 = vand.u32 2147483647, %v5250_v26 }
 0x513   :  { %6067 = vst [vmem:[#allocation21_spill] sm:$0xff] %v5245_v31  ;;  %v2894_v16 = vadd.f32 1.0, %v2862_v37  ;;  %v5252_v40 = vpop.f32.mrb[73].mxu1  ;;  %6069 = vst [vmem:[#allocation28_spill] sm:$0xff] %v5257_v53  ;;  %v2582_v63 = vmul.f32 %v5198_v36, %v2550_v50  ;;  %v5273_v60 = vmul.f32 0.5, %v5094_v20  ;;  %v5276_v36 = vmul.f32 0.5, %v5106_v21 }
 0x514   :  { %6068 = vst [vmem:[#allocation22_spill] sm:$0xff] %v5252_v40  ;;  %v2834_v42 = vsub.f32 0.0, %v2770_v35  ;;  %v2455_v45 = vmul.f32 %v5205_v0, %v2423_v23  ;;  %v2731_v37 = vmul.f32 %v3546_v30, %v2571_v4  ;;  %v2203_v47 = vmul.f32 0.3275911, %v5270_v61 }
 0x515   :  { %v5259_v19 = vmul.f32 %v2894_v16, %v2094_v28  ;;  %v2742_v28 = vmul.f32 %v3544_v62, %v2582_v63  ;;  %v2098_v39 = vmul.f32 0.5, %v5113_v32  ;;  %v2692_v50 = vmul.f32 1.442695, %v2647_v38  ;;  %v3550_v63 = vpop.eup %3549 }
 0x516   :  { %v5263_v24 = vpop.f32.mrb[74].mxu1  ;;  %v2866_v7 = vsel %vm2802_vm12, %v2834_v42, %v2770_v35  ;;  %v5285_v20 = vmul.f32 0.70710677, %v5152_v52  ;;  %v2575_v1 = vmul.f32 %v5159_v22, %v2543_v44  ;;  %v2579_v23 = vmul.f32 %v5181_v54, %v2547_v55 }
 0x517   :  { %6070 = vst [vmem:[#allocation29_spill] sm:$0xff] %v5259_v19  ;;  %6071 = vst [vmem:[#allocation30_spill] sm:$0xff] %v5263_v24  ;;  %v5267_v10 = vpop.f32.mrb[75].mxu1  ;;  %v2774_v16 = vsub.f32 1.0, %v2742_v28  ;;  %v2235_v4 = vadd.f32 1.0, %v2203_v47  ;;  %v2898_v62 = vadd.f32 1.0, %v2866_v7  ;;  %v2618_v59 = vmul.f32 %v5216_v48, %v5216_v48 }
 0x518   :  { %6072 = vst [vmem:[#allocation9_spill] sm:$0xff] %v5267_v10  ;;  %v2487_v42 = vadd.f32 -0.28449672, %v2455_v45  ;;  %v2174_v32 = vand.u32 2147483647, %v5285_v20  ;;  %v2763_v28 = vsub.f32 1.0, %v2731_v37  ;;  %v2735_v45 = vmul.f32 %v3548_v51, %v2575_v1 }
 0x519   :  { %v2838_v35 = vsub.f32 0.0, %v2774_v16  ;;  %v5294_v38 = vpop.eup %3551  ;;  %3553 = vrcp.f32 %v2235_v4  ;;  %v5297_v43 = vmul.f32 0.70710677, %v5155_v34  ;;  %v2102_v54 = vmul.f32 0.5, %v5120_v25 }
 0x51a   :  { %v5281_v33 = vpop.f32.mrb[76].mxu1  ;;  %v2330_v55 = vmul.f32 1.0614054, %v5294_v38  ;;  %v2739_v7 = vmul.f32 %v3550_v63, %v2579_v23  ;;  %v2206_v47 = vmul.f32 0.3275911, %v2174_v32  ;;  %v2519_v25 = vmul.f32 %v5205_v0, %v2487_v42 }
 0x51b   :  { %6073 = vst [vmem:[#allocation5_spill] sm:$0xff] %v5281_v33  ;;  %v5287_v21 = vpop.f32.mrb[77].mxu1  ;;  %v2870_v30 = vsel %vm2806_vm14, %v2838_v35, %v2774_v16  ;;  %v5306_v37 = vand.u32 2147483647, %v5297_v43  ;;  %v5310_v35 = vmul.f32 %v2898_v62, %v2098_v39  ;;  %v2827_v53 = vsub.f32 0.0, %v2763_v28 }
 0x51c   :  { %6074 = vst [vmem:[#allocation6_spill] sm:$0xff] %v5287_v21  ;;  %v2902_v44 = vadd.f32 1.0, %v2870_v30  ;;  %v2362_v30 = vadd.f32 -1.4531521, %v2330_v55  ;;  %3555 = vpow2.f32 %v2692_v50  ;;  %v2238_v19 = vadd.f32 1.0, %v2206_v47 }
 0x51d   :  { %6077 = vst [vmem:[#allocation7_spill] sm:$0xff] %v5310_v35  ;;  %v2207_v48 = vmul.f32 0.3275911, %v5306_v37  ;;  %v5318_v51 = vmul.f32 0.5, %v5115_v17  ;;  %v2650_v1 = vsub.f32 0.0, %v2618_v59  ;;  %v2767_v23 = vsub.f32 1.0, %v2735_v45 }
 0x51e   :  { %v5299_v22 = vpop.f32.mrb[78].mxu1  ;;  %v5312_v4 = vmul.f32 %v2902_v44, %v2102_v54  ;;  %v2394_v39 = vmul.f32 %v5294_v38, %v2362_v30  ;;  %v2771_v62 = vsub.f32 1.0, %v2739_v7  ;;  %3557 = vrcp.f32 %v2238_v19 }
 0x51f   :  { %6075 = vst [vmem:[#allocation8_spill] sm:$0xff] %v5299_v22  ;;  %v5308_v16 = vpop.f32.mrb[79].mxu1  ;;  %v2239_v50 = vadd.f32 1.0, %v2207_v48  ;;  %v2551_v42 = vadd.f32 0.2548296, %v2519_v25  ;;  %v2859_v17 = vsel %vm2795_vm13, %v2827_v53, %v2763_v28  ;;  %v5330_v55 = vmul.f32 0.5, %v5125_v5 }
 0x520   :  { %6076 = vst [vmem:[#allocation10_spill] sm:$0xff] %v5308_v16  ;;  %6078 = vst [vmem:[#allocation14_spill] sm:$0xff] %v5312_v4  ;;  %v2426_v54 = vadd.f32 1.4214138, %v2394_v39  ;;  %v5325_v44 = vmul.f32 0.70710677, %v5163_v12 }
 0x521   :  { %v5333_v47 = vmul.f32 0.70710677, %v5166_v3  ;;  %v5336_v59 = vmul.f32 0.70710677, %v5171_v29  ;;  %v2698_v45 = vmul.f32 1.442695, %v2650_v1  ;;  %3559 = vrcp.f32 %v2239_v50 }
 0x522   :  { %v2458_v19 = vmul.f32 %v5294_v38, %v2426_v54  ;;  %v2178_v7 = vand.u32 2147483647, %v5325_v44  ;;  %v2831_v30 = vsub.f32 0.0, %v2767_v23  ;;  %v2835_v6 = vsub.f32 0.0, %v2771_v62 }
 0x523   :  { %v5340_v25 = vpop.eup %3553  ;;  %v5343_v53 = vand.u32 2147483647, %v5333_v47  ;;  %v2182_v5 = vand.u32 2147483647, %v5336_v59  ;;  %v2583_v28 = vmul.f32 %v5205_v0, %v2551_v42  ;;  %v2891_v54 = vadd.f32 1.0, %v2859_v17 }
 0x524   :  { %v2490_v48 = vadd.f32 -0.28449672, %v2458_v19  ;;  %v2331_v39 = vmul.f32 1.0614054, %v5340_v25  ;;  %v2210_v63 = vmul.f32 0.3275911, %v2178_v7  ;;  %v2622_v1 = vmul.f32 %v2174_v32, %v2174_v32 }
 0x525   :  { %v2211_v50 = vmul.f32 0.3275911, %v5343_v53  ;;  %v2214_v35 = vmul.f32 0.3275911, %v2182_v5  ;;  %v5350_v4 = vmul.f32 0.5, %v5134_v9  ;;  %v2863_v0 = vsel %vm2799_vm15, %v2831_v30, %v2767_v23 }
 0x526   :  { %v2522_v16 = vmul.f32 %v5294_v38, %v2490_v48  ;;  %v2363_v22 = vadd.f32 -1.4531521, %v2331_v39  ;;  %v2242_v21 = vadd.f32 1.0, %v2210_v63  ;;  %v3556_v33 = vpop.eup %3555  ;;  %3561 = vpow2.f32 %v2698_v45 }
 0x527   :  { %v2243_v42 = vadd.f32 1.0, %v2211_v50  ;;  %v2246_v19 = vadd.f32 1.0, %v2214_v35  ;;  %v2867_v32 = vsel %vm2803_vm0, %v2835_v6, %v2771_v62  ;;  %v5357_v17 = vmul.f32 %v3556_v33, %v2583_v28 }
 0x528   :  { %v2619_v9 = vmul.f32 %v5270_v61, %v5270_v61  ;;  %3563 = vrcp.f32 %v2242_v21  ;;  %v5361_v10 = vpop.eup %3557  ;;  %v5364_v63 = vmul.f32 %v2891_v54, %v5273_v60  ;;  %v2654_v23 = vsub.f32 0.0, %v2622_v1 }
 0x529   :  { %3565 = vrcp.f32 %v2243_v42  ;;  %v2554_v35 = vadd.f32 0.2548296, %v2522_v16  ;;  %v2395_v46 = vmul.f32 %v5340_v25, %v2363_v22  ;;  %v2334_v33 = vmul.f32 1.0614054, %v5361_v10 }
 0x52a   :  { %6079 = vst [vmem:[#allocation13_spill] sm:$0xff] %v5364_v63  ;;  %3567 = vrcp.f32 %v2246_v19  ;;  %v2895_v62 = vadd.f32 1.0, %v2863_v0  ;;  %v5371_v45 = vadd.f32 1.0, %v2867_v32  ;;  %v5374_v61 = vmul.f32 0.5, %v5152_v52 }
 0x52b   :  { %v5377_v60 = vmul.f32 0.70710677, %v5175_v27  ;;  %v5379_v21 = vpop.eup %3559  ;;  %v5937_v14 = vsub.f32 1.0, %v5357_v17  ;;  %v2651_v30 = vsub.f32 0.0, %v2619_v9  ;;  %v2366_v16 = vadd.f32 -1.4531521, %v2334_v33 }
 0x52c   :  { %v2623_v22 = vmul.f32 %v5306_v37, %v5306_v37  ;;  %v2706_v6 = vmul.f32 1.442695, %v2654_v23  ;;  %v2335_v28 = vmul.f32 1.0614054, %v5379_v21  ;;  %v2626_v48 = vmul.f32 %v2178_v7, %v2178_v7 }
 0x52d   :  { %v5386_v39 = vand.u32 2147483647, %v5377_v60  ;;  %v2586_v52 = vmul.f32 %v5294_v38, %v2554_v35  ;;  %v2427_v54 = vadd.f32 1.4214138, %v2395_v46  ;;  %v2398_v1 = vmul.f32 %v5361_v10, %v2366_v16 }
 0x52e   :  { %v2630_v50 = vmul.f32 %v2182_v5, %v2182_v5  ;;  %v5391_v0 = vmul.f32 %v2895_v62, %v5276_v36  ;;  %v2367_v42 = vadd.f32 -1.4531521, %v2335_v28  ;;  %v5395_v37 = vmul.f32 0.70710677, %v5188_v15 }
 0x52f   :  { %v2215_v19 = vmul.f32 0.3275911, %v5386_v39  ;;  %v5399_v7 = vsub.f32 0.0, %v5937_v14  ;;  %v2700_v32 = vmul.f32 1.442695, %v2651_v30  ;;  %v5402_v38 = vmul.f32 0.5, %v5155_v34 }
 0x530   :  { %6080 = vst [vmem:[#allocation16_spill] sm:$0xff] %v5391_v0  ;;  %v2430_v9 = vadd.f32 1.4214138, %v2398_v1  ;;  %v3562_v23 = vpop.eup %3561  ;;  %3569 = vpow2.f32 %v2706_v6  ;;  %v2399_v36 = vmul.f32 %v5379_v21, %v2367_v42  ;;  %v2655_v5 = vsub.f32 0.0, %v2623_v22 }
 0x531   :  { %v2247_v35 = vadd.f32 1.0, %v2215_v19  ;;  %v2746_v33 = vmul.f32 %v3562_v23, %v2586_v52  ;;  %v2658_v16 = vsub.f32 0.0, %v2626_v48  ;;  %v2662_v28 = vsub.f32 0.0, %v2630_v50 }
 0x532   :  { %v5405_v46 = vpop.eup %3563  ;;  %v2462_v62 = vmul.f32 %v5361_v10, %v2430_v9  ;;  %v2459_v30 = vmul.f32 %v5340_v25, %v2427_v54  ;;  %v5413_v6 = vand.u32 2147483647, %v5395_v37  ;;  %v2431_v42 = vadd.f32 1.4214138, %v2399_v36 }
 0x533   :  { %v5408_v14 = vpop.eup %3565  ;;  %v2338_v34 = vmul.f32 1.0614054, %v5405_v46  ;;  %3571 = vrcp.f32 %v2247_v35  ;;  %v2708_v48 = vmul.f32 1.442695, %v2655_v5  ;;  %v2627_v54 = vmul.f32 %v5343_v53, %v5343_v53 }
 0x534   :  { %v5415_v1 = vpop.eup %3567  ;;  %3573 = vpow2.f32 %v2700_v32  ;;  %v2494_v22 = vadd.f32 -0.28449672, %v2462_v62  ;;  %v2339_v52 = vmul.f32 1.0614054, %v5408_v14  ;;  %v2778_v9 = vsub.f32 1.0, %v2746_v33 }
 0x535   :  { %v2370_v50 = vadd.f32 -1.4531521, %v2338_v34  ;;  %v2342_v19 = vmul.f32 1.0614054, %v5415_v1  ;;  %v2714_v35 = vmul.f32 1.442695, %v2658_v16  ;;  %v2463_v5 = vmul.f32 %v5379_v21, %v2431_v42 }
 0x536   :  { %v2526_v23 = vmul.f32 %v5361_v10, %v2494_v22  ;;  %v2371_v0 = vadd.f32 -1.4531521, %v2339_v52  ;;  %v2491_v63 = vadd.f32 -0.28449672, %v2459_v30  ;;  %v2188_v62 = vmul.f32 0.3275911, %v5413_v6 }
 0x537   :  { %v2402_v32 = vmul.f32 %v5405_v46, %v2370_v50  ;;  %v2374_v36 = vadd.f32 -1.4531521, %v2342_v19  ;;  %v2722_v40 = vmul.f32 1.442695, %v2662_v28  ;;  %vm2814_vm2 = vcmp.lt.f32.partialorder %v5285_v20, 0.0 }
 0x538   :  { %v2558_v24 = vadd.f32 0.2548296, %v2526_v23  ;;  %v2403_v34 = vmul.f32 %v5408_v14, %v2371_v0  ;;  %v2659_v33 = vsub.f32 0.0, %v2627_v54  ;;  %v2220_v16 = vadd.f32 1.0, %v2188_v62 }
 0x539   :  { %v2434_v53 = vadd.f32 1.4214138, %v2402_v32  ;;  %v2406_v22 = vmul.f32 %v5415_v1, %v2374_v36  ;;  %v2842_v52 = vsub.f32 0.0, %v2778_v9  ;;  %3575 = vpow2.f32 %v2714_v35 }
 0x53a   :  { %v2590_v30 = vmul.f32 %v5361_v10, %v2558_v24  ;;  %v2435_v50 = vadd.f32 1.4214138, %v2403_v34  ;;  %v3570_v19 = vpop.eup %3569  ;;  %v2523_v23 = vmul.f32 %v5340_v25, %v2491_v63  ;;  %3577 = vrcp.f32 %v2220_v16 }
 0x53b   :  { %v2466_v42 = vmul.f32 %v5405_v46, %v2434_v53  ;;  %v2438_v31 = vadd.f32 1.4214138, %v2406_v22  ;;  %v2495_v28 = vadd.f32 -0.28449672, %v2463_v5  ;;  %3579 = vpow2.f32 %v2722_v40 }
 0x53c   :  { %v2750_v0 = vmul.f32 %v3570_v19, %v2590_v30  ;;  %v2467_v32 = vmul.f32 %v5408_v14, %v2435_v50  ;;  %3581 = vpow2.f32 %v2708_v48  ;;  %v2716_v62 = vmul.f32 1.442695, %v2659_v33 }
 0x53d   :  { %v5433_v54 = vpop.eup %3571  ;;  %v2498_v36 = vadd.f32 -0.28449672, %v2466_v42  ;;  %v2470_v24 = vmul.f32 %v5415_v1, %v2438_v31  ;;  %v2874_v63 = vsel %vm2810_vm1, %v2842_v52, %v2778_v9  ;;  %v2555_v22 = vadd.f32 0.2548296, %v2523_v23 }
 0x53e   :  { %v3574_v10 = vpop.eup %3573  ;;  %v2782_v35 = vsub.f32 1.0, %v2750_v0  ;;  %v2499_v34 = vadd.f32 -0.28449672, %v2467_v32  ;;  %v2343_v53 = vmul.f32 1.0614054, %v5433_v54  ;;  %v2631_v40 = vmul.f32 %v5386_v39, %v5386_v39 }
 0x53f   :  { %v2530_v5 = vmul.f32 %v5405_v46, %v2498_v36  ;;  %v2502_v16 = vadd.f32 -0.28449672, %v2470_v24  ;;  %v2527_v33 = vmul.f32 %v5379_v21, %v2495_v28  ;;  %v5444_v31 = vmul.f32 0.70710677, %v5196_v49 }
 0x540   :  { %v2846_v48 = vsub.f32 0.0, %v2782_v35  ;;  %v2375_v30 = vadd.f32 -1.4531521, %v2343_v53  ;;  %v2906_v18 = vadd.f32 1.0, %v2874_v63  ;;  %3583 = vpow2.f32 %v2716_v62 }
 0x541   :  { %v2562_v9 = vadd.f32 0.2548296, %v2530_v5  ;;  %v2534_v52 = vmul.f32 %v5415_v1, %v2502_v16  ;;  %v2531_v19 = vmul.f32 %v5408_v14, %v2499_v34  ;;  %v5452_v39 = vand.u32 2147483647, %v5444_v31 }
 0x542   :  { %v2878_v50 = vsel %vm2814_vm2, %v2846_v48, %v2782_v35  ;;  %v2407_v23 = vmul.f32 %v5433_v54, %v2375_v30  ;;  %v2663_v32 = vsub.f32 0.0, %v2631_v40  ;;  %v2587_v62 = vmul.f32 %v5340_v25, %v2555_v22 }
 0x543   :  { %v2910_v42 = vadd.f32 1.0, %v2878_v50  ;;  %v2594_v0 = vmul.f32 %v5405_v46, %v2562_v9  ;;  %v2566_v28 = vadd.f32 0.2548296, %v2534_v52  ;;  %v3576_v36 = vpop.eup %3575  ;;  %v2559_v24 = vadd.f32 0.2548296, %v2527_v33 }
 0x544   :  { %v2439_v63 = vadd.f32 1.4214138, %v2407_v23  ;;  %v2189_v20 = vmul.f32 0.3275911, %v5452_v39  ;;  %v5457_v35 = vpop.eup %3577  ;;  %v5460_v34 = vmul.f32 %v2906_v18, %v5350_v4  ;;  %v2563_v40 = vadd.f32 0.2548296, %v2531_v19 }
 0x545   :  { %v5463_v53 = vmul.f32 %v2910_v42, %v5374_v61  ;;  %v2754_v5 = vmul.f32 %v3576_v36, %v2594_v0  ;;  %v2598_v46 = vmul.f32 %v5415_v1, %v2566_v28  ;;  %v3580_v16 = vpop.eup %3579  ;;  %v2316_v22 = vmul.f32 1.0614054, %v5457_v35 }
 0x546   :  { %v2471_v25 = vmul.f32 %v5433_v54, %v2439_v63  ;;  %v2604_v48 = vmul.f32 %v5413_v6, %v5413_v6  ;;  %v3582_v33 = vpop.eup %3581  ;;  %v2221_v18 = vadd.f32 1.0, %v2189_v20  ;;  %v2591_v1 = vmul.f32 %v5379_v21, %v2559_v24 }
 0x547   :  { %v2786_v61 = vsub.f32 1.0, %v2754_v5  ;;  %v2758_v30 = vmul.f32 %v3580_v16, %v2598_v46  ;;  %v2114_v9 = vmul.f32 0.5, %v5163_v12  ;;  %vm2818_vm4 = vcmp.lt.f32.partialorder %v5325_v44, 0.0 }
 0x548   :  { %v2348_v52 = vadd.f32 -1.4531521, %v2316_v22  ;;  %v2503_v23 = vadd.f32 -0.28449672, %v2471_v25  ;;  %3585 = vrcp.f32 %v2221_v18  ;;  %v2747_v42 = vmul.f32 %v3574_v10, %v2587_v62 }
 0x549   :  { %v2850_v50 = vsub.f32 0.0, %v2786_v61  ;;  %v2790_v19 = vsub.f32 1.0, %v2758_v30  ;;  %v2724_v6 = vmul.f32 1.442695, %v2663_v32  ;;  %v2636_v28 = vsub.f32 0.0, %v2604_v48 }
 0x54a   :  { %v2380_v0 = vmul.f32 %v5457_v35, %v2348_v52  ;;  %v3584_v36 = vpop.eup %3583  ;;  %v2595_v20 = vmul.f32 %v5408_v14, %v2563_v40  ;;  %v5479_v21 = vmul.f32 0.70710677, %v5210_v13  ;;  %v2751_v12 = vmul.f32 %v3582_v33, %v2591_v1 }
 0x54b   :  { %v2882_v63 = vsel %vm2818_vm4, %v2850_v50, %v2786_v61  ;;  %v2854_v5 = vsub.f32 0.0, %v2790_v19  ;;  %vm2822_vm5 = vcmp.lt.f32.partialorder %v5336_v59, 0.0  ;;  %vm2811_vm6 = vcmp.lt.f32.partialorder %v5250_v26, 0.0 }
 0x54c   :  { %v2914_v44 = vadd.f32 1.0, %v2882_v63  ;;  %v2412_v24 = vadd.f32 1.4214138, %v2380_v0  ;;  %v2118_v10 = vmul.f32 0.5, %v5171_v29  ;;  %v2535_v62 = vmul.f32 %v5433_v54, %v2503_v23 }
 0x54d   :  { %v2886_v32 = vsel %vm2822_vm5, %v2854_v5, %v2790_v19  ;;  %v2160_v46 = vand.u32 2147483647, %v5479_v21  ;;  %v2779_v16 = vsub.f32 1.0, %v2747_v42  ;;  %3587 = vpow2.f32 %v2724_v6 }
 0x54e   :  { %v2918_v14 = vadd.f32 1.0, %v2886_v32  ;;  %v2444_v40 = vmul.f32 %v5457_v35, %v2412_v24  ;;  %v6081_v25 = vsub.f32 1.0, %v5357_v17  ;;  %v2755_v22 = vmul.f32 %v3584_v36, %v2595_v20 }
 0x54f   :  { %v2670_v48 = vmul.f32 1.442695, %v2636_v28  ;;  %v2192_v33 = vmul.f32 0.3275911, %v2160_v46  ;;  %v2783_v29 = vsub.f32 1.0, %v2751_v12  ;;  %v5492_v61 = vmul.f32 %v2914_v44, %v2114_v9 }
 0x550   :  { %v2871_v59 = vsel %vm2807_vm3, %v5399_v7, %v6081_v25  ;;  %v5494_v30 = vmul.f32 %v2918_v14, %v2118_v10  ;;  %v2476_v18 = vadd.f32 -0.28449672, %v2444_v40  ;;  %v5498_v1 = vmul.f32 %v5371_v45, %v5318_v51 }
 0x551   :  { %v2567_v52 = vadd.f32 0.2548296, %v2535_v62  ;;  %v2224_v50 = vadd.f32 1.0, %v2192_v33  ;;  %v5501_v17 = vmul.f32 0.70710677, %v5213_v58  ;;  %v2903_v57 = vadd.f32 1.0, %v2871_v59 }
 0x552   :  { %v2843_v7 = vsub.f32 0.0, %v2779_v16  ;;  %v5506_v9 = vmul.f32 0.70710677, %v5222_v8  ;;  %v5508_v23 = vpop.eup %3585  ;;  %v2787_v42 = vsub.f32 1.0, %v2755_v22  ;;  %v2508_v6 = vmul.f32 %v5457_v35, %v2476_v18 }
 0x553   :  { %3589 = vrcp.f32 %v2224_v50  ;;  %v5512_v51 = vand.u32 2147483647, %v5501_v17  ;;  %vm2815_vm7 = vcmp.lt.f32.partialorder %v5297_v43, 0.0  ;;  %v2847_v45 = vsub.f32 0.0, %v2783_v29 }
 0x554   :  { %3591 = vpow2.f32 %v2670_v48  ;;  %v2605_v0 = vmul.f32 %v5452_v39, %v5452_v39  ;;  %v2599_v28 = vmul.f32 %v5433_v54, %v2567_v52  ;;  %v2317_v36 = vmul.f32 1.0614054, %v5508_v23 }
 0x555   :  { %v2193_v63 = vmul.f32 0.3275911, %v5512_v51  ;;  %v2164_v20 = vand.u32 2147483647, %v5506_v9  ;;  %v5522_v5 = vmul.f32 %v2903_v57, %v5330_v55  ;;  %v2875_v12 = vsel %vm2811_vm6, %v2843_v7, %v2779_v16 }
 0x556   :  { %v2115_v44 = vmul.f32 0.5, %v5166_v3  ;;  %vm2819_vm8 = vcmp.lt.f32.partialorder %v5333_v47, 0.0  ;;  %v2851_v24 = vsub.f32 0.0, %v2787_v42  ;;  %v2540_v39 = vadd.f32 0.2548296, %v2508_v6 }
 0x557   :  { %v2225_v10 = vadd.f32 1.0, %v2193_v63  ;;  %v2196_v54 = vmul.f32 0.3275911, %v2164_v20  ;;  %v3588_v32 = vpop.eup %3587  ;;  %v2879_v62 = vsel %vm2815_vm7, %v2847_v45, %v2783_v29  ;;  %v2637_v14 = vsub.f32 0.0, %v2605_v0 }
 0x558   :  { %v2608_v40 = vmul.f32 %v2160_v46, %v2160_v46  ;;  %v5531_v55 = vmul.f32 0.70710677, %v5226_v11  ;;  %v2759_v25 = vmul.f32 %v3588_v32, %v2599_v28  ;;  %v2349_v26 = vadd.f32 -1.4531521, %v2317_v36 }
 0x559   :  { %3593 = vrcp.f32 %v2225_v10  ;;  %v2228_v16 = vadd.f32 1.0, %v2196_v54  ;;  %v2907_v3 = vadd.f32 1.0, %v2875_v12  ;;  %v5534_v59 = vmul.f32 0.5, %v5175_v27 }
 0x55a   :  { %v5537_v22 = vmul.f32 0.5, %v5188_v15  ;;  %v5540_v48 = vand.u32 2147483647, %v5531_v55  ;;  %v2911_v43 = vadd.f32 1.0, %v2879_v62  ;;  %v2883_v46 = vsel %vm2819_vm8, %v2851_v24, %v2787_v42 }
 0x55b   :  { %v2572_v33 = vmul.f32 %v5457_v35, %v2540_v39  ;;  %v5546_v29 = vmul.f32 0.70710677, %v5235_v41  ;;  %vm2823_vm10 = vcmp.lt.f32.partialorder %v5377_v60, 0.0  ;;  %v5550_v27 = vmul.f32 0.5, %v5196_v49 }
 0x55c   :  { %v2672_v18 = vmul.f32 1.442695, %v2637_v14  ;;  %v2640_v15 = vsub.f32 0.0, %v2608_v40  ;;  %3595 = vrcp.f32 %v2228_v16  ;;  %v2791_v50 = vsub.f32 1.0, %v2759_v25 }
 0x55d   :  { %v5552_v52 = vpop.eup %3589  ;;  %v2381_v57 = vmul.f32 %v5508_v23, %v2349_v26  ;;  %v2197_v47 = vmul.f32 0.3275911, %v5540_v48  ;;  %v2168_v35 = vand.u32 2147483647, %v5546_v29  ;;  %v5558_v42 = vmul.f32 %v2907_v3, %v5367_v2 }
 0x55e   :  { %v3592_v7 = vpop.eup %3591  ;;  %v2915_v6 = vadd.f32 1.0, %v2883_v46  ;;  %v5561_v49 = vmul.f32 0.5, %v5210_v13  ;;  %v2320_v45 = vmul.f32 1.0614054, %v5552_v52  ;;  %v5565_v0 = vmul.f32 %v2911_v43, %v5402_v38 }
 0x55f   :  { %v2732_v28 = vmul.f32 %v3592_v7, %v2572_v33  ;;  %v2229_v36 = vadd.f32 1.0, %v2197_v47  ;;  %v2200_v63 = vmul.f32 0.3275911, %v2168_v35  ;;  %3597 = vpow2.f32 %v2672_v18 }
 0x560   :  { %v2352_v12 = vadd.f32 -1.4531521, %v2320_v45  ;;  %v2678_v24 = vmul.f32 1.442695, %v2640_v15  ;;  %v2612_v39 = vmul.f32 %v2164_v20, %v2164_v20  ;;  %v2855_v10 = vsub.f32 0.0, %v2791_v50 }
 0x561   :  { %v2413_v54 = vadd.f32 1.4214138, %v2381_v57  ;;  %3599 = vrcp.f32 %v2229_v36  ;;  %v2232_v2 = vadd.f32 1.0, %v2200_v63  ;;  %v5567_v32 = vmul.f32 %v2915_v6, %v2115_v44  ;;  %v6082_v44 = vld [vmem:[#allocation21_spill] sm:$0xff] }
 0x562   :  { %v2384_v13 = vmul.f32 %v5552_v52, %v2352_v12  ;;  %v5571_v62 = vmul.f32 0.5, %v5213_v58  ;;  %v5574_v38 = vmul.f32 0.70710677, %v5239_v56  ;;  %v2764_v40 = vsub.f32 1.0, %v2732_v28 }
 0x563   :  { %v5576_v14 = vpop.eup %3593  ;;  %vm2796_vm11 = vcmp.lt.f32.partialorder %v5395_v37, 0.0  ;;  %v2609_v20 = vmul.f32 %v5512_v51, %v5512_v51  ;;  %v5582_v25 = vmul.f32 0.5, %v5222_v8  ;;  %v5585_v26 = vmul.f32 0.70710677, %v6082_v44 }
 0x564   :  { %v2416_v16 = vadd.f32 1.4214138, %v2384_v13  ;;  %v2321_v58 = vmul.f32 1.0614054, %v5576_v14  ;;  %v2644_v3 = vsub.f32 0.0, %v2612_v39  ;;  %3601 = vrcp.f32 %v2232_v2 }
 0x565   :  { %v2887_v43 = vsel %vm2823_vm10, %v2855_v10, %v2791_v50  ;;  %v2445_v46 = vmul.f32 %v5508_v23, %v2413_v54  ;;  %3603 = vpow2.f32 %v2678_v24  ;;  %v2169_v33 = vand.u32 2147483647, %v5574_v38 }
 0x566   :  { %v5592_v51 = vpop.eup %3595  ;;  %v2448_v8 = vmul.f32 %v5552_v52, %v2416_v16  ;;  %v2353_v18 = vadd.f32 -1.4531521, %v2321_v58  ;;  %v5596_v15 = vmul.f32 0.5, %v5226_v11  ;;  %v5599_v57 = vand.u32 2147483647, %v5585_v26 }
 0x567   :  { %v2828_v47 = vsub.f32 0.0, %v2764_v40  ;;  %v2641_v7 = vsub.f32 0.0, %v2609_v20  ;;  %v2324_v60 = vmul.f32 1.0614054, %v5592_v51  ;;  %v2201_v50 = vmul.f32 0.3275911, %v2169_v33 }
 0x568   :  { %v2480_v6 = vadd.f32 -0.28449672, %v2448_v8  ;;  %v2385_v45 = vmul.f32 %v5576_v14, %v2353_v18  ;;  %v2686_v28 = vmul.f32 1.442695, %v2644_v3  ;;  %v2204_v36 = vmul.f32 0.3275911, %v5599_v57 }
 0x569   :  { %v5604_v63 = vadd.f32 1.0, %v2887_v43  ;;  %v2477_v12 = vadd.f32 -0.28449672, %v2445_v46  ;;  %v2356_v24 = vadd.f32 -1.4531521, %v2324_v60  ;;  %v2233_v11 = vadd.f32 1.0, %v2201_v50  ;;  %v5606_v39 = vpop.eup %3597 }
 0x56a   :  { %v2512_v10 = vmul.f32 %v5552_v52, %v2480_v6  ;;  %v2417_v54 = vadd.f32 1.4214138, %v2385_v45  ;;  %v2616_v2 = vmul.f32 %v2168_v35, %v2168_v35  ;;  %v2236_v13 = vadd.f32 1.0, %v2204_v36 }
 0x56b   :  { %v5609_v20 = vpop.eup %3599  ;;  %v2680_v16 = vmul.f32 1.442695, %v2641_v7  ;;  %v2388_v58 = vmul.f32 %v5592_v51, %v2356_v24  ;;  %v2613_v3 = vmul.f32 %v5540_v48, %v5540_v48  ;;  %3605 = vrcp.f32 %v2233_v11 }
 0x56c   :  { %v2860_v43 = vsel %vm2796_vm11, %v2828_v47, %v2764_v40  ;;  %v2544_v46 = vadd.f32 0.2548296, %v2512_v10  ;;  %v2449_v8 = vmul.f32 %v5576_v14, %v2417_v54  ;;  %v2325_v18 = vmul.f32 1.0614054, %v5609_v20 }
 0x56d   :  { %v2509_v35 = vmul.f32 %v5508_v23, %v2477_v12  ;;  %vm2800_vm12 = vcmp.lt.f32.partialorder %v5479_v21, 0.0  ;;  %v2420_v60 = vadd.f32 1.4214138, %v2388_v58  ;;  %3607 = vpow2.f32 %v2686_v28 }
 0x56e   :  { %v5621_v7 = vmul.f32 0.5, %v5235_v41  ;;  %v5623_v50 = vpop.eup %3601  ;;  %v2576_v48 = vmul.f32 %v5552_v52, %v2544_v46  ;;  %v2357_v37 = vadd.f32 -1.4531521, %v2325_v18  ;;  %v2648_v40 = vsub.f32 0.0, %v2616_v2  ;;  %v6083_v41 = vld [vmem:[#allocation22_spill] sm:$0xff] }
 0x56f   :  { %3609 = vrcp.f32 %v2236_v13  ;;  %v3604_v47 = vpop.eup %3603  ;;  %v2892_v6 = vadd.f32 1.0, %v2860_v43  ;;  %v2452_v45 = vmul.f32 %v5592_v51, %v2420_v60  ;;  %v2645_v36 = vsub.f32 0.0, %v2613_v3 }
 0x570   :  { %v2328_v12 = vmul.f32 1.0614054, %v5623_v50  ;;  %v2736_v24 = vmul.f32 %v3604_v47, %v2576_v48  ;;  %v2481_v11 = vadd.f32 -0.28449672, %v2449_v8  ;;  %v2389_v28 = vmul.f32 %v5609_v20, %v2357_v37 }
 0x571   :  { %v5630_v10 = vmul.f32 0.70710677, %v6083_v41  ;;  %v2541_v54 = vadd.f32 0.2548296, %v2509_v35  ;;  %3611 = vpow2.f32 %v2680_v16  ;;  %v2484_v52 = vadd.f32 -0.28449672, %v2452_v45 }
 0x572   :  { %v2360_v58 = vadd.f32 -1.4531521, %v2328_v12  ;;  %v2768_v2 = vsub.f32 1.0, %v2736_v24  ;;  %v2421_v13 = vadd.f32 1.4214138, %v2389_v28  ;;  %v2617_v43 = vmul.f32 %v2169_v33, %v2169_v33 }
 0x573   :  { %v2694_v46 = vmul.f32 1.442695, %v2648_v40  ;;  %v5633_v18 = vmul.f32 %v2892_v6, %v5537_v22  ;;  %v2516_v3 = vmul.f32 %v5592_v51, %v2484_v52  ;;  %v5638_v60 = vand.u32 2147483647, %v5630_v10 }
 0x574   :  { %v2392_v8 = vmul.f32 %v5623_v50, %v2360_v58  ;;  %v2832_v48 = vsub.f32 0.0, %v2768_v2  ;;  %v2513_v35 = vmul.f32 %v5576_v14, %v2481_v11  ;;  %v2453_v16 = vmul.f32 %v5609_v20, %v2421_v13 }
 0x575   :  { %v2688_v37 = vmul.f32 1.442695, %v2645_v36  ;;  %v5642_v47 = vpop.eup %3605  ;;  %v2573_v33 = vmul.f32 %v5508_v23, %v2541_v54  ;;  %v2548_v40 = vadd.f32 0.2548296, %v2516_v3  ;;  %v2205_v6 = vmul.f32 0.3275911, %v5638_v60 }
 0x576   :  { %v2424_v22 = vadd.f32 1.4214138, %v2392_v8  ;;  %v2864_v45 = vsel %vm2800_vm12, %v2832_v48, %v2768_v2  ;;  %3613 = vpow2.f32 %v2694_v46  ;;  %v2329_v12 = vmul.f32 1.0614054, %v5642_v47 }
 0x577   :  { %v2649_v24 = vsub.f32 0.0, %v2617_v43  ;;  %v3608_v28 = vpop.eup %3607  ;;  %v2896_v11 = vadd.f32 1.0, %v2864_v45  ;;  %v2580_v52 = vmul.f32 %v5592_v51, %v2548_v40  ;;  %v2237_v58 = vadd.f32 1.0, %v2205_v6  ;;  %v6084_v40 = vld [vmem:[#allocation30_spill] sm:$0xff] }
 0x578   :  { %v2456_v36 = vmul.f32 %v5623_v50, %v2424_v22  ;;  %v2545_v23 = vadd.f32 0.2548296, %v2513_v35  ;;  %v2485_v54 = vadd.f32 -0.28449672, %v2453_v16  ;;  %v2361_v3 = vadd.f32 -1.4531521, %v2329_v12 }
 0x579   :  { %v5651_v13 = vpop.eup %3609  ;;  %v2620_v21 = vmul.f32 %v5599_v57, %v5599_v57  ;;  %v5656_v2 = vmul.f32 %v2896_v11, %v5561_v49  ;;  %v2740_v46 = vmul.f32 %v3608_v28, %v2580_v52  ;;  %vm2804_vm13 = vcmp.lt.f32.partialorder %v5506_v9, 0.0 }
 0x57a   :  { %v2488_v43 = vadd.f32 -0.28449672, %v2456_v36  ;;  %v2332_v8 = vmul.f32 1.0614054, %v5651_v13  ;;  %v2393_v51 = vmul.f32 %v5642_v47, %v2361_v3  ;;  %v2696_v48 = vmul.f32 1.442695, %v2649_v24 }
 0x57b   :  { %3615 = vrcp.f32 %v2237_v58  ;;  %v5662_v35 = vmul.f32 0.70710677, %v6084_v40  ;;  %v3612_v16 = vpop.eup %3611  ;;  %v2772_v22 = vsub.f32 1.0, %v2740_v46  ;;  %v2517_v45 = vmul.f32 %v5609_v20, %v2485_v54 }
 0x57c   :  { %v2520_v49 = vmul.f32 %v5623_v50, %v2488_v43  ;;  %v2364_v6 = vadd.f32 -1.4531521, %v2332_v8  ;;  %3617 = vpow2.f32 %v2688_v37  ;;  %v5669_v12 = vmul.f32 0.5, %v5239_v56  ;;  %v6085_v43 = vld [vmem:[#allocation9_spill] sm:$0xff] }
 0x57d   :  { %v2425_v28 = vadd.f32 1.4214138, %v2393_v51  ;;  %v5672_v24 = vmul.f32 %v5606_v39, %v2573_v33  ;;  %v2577_v11 = vmul.f32 %v5576_v14, %v2545_v23  ;;  %vm2808_vm14 = vcmp.lt.f32.partialorder %v5546_v29, 0.0  ;;  %v6086_v29 = vld [vmem:[#allocation5_spill] sm:$0xff] }
 0x57e   :  { %v2552_v52 = vadd.f32 0.2548296, %v2520_v49  ;;  %v2396_v36 = vmul.f32 %v5651_v13, %v2364_v6  ;;  %3619 = vpow2.f32 %v2696_v48  ;;  %v2652_v3 = vsub.f32 0.0, %v2620_v21 }
 0x57f   :  { %v2457_v58 = vmul.f32 %v5642_v47, %v2425_v28  ;;  %v2176_v37 = vand.u32 2147483647, %v5662_v35  ;;  %v2836_v54 = vsub.f32 0.0, %v2772_v22  ;;  %v5681_v39 = vmul.f32 0.70710677, %v6085_v43 }
 0x580   :  { %v2584_v56 = vmul.f32 %v5623_v50, %v2552_v52  ;;  %v2428_v46 = vadd.f32 1.4214138, %v2396_v36  ;;  %v3614_v33 = vpop.eup %3613  ;;  %v5685_v14 = vmul.f32 %v5604_v63, %v5534_v59  ;;  %v2549_v23 = vadd.f32 0.2548296, %v2517_v45 }
 0x581   :  { %v2489_v8 = vadd.f32 -0.28449672, %v2457_v58  ;;  %v2208_v51 = vmul.f32 0.3275911, %v2176_v37  ;;  %v2765_v48 = vsub.f32 1.0, %v5672_v24  ;;  %v2737_v21 = vmul.f32 %v3612_v16, %v2577_v11 }
 0x582   :  { %v2744_v49 = vmul.f32 %v3614_v33, %v2584_v56  ;;  %v2460_v6 = vmul.f32 %v5651_v13, %v2428_v46  ;;  %vm2797_vm15 = vcmp.lt.f32.partialorder %v5444_v31, 0.0  ;;  %v2702_v28 = vmul.f32 1.442695, %v2652_v3 }
 0x583   :  { %v2521_v50 = vmul.f32 %v5642_v47, %v2489_v8  ;;  %v2621_v52 = vmul.f32 %v5638_v60, %v5638_v60  ;;  %v2240_v36 = vadd.f32 1.0, %v2208_v51  ;;  %v2868_v59 = vsel %vm2804_vm13, %v2836_v54, %v2772_v22 }
 0x584   :  { %v2776_v63 = vsub.f32 1.0, %v2744_v49  ;;  %v2492_v45 = vadd.f32 -0.28449672, %v2460_v6  ;;  %v2177_v24 = vand.u32 2147483647, %v5681_v39  ;;  %v2581_v11 = vmul.f32 %v5609_v20, %v2549_v23 }
 0x585   :  { %v5696_v16 = vpop.eup %3615  ;;  %v2553_v58 = vadd.f32 0.2548296, %v2521_v50  ;;  %v5700_v56 = vmul.f32 0.5, %v6082_v44  ;;  %3621 = vrcp.f32 %v2240_v36  ;;  %v2769_v3 = vsub.f32 1.0, %v2737_v21 }
 0x586   :  { %vm2801_vm0 = vcmp.lt.f32.partialorder %v5501_v17, 0.0  ;;  %v2840_v60 = vsub.f32 0.0, %v2776_v63  ;;  %v2524_v9 = vmul.f32 %v5651_v13, %v2492_v45  ;;  %v2333_v22 = vmul.f32 1.0614054, %v5696_v16  ;;  %v3618_v54 = vpop.eup %3617 }
 0x587   :  { %v2900_v46 = vadd.f32 1.0, %v2868_v59  ;;  %v2585_v33 = vmul.f32 %v5642_v47, %v2553_v58  ;;  %3623 = vpow2.f32 %v2702_v28  ;;  %v2209_v8 = vmul.f32 0.3275911, %v2177_v24 }
 0x588   :  { %v2829_v20 = vsub.f32 0.0, %v2765_v48  ;;  %v2872_v44 = vsel %vm2808_vm14, %v2840_v60, %v2776_v63  ;;  %v2365_v23 = vadd.f32 -1.4531521, %v2333_v22  ;;  %v2653_v51 = vsub.f32 0.0, %v2621_v52  ;;  %v3620_v21 = vpop.eup %3619 }
 0x589   :  { %v2741_v49 = vmul.f32 %v3618_v54, %v2581_v11  ;;  %v2904_v6 = vadd.f32 1.0, %v2872_v44  ;;  %v2624_v50 = vmul.f32 %v2176_v37, %v2176_v37  ;;  %v2241_v36 = vadd.f32 1.0, %v2209_v8 }
 0x58a   :  { %v2833_v45 = vsub.f32 0.0, %v2769_v3  ;;  %v2745_v19 = vmul.f32 %v3620_v21, %v2585_v33  ;;  %v2556_v4 = vadd.f32 0.2548296, %v2524_v9  ;;  %v2397_v59 = vmul.f32 %v5696_v16, %v2365_v23 }
 0x58b   :  { %v5710_v47 = vmul.f32 %v2900_v46, %v5582_v25  ;;  %v5713_v28 = vmul.f32 %v2904_v6, %v5621_v7  ;;  %3625 = vrcp.f32 %v2241_v36  ;;  %v5716_v63 = vmul.f32 0.70710677, %v6086_v29 }
 0x58c   :  { %v2861_v52 = vsel %vm2797_vm15, %v2829_v20, %v2765_v48  ;;  %vm2805_vm1 = vcmp.lt.f32.partialorder %v5531_v55, 0.0  ;;  %v5722_v37 = vmul.f32 0.5, %v6083_v41  ;;  %v2429_v11 = vadd.f32 1.4214138, %v2397_v59  ;;  %v6087_v48 = vld [vmem:[#allocation6_spill] sm:$0xff] }
 0x58d   :  { %v2704_v58 = vmul.f32 1.442695, %v2653_v51  ;;  %v2773_v60 = vsub.f32 1.0, %v2741_v49  ;;  %v2656_v7 = vsub.f32 0.0, %v2624_v50  ;;  %v2180_v9 = vand.u32 2147483647, %v5716_v63 }
 0x58e   :  { %v2777_v22 = vsub.f32 1.0, %v2745_v19  ;;  %v2588_v54 = vmul.f32 %v5651_v13, %v2556_v4  ;;  %v2461_v31 = vmul.f32 %v5696_v16, %v2429_v11  ;;  %v5730_v46 = vmul.f32 0.70710677, %v6087_v48 }
 0x58f   :  { %v5732_v33 = vpop.eup %3621  ;;  %v2893_v41 = vadd.f32 1.0, %v2861_v52  ;;  %v2865_v8 = vsel %vm2801_vm0, %v2833_v45, %v2769_v3  ;;  %vm2809_vm2 = vcmp.lt.f32.partialorder %v5574_v38, 0.0  ;;  %v2212_v20 = vmul.f32 0.3275911, %v2180_v9 }
 0x590   :  { %v2493_v44 = vadd.f32 -0.28449672, %v2461_v31  ;;  %3627 = vpow2.f32 %v2704_v58  ;;  %v2336_v19 = vmul.f32 1.0614054, %v5732_v33  ;;  %v2625_v23 = vmul.f32 %v2177_v24, %v2177_v24  ;;  %v6088_v58 = vld [vmem:[#allocation8_spill] sm:$0xff] }
 0x591   :  { %v3624_v4 = vpop.eup %3623  ;;  %v2837_v13 = vsub.f32 0.0, %v2773_v60  ;;  %v2710_v51 = vmul.f32 1.442695, %v2656_v7  ;;  %v2244_v21 = vadd.f32 1.0, %v2212_v20  ;;  %v2181_v49 = vand.u32 2147483647, %v5730_v46 }
 0x592   :  { %v2841_v6 = vsub.f32 0.0, %v2777_v22  ;;  %v2748_v50 = vmul.f32 %v3624_v4, %v2588_v54  ;;  %v2525_v36 = vmul.f32 %v5696_v16, %v2493_v44  ;;  %v2368_v17 = vadd.f32 -1.4531521, %v2336_v19  ;;  %v6089_v4 = vld [vmem:[#allocation10_spill] sm:$0xff] }
 0x593   :  { %v5741_v3 = vmul.f32 %v2893_v41, %v5550_v27  ;;  %v5744_v45 = vmul.f32 0.5, %v6084_v40  ;;  %3629 = vrcp.f32 %v2244_v21  ;;  %v2213_v59 = vmul.f32 0.3275911, %v2181_v49 }
 0x594   :  { %v2897_v24 = vadd.f32 1.0, %v2865_v8  ;;  %v2400_v52 = vmul.f32 %v5732_v33, %v2368_v17  ;;  %v2657_v11 = vsub.f32 0.0, %v2625_v23  ;;  %v5748_v7 = vmul.f32 0.70710677, %v6088_v58 }
 0x595   :  { %v5750_v31 = vpop.eup %3625  ;;  %v2869_v54 = vsel %vm2805_vm1, %v2837_v13, %v2773_v60  ;;  %v2557_v20 = vadd.f32 0.2548296, %v2525_v36  ;;  %3631 = vpow2.f32 %v2710_v51  ;;  %v2245_v27 = vadd.f32 1.0, %v2213_v59 }
 0x596   :  { %v2873_v40 = vsel %vm2809_vm2, %v2841_v6, %v2777_v22  ;;  %v2780_v41 = vsub.f32 1.0, %v2748_v50  ;;  %vm2812_vm3 = vcmp.lt.f32.partialorder %v5585_v26, 0.0  ;;  %v2432_v8 = vadd.f32 1.4214138, %v2400_v52 }
 0x597   :  { %v2337_v44 = vmul.f32 1.0614054, %v5750_v31  ;;  %v2628_v19 = vmul.f32 %v2180_v9, %v2180_v9  ;;  %3633 = vrcp.f32 %v2245_v27  ;;  %v2184_v23 = vand.u32 2147483647, %v5748_v7 }
 0x598   :  { %v5760_v21 = vmul.f32 0.70710677, %v6089_v4  ;;  %v2464_v55 = vmul.f32 %v5732_v33, %v2432_v8  ;;  %v5764_v60 = vmul.f32 0.5, %v6085_v43  ;;  %v2712_v22 = vmul.f32 1.442695, %v2657_v11 }
 0x599   :  { %v2369_v38 = vadd.f32 -1.4531521, %v2337_v44  ;;  %v2929_v13 = vmul.f32 %v2897_v24, %v5571_v62  ;;  %v2589_v51 = vmul.f32 %v5696_v16, %v2557_v20  ;;  %v2216_v6 = vmul.f32 0.3275911, %v2184_v23  ;;  %v6090_v62 = vld [vmem:[#allocation13_spill] sm:$0xff]  ;;  %v6091_v24 = vld [vmem:[#allocation16_spill] sm:$0xff] }
 0x59a   :  { %v2185_v9 = vand.u32 2147483647, %v5760_v21  ;;  %v3628_v50 = vpop.eup %3627  ;;  %v2901_v36 = vadd.f32 1.0, %v2869_v54  ;;  %v2905_v17 = vadd.f32 1.0, %v2873_v40  ;;  %v2496_v59 = vadd.f32 -0.28449672, %v2464_v55 }
 0x59b   :  { %v2401_v52 = vmul.f32 %v5750_v31, %v2369_v38  ;;  %v2844_v27 = vsub.f32 0.0, %v2780_v41  ;;  %v2660_v8 = vsub.f32 0.0, %v2628_v19  ;;  %v2248_v25 = vadd.f32 1.0, %v2216_v6 }
 0x59c   :  { %v2217_v43 = vmul.f32 0.3275911, %v2185_v9  ;;  %v2528_v44 = vmul.f32 %v5732_v33, %v2496_v59  ;;  %3635 = vpow2.f32 %v2712_v22  ;;  %v3269_v16 = vpack.c.bf16 %v6091_v24, %v6090_v62  ;;  %v6095_v24 = vld [vmem:[#allocation14_spill] sm:$0xff] }
 0x59d   :  { %v2433_v11 = vadd.f32 1.4214138, %v2401_v52  ;;  %v5773_v20 = vpop.eup %3629  ;;  %v5775_v57 = vmul.f32 %v3628_v50, %v2589_v51  ;;  %v2629_v54 = vmul.f32 %v2181_v49, %v2181_v49  ;;  %3637 = vrcp.f32 %v2248_v25  ;;  %v6092_v51 = vld [vmem:[#allocation29_spill] sm:$0xff]  ;;  %v6093_v50 = vld [vmem:[#allocation28_spill] sm:$0xff] }
 0x59e   :  { %v2249_v40 = vadd.f32 1.0, %v2217_v43  ;;  %v2933_v55 = vmul.f32 %v2901_v36, %v5596_v15  ;;  %v2560_v38 = vadd.f32 0.2548296, %v2528_v44  ;;  %v2340_v6 = vmul.f32 1.0614054, %v5773_v20  ;;  %3270 = vmatprep.subr.bf16.mxu0 %v3269_v16  ;;  %v6096_v16 = vld [vmem:[#allocation7_spill] sm:$0xff] }
 0x59f   :  { %v2465_v19 = vmul.f32 %v5750_v31, %v2433_v11  ;;  %v3632_v59 = vpop.eup %3631  ;;  %v2937_v22 = vmul.f32 %v2905_v17, %v5669_v12  ;;  %v2876_v52 = vsel %vm2812_vm3, %v2844_v27, %v2780_v41  ;;  %v2718_v62 = vmul.f32 1.442695, %v2660_v8 }
 0x5a0   :  { %v6094_v49 = vpack.c.bf16 %v6092_v51, %v6093_v50  ;;  %v3273_v15 = vpack.c.bf16 %v5522_v5, %v5498_v1  ;;  %v2592_v25 = vmul.f32 %v5732_v33, %v2560_v38  ;;  %v2372_v43 = vadd.f32 -1.4531521, %v2340_v6 }
 0x5a1   :  { %v2497_v36 = vadd.f32 -0.28449672, %v2465_v19  ;;  %3639 = vrcp.f32 %v2249_v40  ;;  %v5789_v44 = vpop.eup %3633  ;;  %v2781_v12 = vsub.f32 1.0, %v5775_v57  ;;  %v2661_v17 = vsub.f32 0.0, %v2629_v54 }
 0x5a2   :  { %3272 = vmatpush1.bf16.msra.mxu0 %v6094_v49  ;;  %v3277_v26 = vpack.c.bf16 %v5565_v0, %v5558_v42  ;;  %v3281_v41 = vpack.c.bf16 %v5685_v14, %v5567_v32  ;;  %v2752_v27 = vmul.f32 %v3632_v59, %v2592_v25  ;;  %v2404_v5 = vmul.f32 %v5773_v20, %v2372_v43 }
 0x5a3   :  { %3274 = vmatprep.subr.bf16.mxu0 %v3273_v15  ;;  %v2529_v1 = vmul.f32 %v5750_v31, %v2497_v36  ;;  %v2341_v33 = vmul.f32 1.0614054, %v5789_v44  ;;  %v2908_v8 = vadd.f32 1.0, %v2876_v52  ;;  %v2632_v11 = vmul.f32 %v2184_v23, %v2184_v23 }
 0x5a4   :  { %v6097_v57 = vpack.c.bf16 %v6095_v24, %v6096_v16  ;;  %v3285_v54 = vpack.c.bf16 %v2929_v13, %v5741_v3  ;;  %v3289_v40 = vpack.c.bf16 %v2937_v22, %v2933_v55  ;;  %vm2813_vm4 = vcmp.lt.f32.partialorder %v5630_v10, 0.0  ;;  %v5834_v10 = vld [vmem:[%s5876_s5] sm:$0xff]  ;;  %s3691_s5 = smov [#allocation2]  }
 0x5a5   :  { %v2784_v42 = vsub.f32 1.0, %v2752_v27  ;;  %v2561_v0 = vadd.f32 0.2548296, %v2529_v1  ;;  %v2436_v32 = vadd.f32 1.4214138, %v2404_v5  ;;  %3641 = vpow2.f32 %v2718_v62  ;;  %s3116_s20 = sshll.u32 %s3691_s5, 4  ;;  %s3117_s20 = int_to_ptr.vmem [resolvable:$true] %s3116_s20 }
 0x5a6   :  { %3276 = vmatpush1.bf16.msra.mxu0 %v6097_v57  ;;  %v2373_v14 = vadd.f32 -1.4531521, %v2341_v33  ;;  %v2720_v38 = vmul.f32 1.442695, %v2661_v17  ;;  %v2633_v19 = vmul.f32 %v2185_v9, %v2185_v9  ;;  %3286 = vmatprep.subr.bf16.mxu1 %v3285_v54  ;;  %v3636_v6 = vpop.eup %3635  ;;  %v2845_v23 = vsub.f32 0.0, %v2781_v12  ;;  %s3649_s21 = scalar_lea.vmem %s3117_s20, 512  ;;  %p3654_p1 = scmp.lt.s32.totalorder %s3117_s20, %s3117_s20 }
 0x5a7   :  { %3278 = vmatprep.subr.bf16.mxu0 %v3277_v26  ;;  %v2848_v59 = vsub.f32 0.0, %v2784_v42  ;;  %v2593_v52 = vmul.f32 %v5750_v31, %v2561_v0  ;;  %v2468_v51 = vmul.f32 %v5773_v20, %v2436_v32  ;;  %v6098_v3 = vpack.c.bf16 %v5656_v2, %v5633_v18  ;;  %v5809_v13 = vpop.eup %3637  ;;  %p3650_p0 = scmp.ne.s32.totalorder %s3117_s20, %s3649_s21  ;;  %p3655_p2 = scmp.lt.s32.totalorder %s3649_s21, %s3649_s21 }
 0x5a8   :  { %v5812_v55 = vmul.f32 %v2908_v8, %v5700_v56  ;;  %vm2816_vm5 = vcmp.lt.f32.partialorder %v5662_v35, 0.0  ;;  %v2405_v9 = vmul.f32 %v5789_v44, %v2373_v14  ;;  %v2664_v22 = vsub.f32 0.0, %v2632_v11 }
 0x5a9   :  { %3288 = vmatpush1.bf16.msra.mxu1 %v6098_v3  ;;  %v6099_v62 = vpack.c.bf16 %v5463_v53, %v5460_v34  ;;  %v2880_v31 = vsel %vm2816_vm5, %v2848_v59, %v2784_v42  ;;  %v2753_v50 = vmul.f32 %v3636_v6, %v2593_v52  ;;  %v2500_v49 = vadd.f32 -0.28449672, %v2468_v51  ;;  %p3656_p3 = por %p3655_p2, %p3654_p1 }
 0x5aa   :  { %3290 = vmatprep.subr.bf16.mxu1 %v3289_v40  ;;  %v2344_v18 = vmul.f32 1.0614054, %v5809_v13  ;;  %v2912_v2 = vadd.f32 1.0, %v2880_v31  ;;  %v2437_v15 = vadd.f32 1.4214138, %v2405_v9  ;;  %3643 = vpow2.f32 %v2720_v38 }
 0x5ab   :  { %3280 = vmatpush1.bf16.msra.mxu0 %v6099_v62  ;;  %v2665_v56 = vsub.f32 0.0, %v2633_v19  ;;  %v3640_v25 = vpop.eup %3639  ;;  %v2877_v35 = vsel %vm2813_vm4, %v2845_v23, %v2781_v12  ;;  %v2785_v36 = vsub.f32 1.0, %v2753_v50  ;;  %v2532_v43 = vmul.f32 %v5773_v20, %v2500_v49  ;;  %p3657_p4 = pnand %p3656_p3, %p3650_p0 }
 0x5ac   :  { %3282 = vmatprep.subr.bf16.mxu0 %v3281_v41  ;;  %v2376_v34 = vadd.f32 -1.4531521, %v2344_v18  ;;  %v6100_v53 = vpack.c.bf16 %v5713_v28, %v5710_v47  ;;  %v2944_v17 = vmul.f32 %v2912_v2, %v5744_v45  ;;  %v2469_v26 = vmul.f32 %v5789_v44, %v2437_v15 }
 0x5ad   :  { %v2726_v41 = vmul.f32 1.442695, %v2664_v22  ;;  %v2345_v27 = vmul.f32 1.0614054, %v3640_v25  ;;  %v6101_v1 = vpack.c.bf16 %v5494_v30, %v5492_v61  ;;  %vm2817_vm6 = vcmp.lt.f32.partialorder %v5681_v39, 0.0 }
 0x5ae   :  { %3292 = vmatpush1.bf16.msra.mxu1 %v6100_v53  ;;  %v2849_v12 = vsub.f32 0.0, %v2785_v36  ;;  %v2564_v47 = vadd.f32 0.2548296, %v2532_v43  ;;  %v2408_v28 = vmul.f32 %v5809_v13, %v2376_v34  ;;  %v2909_v45 = vadd.f32 1.0, %v2877_v35 }
 0x5af   :  { %3284 = vmatpush1.bf16.msra.mxu0 %v6101_v1  ;;  %v3295_v5 = vpack.c.bf16 %v2944_v17, %v5812_v55  ;;  %v2501_v33 = vadd.f32 -0.28449672, %v2469_v26  ;;  %v2377_v8 = vadd.f32 -1.4531521, %v2345_v27  ;;  %v2728_v24 = vmul.f32 1.442695, %v2665_v56  ;;  %v3642_v16 = vpop.eup %3641 }
 0x5b0   :  { %v2881_v11 = vsel %vm2817_vm6, %v2849_v12, %v2785_v36  ;;  %v2596_v61 = vmul.f32 %v5773_v20, %v2564_v47  ;;  %v2440_v30 = vadd.f32 1.4214138, %v2408_v28  ;;  %3645 = vpow2.f32 %v2726_v41 }
 0x5b1   :  { %v2913_v57 = vadd.f32 1.0, %v2881_v11  ;;  %v2533_v39 = vmul.f32 %v5789_v44, %v2501_v33  ;;  %v2409_v54 = vmul.f32 %v3640_v25, %v2377_v8  ;;  %v2941_v0 = vmul.f32 %v2909_v45, %v5722_v37 }
 0x5b2   :  { %3195 = vmatmul.mubr.msk.f32.vlgmr.msra.gmra.mrb[80].mxu0 %vm1582_vm9, %v5834_v10  ;;  %v2756_v40 = vmul.f32 %v3642_v16, %v2596_v61  ;;  %v2472_v42 = vmul.f32 %v5809_v13, %v2440_v30  ;;  %3647 = vpow2.f32 %v2728_v24  ;;  %vm2820_vm7 = vcmp.lt.f32.partialorder %v5716_v63, 0.0 }
 0x5b3   :  { %v2945_v32 = vmul.f32 %v2913_v57, %v5764_v60  ;;  %v2565_v14 = vadd.f32 0.2548296, %v2533_v39  ;;  %v2441_v20 = vadd.f32 1.4214138, %v2409_v54  ;;  %vm2821_vm8 = vcmp.lt.f32.partialorder %v5730_v46, 0.0 }
 0x5b4   :  { %v2504_v38 = vadd.f32 -0.28449672, %v2472_v42  ;;  %v3644_v19 = vpop.eup %3643  ;;  %v2788_v52 = vsub.f32 1.0, %v2756_v40  ;;  %vm2824_vm10 = vcmp.lt.f32.partialorder %v5748_v7, 0.0  ;;  %v2116_v17 = vmul.f32 0.5, %v6086_v29  ;;  %v2959_v29 = vpop.permute.xlu0 %2958 }
 0x5b5   :  { %v2597_v6 = vmul.f32 %v5789_v44, %v2565_v14  ;;  %v2473_v23 = vmul.f32 %v3640_v25, %v2441_v20  ;;  %v3293_v59 = vpack.c.bf16 %v2945_v32, %v2941_v0  ;;  %v2120_v26 = vmul.f32 0.5, %v6088_v58 }
 0x5b6   :  { %v2536_v51 = vmul.f32 %v5809_v13, %v2504_v38  ;;  %v2852_v60 = vsub.f32 0.0, %v2788_v52  ;;  %vm2825_vm11 = vcmp.lt.f32.partialorder %v5760_v21, 0.0  ;;  %v2117_v46 = vmul.f32 0.5, %v6087_v48 }
 0x5b7   :  { %v2757_v3 = vmul.f32 %v3644_v19, %v2597_v6  ;;  %v2505_v55 = vadd.f32 -0.28449672, %v2473_v23  ;;  %3294 = vmatprep.subr.bf16.mxu1 %v3293_v59  ;;  %v2121_v47 = vmul.f32 0.5, %v6089_v4 }
 0x5b8   :  { %v2568_v9 = vadd.f32 0.2548296, %v2536_v51  ;;  %3296 = vmatpush1.bf16.msra.mxu1 %v3295_v5  ;;  %v2884_v15 = vsel %vm2820_vm7, %v2852_v60, %v2788_v52 }
 0x5b9   :  { %v2789_v37 = vsub.f32 1.0, %v2757_v3  ;;  %v2537_v22 = vmul.f32 %v3640_v25, %v2505_v55  ;;  %v2916_v43 = vadd.f32 1.0, %v2884_v15 }
 0x5ba   :  { %v2600_v62 = vmul.f32 %v5809_v13, %v2568_v9  ;;  %v3646_v31 = vpop.eup %3645 }
 0x5bb   :  { %v2569_v50 = vadd.f32 0.2548296, %v2537_v22  ;;  %v2853_v44 = vsub.f32 0.0, %v2789_v37  ;;  %v2948_v27 = vmul.f32 %v2916_v43, %v2116_v17 }
 0x5bc   :  { %v2760_v49 = vmul.f32 %v3646_v31, %v2600_v62  ;;  %v3648_v2 = vpop.eup %3647 }
 0x5bd   :  { %v2601_v18 = vmul.f32 %v3640_v25, %v2569_v50  ;;  %v2885_v34 = vsel %vm2821_vm8, %v2853_v44, %v2789_v37 }
 0x5be   :  { %v2792_v56 = vsub.f32 1.0, %v2760_v49  ;;  %v2917_v25 = vadd.f32 1.0, %v2885_v34 }
 0x5bf   :  { %v2761_v35 = vmul.f32 %v3648_v2, %v2601_v18 }
 0x5c0   :  { %v2856_v36 = vsub.f32 0.0, %v2792_v56  ;;  %v2949_v45 = vmul.f32 %v2917_v25, %v2117_v46 }
 0x5c1   :  { %v2793_v53 = vsub.f32 1.0, %v2761_v35 }
 0x5c2   :  { %v2888_v13 = vsel %vm2824_vm10, %v2856_v36, %v2792_v56 }
 0x5c3   :  { %v2920_v63 = vadd.f32 1.0, %v2888_v13  ;;  %v2857_v41 = vsub.f32 0.0, %v2793_v53 }
 0x5c5   :  { %v2952_v1 = vmul.f32 %v2920_v63, %v2120_v26  ;;  %v2889_v12 = vsel %vm2825_vm11, %v2857_v41, %v2793_v53 }
 0x5c6   :  { %v2921_v28 = vadd.f32 1.0, %v2889_v12 }
 0x5c7   :  { %v3299_v7 = vpack.c.bf16 %v2952_v1, %v2948_v27 }
 0x5c8   :  { %v2953_v5 = vmul.f32 %v2921_v28, %v2121_v47 }
 0x5ca   :  { %v3297_v33 = vpack.c.bf16 %v2953_v5, %v2949_v45 }
 0x5cc   :  { %3298 = vmatprep.subr.bf16.mxu1 %v3297_v33 }
 0x5cd   :  { %3300 = vmatpush1.bf16.msra.mxu1 %v3299_v7 }
 0x5d0   :  { %3196 = vmatmul.mubr.msk.f32.vlgmr.msra.gmra.mrb[80].mxu1 %vm1582_vm9, %v5834_v10 }
 0x685   :  { %v3030_v58 = vpop.f32.mrb[80].mxu0 }
 0x686   :  { %v3031_v21 = vadd.f32 %v3030_v58, %v2959_v29  ;;  %v3032_v8 = vpop.f32.mrb[81].mxu0 }
 0x687   :  { %v3033_v11 = vadd.f32 %v3032_v8, %v2959_v29 }
 0x688   :  { %3106 = vst [vmem:[#allocation2] sm:$0xff] %v3031_v21 }
 0x689   :  { %3107 = vst [vmem:[#allocation2 + $0x8] sm:$0xff] %v3033_v11 }
 0x6a3   :  { %v3101_v48 = vpop.f32.mrb[80].mxu1 }
 0x6a4   :  { %v3102_v4 = vadd.f32 %v3101_v48, %v2959_v29  ;;  %v3103_v61 = vpop.f32.mrb[81].mxu1 }
 0x6a5   :  { %v3104_v30 = vadd.f32 %v3103_v61, %v2959_v29 }
 0x6a6   :  { %3108 = vst [vmem:[#allocation2 + $0x10] sm:$0xff] %v3102_v4 }
 0x6a7   :  { %3109 = vst [vmem:[#allocation2 + $0x18] sm:$0xff] %v3104_v30 }
 0x6a8   :  { %3660 = shalt.err (!%p3657_p4)
}
 0x6a9   :  { %s3661_s24 = scalar_lea.hbm %s5878_s7, 512 }
 0x6aa   :  { %p3662_p5 = scmp.ne.s32.totalorder %s5878_s7, %s3661_s24  ;;  %p3665_p6 = scmp.lt.u32.totalorder %s3661_s24, %s5878_s7 }
 0x6ac   :  { %p3667_p7 = pnand %p3665_p6, %p3662_p5 }
 0x6ae   :  { %3670 = shalt.err (!%p3667_p7)
}
 0x6af   :  { %3119 = dma.vmem_to_hbm [thread:$0]  %s3117_s20, 512, %s5878_s7, [#allocation3]  }
 0x6b0   :  { %3671 = dma.done.wait [#allocation3], 512  }
 0x6b1   :  { %3672 = vsyncadd [#allocation3], 4294966784 }
 0x6b2   :  { %3123 = vsyncpa [#allocation3], 1 }

</bundles_post_ra>
